<compile_context>
chip_gen: v5e
topology: v5e:2x2
jax: 0.10.0
libtpu: 0.0.40
codegen_flags: <defaults>
</compile_context>

<pallas_src>
import math

import jax
import jax.numpy as jnp
from jax.experimental import pallas as pl
from jax.experimental.pallas import tpu as pltpu


_ROW_TILE = 512                        # activation-row tile for the projections
_VMEM_LIMIT_BYTES = 32 * 1024 * 1024   # explicit scoped-VMEM limit (safe on all gens)


# --------------------------------------------------------------------------
# Projection kernel (bias-free Linear, PyTorch (out, in) weight layout)
# --------------------------------------------------------------------------
def _linear_kernel(x_ref, w_ref, o_ref):
    # x: (TM, K), w: (N, K)  ->  o = x @ w.T, contracted directly on the MXU.
    o_ref[...] = jax.lax.dot_general(
        x_ref[...], w_ref[...],
        dimension_numbers=(((1,), (1,)), ((), ())),
        preferred_element_type=jnp.float32,
    ).astype(o_ref.dtype)


def linear_pallas(x2d, w):
    """y = x2d @ w.T, row-tiled so DMA and MXU overlap (pipelined grid)."""
    M, K = x2d.shape
    N, K2 = w.shape
    assert K == K2
    tm = min(_ROW_TILE, M)
    # TODO(synk): at large N*K, single-buffer the resident weight block
    # (pipeline_mode=pl.Buffered(1)) or tile N -- matters on v7x's 64 MiB VMEM.
    return pl.pallas_call(
        _linear_kernel,
        out_shape=jax.ShapeDtypeStruct((M, N), x2d.dtype),
        grid=(pl.cdiv(M, tm),),
        in_specs=[
            pl.BlockSpec((tm, K), lambda i: (i, 0)),
            pl.BlockSpec((N, K), lambda i: (0, 0)),   # weights stay resident
        ],
        out_specs=pl.BlockSpec((tm, N), lambda i: (i, 0)),
        compiler_params=pltpu.CompilerParams(
            dimension_semantics=("parallel",),
            vmem_limit_bytes=_VMEM_LIMIT_BYTES),
    )(x2d, w)


# --------------------------------------------------------------------------
# Decomposed-attention branch kernel (head/slice-batched, lane-dense store)
# --------------------------------------------------------------------------
def _make_branch_kernel(*, nh, scale, num_slices, accumulate):
    """Builds one branch step.

    qkv_ref: (*lead_dims, 3*nh, d) where prod(lead_dims) == L * num_slices and,
             when num_slices > 1, the slice axis is the LAST of the lead dims.
    acc_ref: running branch sum, same block as o_ref (only when accumulate).
    o_ref  : (*out_lead_dims, c) -- one lane-dense slab per step, c = nh*d.
    """

    def _attend(qkv_ref, acc_ref, o_ref):
        blk = qkv_ref[...]
        three_nh, d = blk.shape[-2:]
        S = num_slices
        L = math.prod(blk.shape[:-2]) // S
        blk = blk.reshape(L, S, three_nh, d)          # leading-dim regroup (free)

        q = blk[:, :, :nh, :] * scale                 # pre-scale q (L*d mults)
        k = blk[:, :, nh:2 * nh, :]
        v = blk[:, :, 2 * nh:, :]

        def heads_major(a):                           # (L, S, nh, d) -> (S*nh, L, d)
            return jnp.transpose(a, (1, 2, 0, 3)).reshape(S * nh, L, d)

        qh = heads_major(q)
        kh = heads_major(k)
        vh = heads_major(v)

        # One (slices*heads)-batched QK^T and PV on the MXU.
        s = jnp.einsum('bqd,bkd->bqk', qh, kh,
                       preferred_element_type=jnp.float32)
        s = s - jnp.max(s, axis=-1, keepdims=True)
        p = jnp.exp(s)
        denom = jnp.sum(p, axis=-1, keepdims=True)
        inv = pl.reciprocal(denom, approx=True)       # EUP slot
        inv = inv * (2.0 - denom * inv)               # one Newton step (VPU filler)

        o = jnp.einsum('bqk,bkd->bqd', p.astype(vh.dtype), vh,
                       preferred_element_type=jnp.float32)
        o = o * inv                                   # (S*nh, L, d)

        # Head-interleave (inherent to the module) done once, in registers, so
        # the HBM writeback below is a single dense slab with trailing dim c.
        out = jnp.transpose(o.reshape(S, nh, L, d), (2, 0, 1, 3))   # (L, S, nh, d)
        out = out.reshape(L, S, nh * d).reshape(o_ref.shape)
        if acc_ref is not None:
            out = out + acc_ref[...].astype(out.dtype)
        o_ref[...] = out.astype(o_ref.dtype)

    if accumulate:
        def kernel(qkv_ref, acc_ref, o_ref):
            _attend(qkv_ref, acc_ref, o_ref)
    else:
        def kernel(qkv_ref, o_ref):
            _attend(qkv_ref, None, o_ref)
    return kernel


def _branch_call(qkv_view, acc_view, *, grid, in_block, in_index,
                 out_shape, out_block, out_index, scale, nh, num_slices, dtype):
    accumulate = acc_view is not None
    kernel = _make_branch_kernel(nh=nh, scale=scale, num_slices=num_slices,
                                 accumulate=accumulate)
    in_specs = [pl.BlockSpec(in_block, in_index)]
    operands = [qkv_view]
    io_aliases = {}
    if accumulate:
        in_specs.append(pl.BlockSpec(out_block, out_index))
        operands.append(acc_view)
        io_aliases = {1: 0}            # acc buffer is reused as the output
    return pl.pallas_call(
        kernel,
        out_shape=jax.ShapeDtypeStruct(out_shape, dtype),
        grid=grid,
        in_specs=in_specs,
        out_specs=pl.BlockSpec(out_block, out_index),
        input_output_aliases=io_aliases,
        compiler_params=pltpu.CompilerParams(
            dimension_semantics=("parallel",) * len(grid),
            vmem_limit_bytes=_VMEM_LIMIT_BYTES),
    )(*operands)


# --------------------------------------------------------------------------
# DecomposedAttention forward (Pallas)
# --------------------------------------------------------------------------
def decomposed_attention_pallas(x, w_qkv, w_proj, *, size, head_num):
    b, n, c = x.shape
    hh, ww, tt = size
    assert n == hh * ww * tt
    nh = head_num
    d = c // nh
    scale = float(d) ** 0.5    # NOTE: module MULTIPLIES q by sqrt(d)

    # ---- QKV projection: tiled Pallas matmul, PyTorch (out, in) weights ----
    qkv = linear_pallas(x.reshape(b * n, c), w_qkv)           # (b*n, 3c)

    # (b*n, 3c) -> (b, h, w, t, 3*nh, d): pure reshape, zero data movement.
    qkv6 = qkv.reshape(b, hh, ww, tt, 3 * nh, d)

    # ---- branch 1: seq (h, w); the whole fixed axis t is folded into the
    #      block (grid=(b,)) and batched together with the heads. ----
    v1 = qkv6.reshape(b, hh * ww, tt, 3 * nh, d)              # free reshape
    z = _branch_call(
        v1, None, grid=(b,),
        in_block=(None, hh * ww, tt, 3 * nh, d),
        in_index=lambda bi: (bi, 0, 0, 0, 0),
        out_shape=(b, hh * ww, tt, c),
        out_block=(None, hh * ww, tt, c),
        out_index=lambda bi: (bi, 0, 0, 0),
        scale=scale, nh=nh, num_slices=tt, dtype=x.dtype)

    # ---- branch 2: seq (h, t), fixed w; accumulates into z (aliased) ----
    # TODO(synk): folding w into the block like branch 1 needs a 5-D in-kernel
    # transpose; revisit if per-step overhead shows up on v7x.
    z = _branch_call(
        qkv6, z.reshape(b, hh, ww, tt, c), grid=(b, ww),
        in_block=(None, hh, None, tt, 3 * nh, d),
        in_index=lambda bi, wi: (bi, 0, wi, 0, 0, 0),
        out_shape=(b, hh, ww, tt, c),
        out_block=(None, hh, None, tt, c),
        out_index=lambda bi, wi: (bi, 0, wi, 0, 0),
        scale=scale, nh=nh, num_slices=1, dtype=x.dtype)

    # ---- branch 3: seq (w, t), fixed h; accumulates into z (aliased) ----
    v3 = qkv6.reshape(b, hh, ww * tt, 3 * nh, d)              # free reshape
    z = _branch_call(
        v3, z.reshape(b, hh, ww * tt, c), grid=(b, hh),
        in_block=(None, None, ww * tt, 3 * nh, d),
        in_index=lambda bi, hi: (bi, hi, 0, 0, 0),
        out_shape=(b, hh, ww * tt, c),
        out_block=(None, None, ww * tt, c),
        out_index=lambda bi, hi: (bi, hi, 0, 0),
        scale=scale, nh=nh, num_slices=1, dtype=x.dtype)

    # ---- output projection: single input (branch sum already lives in z) ----
    out = linear_pallas(z.reshape(b * n, c), w_proj)          # (b*n, c)
    return out.reshape(b, n, c)


# --------------------------------------------------------------------------
# Pure-JAX reference (mirrors the PyTorch module) for the correctness check
# --------------------------------------------------------------------------
def decomposed_attention_ref(x, w_qkv, w_proj, *, size, head_num):
    b, n, c = x.shape
    hh, ww, tt = size
    d = c // head_num
    scale = float(d) ** 0.5

    qkv = (x @ w_qkv.T).reshape(b, n, 3, head_num, d)
    qkv = jnp.transpose(qkv, (2, 0, 3, 1, 4))
    xr = jnp.transpose(qkv.reshape(3, b, head_num, hh, ww, tt, d),
                       (0, 1, 6, 2, 3, 4, 5))

    def branch(perm, B2, L):
        y = jnp.transpose(xr, perm).reshape(3, B2, head_num, L, d)
        q, k, v = y[0] * scale, y[1], y[2]
        attn = jax.nn.softmax(q @ jnp.swapaxes(k, -2, -1), axis=-1)
        return jnp.transpose(attn @ v, (0, 2, 1, 3))

    y1 = branch((0, 1, 6, 3, 4, 5, 2), b * tt, hh * ww)
    y2 = branch((0, 1, 5, 3, 4, 6, 2), b * ww, hh * tt)
    y3 = branch((0, 1, 4, 3, 5, 6, 2), b * hh, ww * tt)

    z1 = jnp.transpose(y1.reshape(b, tt, hh, ww, head_num, d),
                       (0, 2, 3, 1, 4, 5)).reshape(b, n, c)
    z2 = jnp.transpose(y2.reshape(b, ww, hh, tt, head_num, d),
                       (0, 2, 1, 3, 4, 5)).reshape(b, n, c)
    z3 = y3.reshape(b, hh, ww, tt, head_num, d).reshape(b, n, c)
    return (z1 + z2 + z3) @ w_proj.T


# --------------------------------------------------------------------------
if __name__ == "__main__":
    # Small shapes consistent with the module: oup=32, head_num=4, h=w=t=4
    B = 2
    HH, WW, TT = 4, 4, 4
    OUP = 32
    HEAD_NUM = 4
    N = HH * WW * TT

    key = jax.random.PRNGKey(0)
    kx, kq, kp = jax.random.split(key, 3)
    x = jax.random.normal(kx, (B, N, OUP), dtype=jnp.float32)
    # PyTorch Linear weight layout: (out_features, in_features)
    w_qkv = 0.05 * jax.random.normal(kq, (3 * OUP, OUP), dtype=jnp.float32)
    w_proj = 0.05 * jax.random.normal(kp, (OUP, OUP), dtype=jnp.float32)

    fwd = jax.jit(decomposed_attention_pallas,
                  static_argnames=("size", "head_num"))
    out = jax.block_until_ready(
        fwd(x, w_qkv, w_proj, size=(HH, WW, TT), head_num=HEAD_NUM))

    ref = jax.block_until_ready(
        decomposed_attention_ref(x, w_qkv, w_proj,
                                 size=(HH, WW, TT), head_num=HEAD_NUM))

    assert out.shape == (B, N, OUP)
    max_err = float(jnp.max(jnp.abs(out - ref)))
    assert jnp.allclose(out, ref, rtol=2e-3, atol=2e-3), max_err
    print("KERNEL_OK")
</pallas_src>

<mosaic_0001>
module attributes {stable_mosaic.version = 11 : i64} {
  func.func @_linear_kernel(%arg0: i32, %arg1: memref<128x32xf32, #tpu.memory_space<vmem>>, %arg2: memref<96x32xf32, #tpu.memory_space<vmem>>, %arg3: memref<128x96xf32, #tpu.memory_space<vmem>>) attributes {dimension_semantics = [#tpu.dimension_semantics<parallel>], iteration_bounds = array<i64: 1>, scalar_prefetch = 0 : i64, scratch_operands = 0 : i64, tpu.core_type = #tpu.core_type<tc>, window_params = [{transform_indices = @transform_0, window_bounds = array<i64: 128, 32>}, {pipeline_mode = #tpu.pipeline_mode<synchronous>, transform_indices = @transform_1, window_bounds = array<i64: 96, 32>}, {transform_indices = @transform_2, window_bounds = array<i64: 128, 96>}]} {
    %c0 = arith.constant 0 : index
    %c0_0 = arith.constant 0 : index
    %0 = vector.load %arg1[%c0, %c0_0] : memref<128x32xf32, #tpu.memory_space<vmem>>, vector<128x32xf32>
    %c0_1 = arith.constant 0 : index
    %c0_2 = arith.constant 0 : index
    %1 = vector.load %arg2[%c0_1, %c0_2] : memref<96x32xf32, #tpu.memory_space<vmem>>, vector<96x32xf32>
    %cst = arith.constant dense<0.000000e+00> : vector<128x96xf32>
    %2 = tpu.matmul %0, %1, %cst {dimension_numbers = #tpu.dot_dimension_numbers<[1], [1], [0], [0], [0, 0, 1, 0], [], []>} : vector<128x32xf32>, vector<96x32xf32>, vector<128x96xf32> -> vector<128x96xf32>
    %c0_3 = arith.constant 0 : index
    %c0_4 = arith.constant 0 : index
    %3 = vector.load %arg3[%c0_3, %c0_4] : memref<128x96xf32, #tpu.memory_space<vmem>>, vector<128x96xf32>
    tpu.vector_store %arg3[%c0_3, %c0_4], %2 {strides = array<i32>} : memref<128x96xf32, #tpu.memory_space<vmem>>, vector<128x96xf32>,
    return
  }
  func.func @transform_0(%arg0: i32) -> (i32, i32) {
    %c0_i32 = arith.constant 0 : i32
    %c0_i32_0 = arith.constant 0 : i32
    return %arg0, %c0_i32 : i32, i32
  }
  func.func @transform_1(%arg0: i32) -> (i32, i32) {
    %c0_i32 = arith.constant 0 : i32
    %c0_i32_0 = arith.constant 0 : i32
    %c0_i32_1 = arith.constant 0 : i32
    return %c0_i32, %c0_i32_0 : i32, i32
  }
  func.func @transform_2(%arg0: i32) -> (i32, i32) {
    %c0_i32 = arith.constant 0 : i32
    %c0_i32_0 = arith.constant 0 : i32
    return %arg0, %c0_i32 : i32, i32
  }
}

module attributes {stable_mosaic.version = 11 : i64} {
  func.func @kernel(%arg0: i32, %arg1: memref<1x16x4x12x8xf32, #tpu.memory_space<vmem>>, %arg2: memref<1x16x4x32xf32, #tpu.memory_space<vmem>>) attributes {dimension_semantics = [#tpu.dimension_semantics<parallel>], iteration_bounds = array<i64: 2>, scalar_prefetch = 0 : i64, scratch_operands = 0 : i64, tpu.core_type = #tpu.core_type<tc>, window_params = [{transform_indices = @transform_0, window_bounds = array<i64: 1, 16, 4, 12, 8>}, {transform_indices = @transform_1, window_bounds = array<i64: 1, 16, 4, 32>}]} {
    %c0 = arith.constant 0 : index
    %c0_0 = arith.constant 0 : index
    %c0_1 = arith.constant 0 : index
    %c0_2 = arith.constant 0 : index
    %c0_3 = arith.constant 0 : index
    %0 = vector.load %arg1[%c0, %c0_0, %c0_1, %c0_2, %c0_3] : memref<1x16x4x12x8xf32, #tpu.memory_space<vmem>>, vector<1x16x4x12x8xf32>
    %1 = vector.shape_cast %0 : vector<1x16x4x12x8xf32> to vector<16x4x12x8xf32>
    %2 = vector.extract_strided_slice %1 {offsets = [0, 0, 0, 0], sizes = [16, 4, 4, 8], strides = [1, 1, 1, 1]} : vector<16x4x12x8xf32> to vector<16x4x4x8xf32>
    %cst = arith.constant 2.82842708 : f32
    %3 = vector.broadcast %cst : f32 to vector<16x4x4x8xf32>
    %4 = arith.mulf %2, %3 : vector<16x4x4x8xf32>
    %5 = vector.extract_strided_slice %1 {offsets = [0, 0, 4, 0], sizes = [16, 4, 4, 8], strides = [1, 1, 1, 1]} : vector<16x4x12x8xf32> to vector<16x4x4x8xf32>
    %6 = vector.extract_strided_slice %1 {offsets = [0, 0, 8, 0], sizes = [16, 4, 4, 8], strides = [1, 1, 1, 1]} : vector<16x4x12x8xf32> to vector<16x4x4x8xf32>
    %7 = tpu.transpose %4, [1, 2, 0, 3] : vector<16x4x4x8xf32> -> vector<4x4x16x8xf32>
    %8 = vector.shape_cast %7 : vector<4x4x16x8xf32> to vector<16x16x8xf32>
    %9 = tpu.transpose %5, [1, 2, 0, 3] : vector<16x4x4x8xf32> -> vector<4x4x16x8xf32>
    %10 = vector.shape_cast %9 : vector<4x4x16x8xf32> to vector<16x16x8xf32>
    %11 = tpu.transpose %6, [1, 2, 0, 3] : vector<16x4x4x8xf32> -> vector<4x4x16x8xf32>
    %12 = vector.shape_cast %11 : vector<4x4x16x8xf32> to vector<16x16x8xf32>
    "tpu.trace_start"() <{level = 10 : i32, message = "bqd,bkd->bqk"}> : () -> ()
    %cst_4 = arith.constant dense<0.000000e+00> : vector<16x16x16xf32>
    %13 = tpu.matmul %8, %10, %cst_4 {dimension_numbers = #tpu.dot_dimension_numbers<[2], [2], [1], [1], [0, 0, 0, 1, 1, 1], [0], [0]>} : vector<16x16x8xf32>, vector<16x16x8xf32>, vector<16x16x16xf32> -> vector<16x16x16xf32>
    "tpu.trace_stop"() : () -> ()
    %cst_5 = arith.constant dense<0xFF800000> : vector<16x16xf32>
    %14 = vector.multi_reduction <maximumf>, %13, %cst_5 [2] : vector<16x16x16xf32> to vector<16x16xf32>
    %15 = vector.shape_cast %14 : vector<16x16xf32> to vector<16x16x1xf32>
    %16 = vector.broadcast %15 : vector<16x16x1xf32> to vector<16x16x16xf32>
    %17 = arith.subf %13, %16 : vector<16x16x16xf32>
    %18 = math.exp %17 : vector<16x16x16xf32>
    %cst_6 = arith.constant dense<0.000000e+00> : vector<16x16xf32>
    %19 = vector.multi_reduction <add>, %18, %cst_6 [2] : vector<16x16x16xf32> to vector<16x16xf32>
    %20 = vector.shape_cast %19 : vector<16x16xf32> to vector<16x16x1xf32>
    %21 = tpu.reciprocal %20 {approx = true} : vector<16x16x1xf32> -> vector<16x16x1xf32>
    %22 = arith.mulf %20, %21 : vector<16x16x1xf32>
    %cst_7 = arith.constant 2.000000e+00 : f32
    %23 = vector.broadcast %cst_7 : f32 to vector<16x16x1xf32>
    %24 = arith.subf %23, %22 : vector<16x16x1xf32>
    %25 = arith.mulf %21, %24 : vector<16x16x1xf32>
    "tpu.trace_start"() <{level = 10 : i32, message = "bqk,bkd->bqd"}> : () -> ()
    %cst_8 = arith.constant dense<0.000000e+00> : vector<16x16x8xf32>
    %26 = tpu.matmul %18, %12, %cst_8 {dimension_numbers = #tpu.dot_dimension_numbers<[2], [1], [1], [2], [0, 0, 0, 1, 1, 2], [0], [0]>} : vector<16x16x16xf32>, vector<16x16x8xf32>, vector<16x16x8xf32> -> vector<16x16x8xf32>
    "tpu.trace_stop"() : () -> ()
    %27 = vector.broadcast %25 : vector<16x16x1xf32> to vector<16x16x8xf32>
    %28 = arith.mulf %26, %27 : vector<16x16x8xf32>
    %29 = vector.shape_cast %28 : vector<16x16x8xf32> to vector<4x4x16x8xf32>
    %30 = tpu.transpose %29, [2, 0, 1, 3] : vector<4x4x16x8xf32> -> vector<16x4x4x8xf32>
    %31 = vector.shape_cast %30 : vector<16x4x4x8xf32> to vector<16x4x32xf32>
    %c0_9 = arith.constant 0 : index
    %c0_10 = arith.constant 0 : index
    %c0_11 = arith.constant 0 : index
    %c0_12 = arith.constant 0 : index
    %32 = vector.load %arg2[%c0_9, %c0_10, %c0_11, %c0_12] : memref<1x16x4x32xf32, #tpu.memory_space<vmem>>, vector<1x16x4x32xf32>
    %33 = vector.shape_cast %32 : vector<1x16x4x32xf32> to vector<16x4x32xf32>
    %34 = vector.shape_cast %31 : vector<16x4x32xf32> to vector<1x16x4x32xf32>
    tpu.vector_store %arg2[%c0_9, %c0_10, %c0_11, %c0_12], %34 {strides = array<i32>} : memref<1x16x4x32xf32, #tpu.memory_space<vmem>>, vector<1x16x4x32xf32>,
    return
  }
  func.func @transform_0(%arg0: i32) -> (i32, i32, i32, i32, i32) {
    %c0_i32 = arith.constant 0 : i32
    %c0_i32_0 = arith.constant 0 : i32
    %c0_i32_1 = arith.constant 0 : i32
    %c0_i32_2 = arith.constant 0 : i32
    %c0_i32_3 = arith.constant 0 : i32
    return %arg0, %c0_i32, %c0_i32_0, %c0_i32_1, %c0_i32_2 : i32, i32, i32, i32, i32
  }
  func.func @transform_1(%arg0: i32) -> (i32, i32, i32, i32) {
    %c0_i32 = arith.constant 0 : i32
    %c0_i32_0 = arith.constant 0 : i32
    %c0_i32_1 = arith.constant 0 : i32
    %c0_i32_2 = arith.constant 0 : i32
    return %arg0, %c0_i32, %c0_i32_0, %c0_i32_1 : i32, i32, i32, i32
  }
}

module attributes {stable_mosaic.version = 11 : i64} {
  func.func @kernel(%arg0: i32, %arg1: i32, %arg2: memref<1x4x1x4x12x8xf32, #tpu.memory_space<vmem>>, %arg3: memref<1x4x1x4x32xf32, #tpu.memory_space<vmem>>, %arg4: memref<1x4x1x4x32xf32, #tpu.memory_space<vmem>>) attributes {dimension_semantics = [#tpu.dimension_semantics<parallel>, #tpu.dimension_semantics<parallel>], iteration_bounds = array<i64: 2, 4>, scalar_prefetch = 0 : i64, scratch_operands = 0 : i64, tpu.core_type = #tpu.core_type<tc>, window_params = [{transform_indices = @transform_0, window_bounds = array<i64: 1, 4, 1, 4, 12, 8>}, {transform_indices = @transform_1, window_bounds = array<i64: 1, 4, 1, 4, 32>}, {transform_indices = @transform_2, window_bounds = array<i64: 1, 4, 1, 4, 32>}]} {
    %c0 = arith.constant 0 : index
    %c0_0 = arith.constant 0 : index
    %c0_1 = arith.constant 0 : index
    %c0_2 = arith.constant 0 : index
    %c0_3 = arith.constant 0 : index
    %c0_4 = arith.constant 0 : index
    %0 = vector.load %arg2[%c0, %c0_0, %c0_1, %c0_2, %c0_3, %c0_4] : memref<1x4x1x4x12x8xf32, #tpu.memory_space<vmem>>, vector<1x4x1x4x12x8xf32>
    %1 = vector.shape_cast %0 : vector<1x4x1x4x12x8xf32> to vector<4x4x12x8xf32>
    %2 = vector.shape_cast %1 : vector<4x4x12x8xf32> to vector<16x1x12x8xf32>
    %3 = vector.extract_strided_slice %2 {offsets = [0, 0, 0, 0], sizes = [16, 1, 4, 8], strides = [1, 1, 1, 1]} : vector<16x1x12x8xf32> to vector<16x1x4x8xf32>
    %cst = arith.constant 2.82842708 : f32
    %4 = vector.broadcast %cst : f32 to vector<16x1x4x8xf32>
    %5 = arith.mulf %3, %4 : vector<16x1x4x8xf32>
    %6 = vector.extract_strided_slice %2 {offsets = [0, 0, 4, 0], sizes = [16, 1, 4, 8], strides = [1, 1, 1, 1]} : vector<16x1x12x8xf32> to vector<16x1x4x8xf32>
    %7 = vector.extract_strided_slice %2 {offsets = [0, 0, 8, 0], sizes = [16, 1, 4, 8], strides = [1, 1, 1, 1]} : vector<16x1x12x8xf32> to vector<16x1x4x8xf32>
    %8 = tpu.transpose %5, [1, 2, 0, 3] : vector<16x1x4x8xf32> -> vector<1x4x16x8xf32>
    %9 = vector.shape_cast %8 : vector<1x4x16x8xf32> to vector<4x16x8xf32>
    %10 = tpu.transpose %6, [1, 2, 0, 3] : vector<16x1x4x8xf32> -> vector<1x4x16x8xf32>
    %11 = vector.shape_cast %10 : vector<1x4x16x8xf32> to vector<4x16x8xf32>
    %12 = tpu.transpose %7, [1, 2, 0, 3] : vector<16x1x4x8xf32> -> vector<1x4x16x8xf32>
    %13 = vector.shape_cast %12 : vector<1x4x16x8xf32> to vector<4x16x8xf32>
    "tpu.trace_start"() <{level = 10 : i32, message = "bqd,bkd->bqk"}> : () -> ()
    %cst_5 = arith.constant dense<0.000000e+00> : vector<4x16x16xf32>
    %14 = tpu.matmul %9, %11, %cst_5 {dimension_numbers = #tpu.dot_dimension_numbers<[2], [2], [1], [1], [0, 0, 0, 1, 1, 1], [0], [0]>} : vector<4x16x8xf32>, vector<4x16x8xf32>, vector<4x16x16xf32> -> vector<4x16x16xf32>
    "tpu.trace_stop"() : () -> ()
    %cst_6 = arith.constant dense<0xFF800000> : vector<4x16xf32>
    %15 = vector.multi_reduction <maximumf>, %14, %cst_6 [2] : vector<4x16x16xf32> to vector<4x16xf32>
    %16 = vector.shape_cast %15 : vector<4x16xf32> to vector<4x16x1xf32>
    %17 = vector.broadcast %16 : vector<4x16x1xf32> to vector<4x16x16xf32>
    %18 = arith.subf %14, %17 : vector<4x16x16xf32>
    %19 = math.exp %18 : vector<4x16x16xf32>
    %cst_7 = arith.constant dense<0.000000e+00> : vector<4x16xf32>
    %20 = vector.multi_reduction <add>, %19, %cst_7 [2] : vector<4x16x16xf32> to vector<4x16xf32>
    %21 = vector.shape_cast %20 : vector<4x16xf32> to vector<4x16x1xf32>
    %22 = tpu.reciprocal %21 {approx = true} : vector<4x16x1xf32> -> vector<4x16x1xf32>
    %23 = arith.mulf %21, %22 : vector<4x16x1xf32>
    %cst_8 = arith.constant 2.000000e+00 : f32
    %24 = vector.broadcast %cst_8 : f32 to vector<4x16x1xf32>
    %25 = arith.subf %24, %23 : vector<4x16x1xf32>
    %26 = arith.mulf %22, %25 : vector<4x16x1xf32>
    "tpu.trace_start"() <{level = 10 : i32, message = "bqk,bkd->bqd"}> : () -> ()
    %cst_9 = arith.constant dense<0.000000e+00> : vector<4x16x8xf32>
    %27 = tpu.matmul %19, %13, %cst_9 {dimension_numbers = #tpu.dot_dimension_numbers<[2], [1], [1], [2], [0, 0, 0, 1, 1, 2], [0], [0]>} : vector<4x16x16xf32>, vector<4x16x8xf32>, vector<4x16x8xf32> -> vector<4x16x8xf32>
    "tpu.trace_stop"() : () -> ()
    %28 = vector.broadcast %26 : vector<4x16x1xf32> to vector<4x16x8xf32>
    %29 = arith.mulf %27, %28 : vector<4x16x8xf32>
    %30 = vector.shape_cast %29 : vector<4x16x8xf32> to vector<1x4x16x8xf32>
    %31 = tpu.transpose %30, [2, 0, 1, 3] : vector<1x4x16x8xf32> -> vector<16x1x4x8xf32>
    %32 = vector.shape_cast %31 : vector<16x1x4x8xf32> to vector<16x1x32xf32>
    %33 = vector.shape_cast %32 : vector<16x1x32xf32> to vector<4x4x32xf32>
    %c0_10 = arith.constant 0 : index
    %c0_11 = arith.constant 0 : index
    %c0_12 = arith.constant 0 : index
    %c0_13 = arith.constant 0 : index
    %c0_14 = arith.constant 0 : index
    %34 = vector.load %arg3[%c0_10, %c0_11, %c0_12, %c0_13, %c0_14] : memref<1x4x1x4x32xf32, #tpu.memory_space<vmem>>, vector<1x4x1x4x32xf32>
    %35 = vector.shape_cast %34 : vector<1x4x1x4x32xf32> to vector<4x4x32xf32>
    %36 = arith.addf %33, %35 : vector<4x4x32xf32>
    %c0_15 = arith.constant 0 : index
    %c0_16 = arith.constant 0 : index
    %c0_17 = arith.constant 0 : index
    %c0_18 = arith.constant 0 : index
    %c0_19 = arith.constant 0 : index
    %37 = vector.load %arg4[%c0_15, %c0_16, %c0_17, %c0_18, %c0_19] : memref<1x4x1x4x32xf32, #tpu.memory_space<vmem>>, vector<1x4x1x4x32xf32>
    %38 = vector.shape_cast %37 : vector<1x4x1x4x32xf32> to vector<4x4x32xf32>
    %39 = vector.shape_cast %36 : vector<4x4x32xf32> to vector<1x4x1x4x32xf32>
    tpu.vector_store %arg4[%c0_15, %c0_16, %c0_17, %c0_18, %c0_19], %39 {strides = array<i32>} : memref<1x4x1x4x32xf32, #tpu.memory_space<vmem>>, vector<1x4x1x4x32xf32>,
    return
  }
  func.func @transform_0(%arg0: i32, %arg1: i32) -> (i32, i32, i32, i32, i32, i32) {
    %c0_i32 = arith.constant 0 : i32
    %c0_i32_0 = arith.constant 0 : i32
    %c0_i32_1 = arith.constant 0 : i32
    %c0_i32_2 = arith.constant 0 : i32
    %c0_i32_3 = arith.constant 0 : i32
    return %arg0, %c0_i32, %arg1, %c0_i32_0, %c0_i32_1, %c0_i32_2 : i32, i32, i32, i32, i32, i32
  }
  func.func @transform_1(%arg0: i32, %arg1: i32) -> (i32, i32, i32, i32, i32) {
    %c0_i32 = arith.constant 0 : i32
    %c0_i32_0 = arith.constant 0 : i32
    %c0_i32_1 = arith.constant 0 : i32
    %c0_i32_2 = arith.constant 0 : i32
    return %arg0, %c0_i32, %arg1, %c0_i32_0, %c0_i32_1 : i32, i32, i32, i32, i32
  }
  func.func @transform_2(%arg0: i32, %arg1: i32) -> (i32, i32, i32, i32, i32) {
    %c0_i32 = arith.constant 0 : i32
    %c0_i32_0 = arith.constant 0 : i32
    %c0_i32_1 = arith.constant 0 : i32
    %c0_i32_2 = arith.constant 0 : i32
    return %arg0, %c0_i32, %arg1, %c0_i32_0, %c0_i32_1 : i32, i32, i32, i32, i32
  }
}

module attributes {stable_mosaic.version = 11 : i64} {
  func.func @kernel(%arg0: i32, %arg1: i32, %arg2: memref<1x1x16x12x8xf32, #tpu.memory_space<vmem>>, %arg3: memref<1x1x16x32xf32, #tpu.memory_space<vmem>>, %arg4: memref<1x1x16x32xf32, #tpu.memory_space<vmem>>) attributes {dimension_semantics = [#tpu.dimension_semantics<parallel>, #tpu.dimension_semantics<parallel>], iteration_bounds = array<i64: 2, 4>, scalar_prefetch = 0 : i64, scratch_operands = 0 : i64, tpu.core_type = #tpu.core_type<tc>, window_params = [{transform_indices = @transform_0, window_bounds = array<i64: 1, 1, 16, 12, 8>}, {transform_indices = @transform_1, window_bounds = array<i64: 1, 1, 16, 32>}, {transform_indices = @transform_2, window_bounds = array<i64: 1, 1, 16, 32>}]} {
    %c0 = arith.constant 0 : index
    %c0_0 = arith.constant 0 : index
    %c0_1 = arith.constant 0 : index
    %c0_2 = arith.constant 0 : index
    %c0_3 = arith.constant 0 : index
    %0 = vector.load %arg2[%c0, %c0_0, %c0_1, %c0_2, %c0_3] : memref<1x1x16x12x8xf32, #tpu.memory_space<vmem>>, vector<1x1x16x12x8xf32>
    %1 = vector.shape_cast %0 : vector<1x1x16x12x8xf32> to vector<16x12x8xf32>
    %2 = vector.shape_cast %1 : vector<16x12x8xf32> to vector<16x1x12x8xf32>
    %3 = vector.extract_strided_slice %2 {offsets = [0, 0, 0, 0], sizes = [16, 1, 4, 8], strides = [1, 1, 1, 1]} : vector<16x1x12x8xf32> to vector<16x1x4x8xf32>
    %cst = arith.constant 2.82842708 : f32
    %4 = vector.broadcast %cst : f32 to vector<16x1x4x8xf32>
    %5 = arith.mulf %3, %4 : vector<16x1x4x8xf32>
    %6 = vector.extract_strided_slice %2 {offsets = [0, 0, 4, 0], sizes = [16, 1, 4, 8], strides = [1, 1, 1, 1]} : vector<16x1x12x8xf32> to vector<16x1x4x8xf32>
    %7 = vector.extract_strided_slice %2 {offsets = [0, 0, 8, 0], sizes = [16, 1, 4, 8], strides = [1, 1, 1, 1]} : vector<16x1x12x8xf32> to vector<16x1x4x8xf32>
    %8 = tpu.transpose %5, [1, 2, 0, 3] : vector<16x1x4x8xf32> -> vector<1x4x16x8xf32>
    %9 = vector.shape_cast %8 : vector<1x4x16x8xf32> to vector<4x16x8xf32>
    %10 = tpu.transpose %6, [1, 2, 0, 3] : vector<16x1x4x8xf32> -> vector<1x4x16x8xf32>
    %11 = vector.shape_cast %10 : vector<1x4x16x8xf32> to vector<4x16x8xf32>
    %12 = tpu.transpose %7, [1, 2, 0, 3] : vector<16x1x4x8xf32> -> vector<1x4x16x8xf32>
    %13 = vector.shape_cast %12 : vector<1x4x16x8xf32> to vector<4x16x8xf32>
    "tpu.trace_start"() <{level = 10 : i32, message = "bqd,bkd->bqk"}> : () -> ()
    %cst_4 = arith.constant dense<0.000000e+00> : vector<4x16x16xf32>
    %14 = tpu.matmul %9, %11, %cst_4 {dimension_numbers = #tpu.dot_dimension_numbers<[2], [2], [1], [1], [0, 0, 0, 1, 1, 1], [0], [0]>} : vector<4x16x8xf32>, vector<4x16x8xf32>, vector<4x16x16xf32> -> vector<4x16x16xf32>
    "tpu.trace_stop"() : () -> ()
    %cst_5 = arith.constant dense<0xFF800000> : vector<4x16xf32>
    %15 = vector.multi_reduction <maximumf>, %14, %cst_5 [2] : vector<4x16x16xf32> to vector<4x16xf32>
    %16 = vector.shape_cast %15 : vector<4x16xf32> to vector<4x16x1xf32>
    %17 = vector.broadcast %16 : vector<4x16x1xf32> to vector<4x16x16xf32>
    %18 = arith.subf %14, %17 : vector<4x16x16xf32>
    %19 = math.exp %18 : vector<4x16x16xf32>
    %cst_6 = arith.constant dense<0.000000e+00> : vector<4x16xf32>
    %20 = vector.multi_reduction <add>, %19, %cst_6 [2] : vector<4x16x16xf32> to vector<4x16xf32>
    %21 = vector.shape_cast %20 : vector<4x16xf32> to vector<4x16x1xf32>
    %22 = tpu.reciprocal %21 {approx = true} : vector<4x16x1xf32> -> vector<4x16x1xf32>
    %23 = arith.mulf %21, %22 : vector<4x16x1xf32>
    %cst_7 = arith.constant 2.000000e+00 : f32
    %24 = vector.broadcast %cst_7 : f32 to vector<4x16x1xf32>
    %25 = arith.subf %24, %23 : vector<4x16x1xf32>
    %26 = arith.mulf %22, %25 : vector<4x16x1xf32>
    "tpu.trace_start"() <{level = 10 : i32, message = "bqk,bkd->bqd"}> : () -> ()
    %cst_8 = arith.constant dense<0.000000e+00> : vector<4x16x8xf32>
    %27 = tpu.matmul %19, %13, %cst_8 {dimension_numbers = #tpu.dot_dimension_numbers<[2], [1], [1], [2], [0, 0, 0, 1, 1, 2], [0], [0]>} : vector<4x16x16xf32>, vector<4x16x8xf32>, vector<4x16x8xf32> -> vector<4x16x8xf32>
    "tpu.trace_stop"() : () -> ()
    %28 = vector.broadcast %26 : vector<4x16x1xf32> to vector<4x16x8xf32>
    %29 = arith.mulf %27, %28 : vector<4x16x8xf32>
    %30 = vector.shape_cast %29 : vector<4x16x8xf32> to vector<1x4x16x8xf32>
    %31 = tpu.transpose %30, [2, 0, 1, 3] : vector<1x4x16x8xf32> -> vector<16x1x4x8xf32>
    %32 = vector.shape_cast %31 : vector<16x1x4x8xf32> to vector<16x1x32xf32>
    %33 = vector.shape_cast %32 : vector<16x1x32xf32> to vector<16x32xf32>
    %c0_9 = arith.constant 0 : index
    %c0_10 = arith.constant 0 : index
    %c0_11 = arith.constant 0 : index
    %c0_12 = arith.constant 0 : index
    %34 = vector.load %arg3[%c0_9, %c0_10, %c0_11, %c0_12] : memref<1x1x16x32xf32, #tpu.memory_space<vmem>>, vector<1x1x16x32xf32>
    %35 = vector.shape_cast %34 : vector<1x1x16x32xf32> to vector<16x32xf32>
    %36 = arith.addf %33, %35 : vector<16x32xf32>
    %c0_13 = arith.constant 0 : index
    %c0_14 = arith.constant 0 : index
    %c0_15 = arith.constant 0 : index
    %c0_16 = arith.constant 0 : index
    %37 = vector.load %arg4[%c0_13, %c0_14, %c0_15, %c0_16] : memref<1x1x16x32xf32, #tpu.memory_space<vmem>>, vector<1x1x16x32xf32>
    %38 = vector.shape_cast %37 : vector<1x1x16x32xf32> to vector<16x32xf32>
    %39 = vector.shape_cast %36 : vector<16x32xf32> to vector<1x1x16x32xf32>
    tpu.vector_store %arg4[%c0_13, %c0_14, %c0_15, %c0_16], %39 {strides = array<i32>} : memref<1x1x16x32xf32, #tpu.memory_space<vmem>>, vector<1x1x16x32xf32>,
    return
  }
  func.func @transform_0(%arg0: i32, %arg1: i32) -> (i32, i32, i32, i32, i32) {
    %c0_i32 = arith.constant 0 : i32
    %c0_i32_0 = arith.constant 0 : i32
    %c0_i32_1 = arith.constant 0 : i32
    %c0_i32_2 = arith.constant 0 : i32
    return %arg0, %arg1, %c0_i32, %c0_i32_0, %c0_i32_1 : i32, i32, i32, i32, i32
  }
  func.func @transform_1(%arg0: i32, %arg1: i32) -> (i32, i32, i32, i32) {
    %c0_i32 = arith.constant 0 : i32
    %c0_i32_0 = arith.constant 0 : i32
    %c0_i32_1 = arith.constant 0 : i32
    return %arg0, %arg1, %c0_i32, %c0_i32_0 : i32, i32, i32, i32
  }
  func.func @transform_2(%arg0: i32, %arg1: i32) -> (i32, i32, i32, i32) {
    %c0_i32 = arith.constant 0 : i32
    %c0_i32_0 = arith.constant 0 : i32
    %c0_i32_1 = arith.constant 0 : i32
    return %arg0, %arg1, %c0_i32, %c0_i32_0 : i32, i32, i32, i32
  }
}

module attributes {stable_mosaic.version = 11 : i64} {
  func.func @_linear_kernel(%arg0: i32, %arg1: memref<128x32xf32, #tpu.memory_space<vmem>>, %arg2: memref<32x32xf32, #tpu.memory_space<vmem>>, %arg3: memref<128x32xf32, #tpu.memory_space<vmem>>) attributes {dimension_semantics = [#tpu.dimension_semantics<parallel>], iteration_bounds = array<i64: 1>, scalar_prefetch = 0 : i64, scratch_operands = 0 : i64, tpu.core_type = #tpu.core_type<tc>, window_params = [{transform_indices = @transform_0, window_bounds = array<i64: 128, 32>}, {pipeline_mode = #tpu.pipeline_mode<synchronous>, transform_indices = @transform_1, window_bounds = array<i64: 32, 32>}, {transform_indices = @transform_2, window_bounds = array<i64: 128, 32>}]} {
    %c0 = arith.constant 0 : index
    %c0_0 = arith.constant 0 : index
    %0 = vector.load %arg1[%c0, %c0_0] : memref<128x32xf32, #tpu.memory_space<vmem>>, vector<128x32xf32>
    %c0_1 = arith.constant 0 : index
    %c0_2 = arith.constant 0 : index
    %1 = vector.load %arg2[%c0_1, %c0_2] : memref<32x32xf32, #tpu.memory_space<vmem>>, vector<32x32xf32>
    %cst = arith.constant dense<0.000000e+00> : vector<128x32xf32>
    %2 = tpu.matmul %0, %1, %cst {dimension_numbers = #tpu.dot_dimension_numbers<[1], [1], [0], [0], [0, 0, 1, 0], [], []>} : vector<128x32xf32>, vector<32x32xf32>, vector<128x32xf32> -> vector<128x32xf32>
    %c0_3 = arith.constant 0 : index
    %c0_4 = arith.constant 0 : index
    %3 = vector.load %arg3[%c0_3, %c0_4] : memref<128x32xf32, #tpu.memory_space<vmem>>, vector<128x32xf32>
    tpu.vector_store %arg3[%c0_3, %c0_4], %2 {strides = array<i32>} : memref<128x32xf32, #tpu.memory_space<vmem>>, vector<128x32xf32>,
    return
  }
  func.func @transform_0(%arg0: i32) -> (i32, i32) {
    %c0_i32 = arith.constant 0 : i32
    %c0_i32_0 = arith.constant 0 : i32
    return %arg0, %c0_i32 : i32, i32
  }
  func.func @transform_1(%arg0: i32) -> (i32, i32) {
    %c0_i32 = arith.constant 0 : i32
    %c0_i32_0 = arith.constant 0 : i32
    %c0_i32_1 = arith.constant 0 : i32
    return %c0_i32, %c0_i32_0 : i32, i32
  }
  func.func @transform_2(%arg0: i32) -> (i32, i32) {
    %c0_i32 = arith.constant 0 : i32
    %c0_i32_0 = arith.constant 0 : i32
    return %arg0, %c0_i32 : i32, i32
  }
}

</mosaic_0001>

<bundles_post_ra>
// kernel: decomposed_attention_pallas.5
= control target key start
LH: loop header
LB: loop body
LE: loop exit
PB: predicated region body
PF: predicated region fallthrough
CT: control target
= control target key end

     0   :  { %vm39_vm0 = vcmask 261120   ;;  %vm189_vm1 = vcmask 785408   ;;  %s501_s1 = inlined_call_operand.vmem [shape: f32[96,32], index: 1, kind: input, shape index: {}]   ;;  %s502_s0 = inlined_call_operand.vmem [shape: f32[128,32], index: 0, kind: input, shape index: {}]   ;;  %s503_s2 = inlined_call_operand.vmem [shape: f32[128,96], index: 2, kind: output, shape index: {}]  }
   0x1   :  { %v38_v0 = vld [vmem:[%s501_s1 + $0x58] sm:$0xff]  ;;  %v37_v1 = vld [vmem:[%s501_s1 + $0x50] sm:$0xff]  ;;  %v36_v2 = vld [vmem:[%s501_s1 + $0x48] sm:$0xff] }
   0x2   :  { %239 = vmatpush.xpose.msk.msra.mxu2 %vm39_vm0, %v38_v0  ;;  %240 = vmatpush.xpose.msk.msra.mxu3 %vm39_vm0, %v38_v0  ;;  %v35_v3 = vld [vmem:[%s501_s1 + $0x40] sm:$0xff]  ;;  %v34_v4 = vld [vmem:[%s501_s1 + $0x38] sm:$0xff]  ;;  %v33_v5 = vld [vmem:[%s501_s1 + $0x30] sm:$0xff] }
   0x3   :  { %210 = vmatpush.xpose.msk.msra.mxu0 %vm39_vm0, %v38_v0  ;;  %238 = vmatpush.xpose.msk.msra.mxu1 %vm39_vm0, %v38_v0  ;;  %v32_v6 = vld [vmem:[%s501_s1 + $0x28] sm:$0xff]  ;;  %v31_v7 = vld [vmem:[%s501_s1 + $0x20] sm:$0xff]  ;;  %v30_v8 = vld [vmem:[%s501_s1 + $0x18] sm:$0xff] }
   0x4   :  { %v29_v9 = vld [vmem:[%s501_s1 + $0x10] sm:$0xff]  ;;  %v28_v10 = vld [vmem:[%s501_s1 + $0x8] sm:$0xff]  ;;  %v27_v11 = vld [vmem:[%s501_s1] sm:$0xff] }
   0x5   :  { %v19_v12 = vld [vmem:[%s502_s0 + $0x40] sm:$0xff]  ;;  %v20_v16 = vld [vmem:[%s502_s0 + $0x48] sm:$0xff]  ;;  %v21_v20 = vld [vmem:[%s502_s0 + $0x50] sm:$0xff] }
   0x6   :  { %242 = vmatpush.xpose.msk.msra.mxu2 %vm39_vm0, %v37_v1  ;;  %243 = vmatpush.xpose.msk.msra.mxu3 %vm39_vm0, %v37_v1  ;;  %v23_v13 = vld [vmem:[%s502_s0 + $0x60] sm:$0xff]  ;;  %v24_v17 = vld [vmem:[%s502_s0 + $0x68] sm:$0xff]  ;;  %v25_v21 = vld [vmem:[%s502_s0 + $0x70] sm:$0xff] }
   0x7   :  { %211 = vmatpush.xpose.msk.msra.mxu0 %vm39_vm0, %v37_v1  ;;  %241 = vmatpush.xpose.msk.msra.mxu1 %vm39_vm0, %v37_v1  ;;  %v11_v14 = vld [vmem:[%s502_s0] sm:$0xff]  ;;  %v12_v18 = vld [vmem:[%s502_s0 + $0x8] sm:$0xff]  ;;  %v13_v22 = vld [vmem:[%s502_s0 + $0x10] sm:$0xff] }
   0x8   :  { %v15_v15 = vld [vmem:[%s502_s0 + $0x20] sm:$0xff]  ;;  %v16_v19 = vld [vmem:[%s502_s0 + $0x28] sm:$0xff]  ;;  %v17_v23 = vld [vmem:[%s502_s0 + $0x30] sm:$0xff] }
   0x9   :  { %v22_v24 = vld [vmem:[%s502_s0 + $0x58] sm:$0xff] }
   0xa   :  { %245 = vmatpush.xpose.msk.msra.mxu2 %vm39_vm0, %v36_v2  ;;  %246 = vmatpush.xpose.msk.msra.mxu3 %vm39_vm0, %v36_v2  ;;  %v26_v25 = vld [vmem:[%s502_s0 + $0x78] sm:$0xff] }
   0xb   :  { %212 = vmatpush.xpose.msk.msra.mxu0 %vm39_vm0, %v36_v2  ;;  %244 = vmatpush.xpose.msk.msra.mxu1 %vm39_vm0, %v36_v2  ;;  %v14_v26 = vld [vmem:[%s502_s0 + $0x18] sm:$0xff] }
   0xc   :  { %v18_v27 = vld [vmem:[%s502_s0 + $0x38] sm:$0xff] }
   0xe   :  { %248 = vmatpush.xpose.msk.msra.mxu2 %vm39_vm0, %v35_v3  ;;  %249 = vmatpush.xpose.msk.msra.mxu3 %vm39_vm0, %v35_v3 }
   0xf   :  { %213 = vmatpush.xpose.msk.msra.mxu0 %vm39_vm0, %v35_v3  ;;  %247 = vmatpush.xpose.msk.msra.mxu1 %vm39_vm0, %v35_v3 }
  0x12   :  { %251 = vmatpush.xpose.msk.msra.mxu2 %vm39_vm0, %v34_v4  ;;  %252 = vmatpush.xpose.msk.msra.mxu3 %vm39_vm0, %v34_v4 }
  0x13   :  { %214 = vmatpush.xpose.msk.msra.mxu0 %vm39_vm0, %v34_v4  ;;  %250 = vmatpush.xpose.msk.msra.mxu1 %vm39_vm0, %v34_v4 }
  0x16   :  { %254 = vmatpush.xpose.msk.msra.mxu2 %vm39_vm0, %v33_v5  ;;  %255 = vmatpush.xpose.msk.msra.mxu3 %vm39_vm0, %v33_v5 }
  0x17   :  { %215 = vmatpush.xpose.msk.msra.mxu0 %vm39_vm0, %v33_v5  ;;  %253 = vmatpush.xpose.msk.msra.mxu1 %vm39_vm0, %v33_v5 }
  0x1a   :  { %257 = vmatpush.xpose.msk.msra.mxu2 %vm39_vm0, %v32_v6  ;;  %258 = vmatpush.xpose.msk.msra.mxu3 %vm39_vm0, %v32_v6 }
  0x1b   :  { %216 = vmatpush.xpose.msk.msra.mxu0 %vm39_vm0, %v32_v6  ;;  %256 = vmatpush.xpose.msk.msra.mxu1 %vm39_vm0, %v32_v6 }
  0x1e   :  { %260 = vmatpush.xpose.msk.msra.mxu2 %vm39_vm0, %v31_v7  ;;  %261 = vmatpush.xpose.msk.msra.mxu3 %vm39_vm0, %v31_v7 }
  0x1f   :  { %217 = vmatpush.xpose.msk.msra.mxu0 %vm39_vm0, %v31_v7  ;;  %259 = vmatpush.xpose.msk.msra.mxu1 %vm39_vm0, %v31_v7 }
  0x22   :  { %263 = vmatpush.xpose.msk.msra.mxu2 %vm39_vm0, %v30_v8  ;;  %264 = vmatpush.xpose.msk.msra.mxu3 %vm39_vm0, %v30_v8 }
  0x23   :  { %218 = vmatpush.xpose.msk.msra.mxu0 %vm39_vm0, %v30_v8  ;;  %262 = vmatpush.xpose.msk.msra.mxu1 %vm39_vm0, %v30_v8 }
  0x26   :  { %266 = vmatpush.xpose.msk.msra.mxu2 %vm39_vm0, %v29_v9  ;;  %267 = vmatpush.xpose.msk.msra.mxu3 %vm39_vm0, %v29_v9 }
  0x27   :  { %219 = vmatpush.xpose.msk.msra.mxu0 %vm39_vm0, %v29_v9  ;;  %265 = vmatpush.xpose.msk.msra.mxu1 %vm39_vm0, %v29_v9 }
  0x2a   :  { %269 = vmatpush.xpose.msk.msra.mxu2 %vm39_vm0, %v28_v10  ;;  %270 = vmatpush.xpose.msk.msra.mxu3 %vm39_vm0, %v28_v10 }
  0x2b   :  { %220 = vmatpush.xpose.msk.msra.mxu0 %vm39_vm0, %v28_v10  ;;  %268 = vmatpush.xpose.msk.msra.mxu1 %vm39_vm0, %v28_v10 }
  0x2e   :  { %272 = vmatpush.xpose.msk.msra.mxu2 %vm39_vm0, %v27_v11  ;;  %273 = vmatpush.xpose.msk.msra.mxu3 %vm39_vm0, %v27_v11 }
  0x2f   :  { %221 = vmatpush.xpose.msk.msra.mxu0 %vm39_vm0, %v27_v11  ;;  %271 = vmatpush.xpose.msk.msra.mxu1 %vm39_vm0, %v27_v11 }
  0x31   :  { %230 = vmatmul.msk.f32.vlgmr.msra.gmra.mxu2 %vm39_vm0, %v19_v12  ;;  %234 = vmatmul.msk.f32.vlgmr.msra.gmra.mxu3 %vm39_vm0, %v23_v13 }
  0x32   :  { %222 = vmatmul.msk.f32.vlgmr.msra.gmra.mxu0 %vm39_vm0, %v11_v14  ;;  %226 = vmatmul.msk.f32.vlgmr.msra.gmra.mxu1 %vm39_vm0, %v15_v15 }
  0x39   :  { %231 = vmatmul.msk.f32.gmra.mxu2 %vm39_vm0, %v20_v16  ;;  %235 = vmatmul.msk.f32.gmra.mxu3 %vm39_vm0, %v24_v17 }
  0x3a   :  { %223 = vmatmul.msk.f32.gmra.mxu0 %vm39_vm0, %v12_v18  ;;  %227 = vmatmul.msk.f32.gmra.mxu1 %vm39_vm0, %v16_v19 }
  0x41   :  { %232 = vmatmul.msk.f32.gmra.mxu2 %vm39_vm0, %v21_v20  ;;  %236 = vmatmul.msk.f32.gmra.mxu3 %vm39_vm0, %v25_v21 }
  0x42   :  { %224 = vmatmul.msk.f32.gmra.mxu0 %vm39_vm0, %v13_v22  ;;  %228 = vmatmul.msk.f32.gmra.mxu1 %vm39_vm0, %v17_v23 }
  0x49   :  { %233 = vmatmul.msk.f32.gmra.mxu2 %vm39_vm0, %v22_v24  ;;  %237 = vmatmul.msk.f32.gmra.mxu3 %vm39_vm0, %v26_v25 }
  0x4a   :  { %225 = vmatmul.msk.f32.gmra.mxu0 %vm39_vm0, %v14_v26  ;;  %229 = vmatmul.msk.f32.gmra.mxu1 %vm39_vm0, %v18_v27 }
  0xaf   :  { %v141_v28 = vpop.f32.mrf.mxu0  ;;  %v153_v29 = vpop.f32.mrf.mxu1 }
  0xb0   :  { %190 = vst.msk [vmem:[%s503_s2] sm:$0xff] %vm189_vm1, %v141_v28 }
  0xb1   :  { %194 = vst.msk [vmem:[%s503_s2 + $0x20] sm:$0xff] %vm189_vm1, %v153_v29 }
  0xb4   :  { %v165_v30 = vpop.f32.mrf.mxu2  ;;  %v177_v31 = vpop.f32.mrf.mxu3 }
  0xb5   :  { %198 = vst.msk [vmem:[%s503_s2 + $0x40] sm:$0xff] %vm189_vm1, %v165_v30 }
  0xb6   :  { %202 = vst.msk [vmem:[%s503_s2 + $0x60] sm:$0xff] %vm189_vm1, %v177_v31 }
  0xb7   :  { %v144_v32 = vpop.f32.mrf.mxu0  ;;  %v156_v33 = vpop.f32.mrf.mxu1 }
  0xb8   :  { %191 = vst.msk [vmem:[%s503_s2 + $0x8] sm:$0xff] %vm189_vm1, %v144_v32 }
  0xb9   :  { %195 = vst.msk [vmem:[%s503_s2 + $0x28] sm:$0xff] %vm189_vm1, %v156_v33 }
  0xbc   :  { %v168_v34 = vpop.f32.mrf.mxu2  ;;  %v180_v35 = vpop.f32.mrf.mxu3 }
  0xbd   :  { %199 = vst.msk [vmem:[%s503_s2 + $0x48] sm:$0xff] %vm189_vm1, %v168_v34 }
  0xbe   :  { %203 = vst.msk [vmem:[%s503_s2 + $0x68] sm:$0xff] %vm189_vm1, %v180_v35 }
  0xbf   :  { %v147_v36 = vpop.f32.mrf.mxu0  ;;  %v159_v37 = vpop.f32.mrf.mxu1 }
  0xc0   :  { %192 = vst.msk [vmem:[%s503_s2 + $0x10] sm:$0xff] %vm189_vm1, %v147_v36 }
  0xc1   :  { %196 = vst.msk [vmem:[%s503_s2 + $0x30] sm:$0xff] %vm189_vm1, %v159_v37 }
  0xc4   :  { %v171_v38 = vpop.f32.mrf.mxu2  ;;  %v183_v39 = vpop.f32.mrf.mxu3 }
  0xc5   :  { %200 = vst.msk [vmem:[%s503_s2 + $0x50] sm:$0xff] %vm189_vm1, %v171_v38 }
  0xc6   :  { %204 = vst.msk [vmem:[%s503_s2 + $0x70] sm:$0xff] %vm189_vm1, %v183_v39 }
  0xc7   :  { %v150_v40 = vpop.f32.mrf.mxu0  ;;  %v162_v41 = vpop.f32.mrf.mxu1 }
  0xc8   :  { %193 = vst.msk [vmem:[%s503_s2 + $0x18] sm:$0xff] %vm189_vm1, %v150_v40 }
  0xc9   :  { %197 = vst.msk [vmem:[%s503_s2 + $0x38] sm:$0xff] %vm189_vm1, %v162_v41 }
  0xcc   :  { %v174_v42 = vpop.f32.mrf.mxu2  ;;  %v186_v43 = vpop.f32.mrf.mxu3 }
  0xcd   :  { %201 = vst.msk [vmem:[%s503_s2 + $0x58] sm:$0xff] %vm189_vm1, %v174_v42 }
  0xce   :  { %205 = vst.msk [vmem:[%s503_s2 + $0x78] sm:$0xff] %vm189_vm1, %v186_v43 }

// kernel: decomposed_attention_pallas.7
= control target key start
LH: loop header
LB: loop body
LE: loop exit
PB: predicated region body
PF: predicated region fallthrough
CT: control target
= control target key end

     0   :  { %s1870_s9 = smov 0   ;;  %s1872_s10 = smov 0   ;;  %s2434_s0 = inlined_call_operand.vmem [shape: f32[2,4,4,4,12,8], index: 0, kind: input, shape index: {}]   ;;  %s2435_s1 = inlined_call_operand.vmem [shape: f32[2,4,4,4,32], index: 1, kind: input, shape index: {}, may-alias: {1,2}]   ;;  %s2436_s2 = inlined_call_operand.vmem [shape: f32[2,4,4,4,32], index: 2, kind: output, shape index: {}, may-alias: {1,2}]  }
   0x1   :  { %s1874_s11 = smov 0   ;;  %s1876_s12 = smov 0  }
   0x2   :  { %s1878_s13 = smov 0   ;;  %s1880_s14 = smov 0  }
   0x3   :  { %s1882_s15 = smov 0  }
   0x4 LB: > { %s21_s16 = sadd.s32 1, %s1840_s13  ;;  %s24_s17 = sadd.s32 1, %s1844_s14  ;;  %s1848_s15 = sphi %s1882_s15, %s12_s15   ;;  %s1844_s14 = sphi %s1880_s14, %s2444_s14   ;;  %s1840_s13 = sphi %s1878_s13, %s2443_s13   ;;  %s1836_s12 = sphi %s1876_s12, %s2442_s12   ;;  %s1832_s11 = sphi %s1874_s11, %s2441_s11   ;;  %s1828_s10 = sphi %s1872_s10, %s2440_s10   ;;  %s1824_s9 = sphi %s1870_s9, %s2439_s9  }
   0x5   : > { %p22_p0 = scmp.ge.s32.totalorder %s21_s16, 4  ;;  %s1649_s18 = sadd.s32 4294967295, %s1848_s15  }
   0x6   : > { %p40_p1 = scmp.ne.s32.totalorder %s1828_s10, %s1824_s9  ;;  %p41_p2 = scmp.eq.s32.totalorder %s1848_s15, 0 }
   0x7   : > { %s2446_s16 = smov (%p22_p0, %s21_s16), 0  ;;  %s2448_s17 = smov (!%p22_p0, %s24_s17), %s1844_s14 }
   0x8   : > { %p26_p3 = scmp.ge.s32.totalorder %s2448_s17, 2  ;;  %p100_p4 = scmp.eq.s32.totalorder %s1649_s18, 7 }
   0x9   : > { %s29_s19 = ssub.s32 %s1840_s13, %s2446_s16  ;;  %p1916_p5 = por %p41_p2, %p40_p1 }
   0xa   : > { %s2450_s17 = smov (%p26_p3, %s2448_s17), 0  ;;  %p1922_p6 = por %p100_p4, %p40_p1 }
   0xb   : > { %s28_s22 = ssub.s32 %s1844_s14, %s2450_s17  ;;  %s33_s24 = sadd.s32 1, %s1828_s10 }
   0xc   : > { %s30_s23 = sor.u32 %s29_s19, %s28_s22  ;;  %p1652_p8 = scmp.ge.s32.totalorder %s1848_s15, 8 }
   0xd   : > { %p31_p7 = scmp.eq.s32.totalorder %s30_s23, 0 }
   0xe   : > { %122 = sbr.rel (%p1652_p8) target bundleno = 68 (0x44), region = 16 }
   0xf   : > { %s1930_s25 = scalar_select %p31_p7, %s1828_s10, %s33_s24  }
  0x13   : > { %125 = sbr.rel (!%p1916_p5) target bundleno = 58 (0x3a), region = 20  ;;  %s127_s26 = sand.u32 (%p1916_p5), 1, %s1828_s10  }
  0x14   : > { %s1654_s27 = sshll.u32 (%p1916_p5), %s1840_s13, 3  ;;  %s1653_s28 = sshll.u32 (%p1916_p5), %s127_s26, 8 }
  0x15   : > { %s1655_s29 = sshll.u32 (%p1916_p5), %s1844_s14, 7  ;;  %s1946_s7 = scalar_lea.vmem (%p1916_p5), [#allocation2], %s1653_s28 }
  0x16   : > { %s132_s30 = sadd.s32 (%p1916_p5), %s1655_s29, %s1654_s27 }
  0x17   : > { %s1656_s3 = sshll.u32 (%p1916_p5), %s132_s30, 3 }
  0x18   : > { %s1941_s6 = scalar_lea.vmem %s2434_s0, %s1656_s3 }
  0x19   : > { %v225_v0 = vld [vmem:[%s1941_s6] sm:$0xff]  ;;  %v227_v1 = vld [vmem:[%s1941_s6 + $0x8] sm:$0xff]  ;;  %v229_v2 = vld [vmem:[%s1941_s6 + $0x10] sm:$0xff] }
  0x1a   : > { %226 = vst [vmem:[%s1946_s7] sm:$0xff] %v225_v0  ;;  %v231_v3 = vld [vmem:[%s1941_s6 + $0x18] sm:$0xff]  ;;  %v233_v4 = vld [vmem:[%s1941_s6 + $0x20] sm:$0xff]  ;;  %v235_v5 = vld [vmem:[%s1941_s6 + $0x28] sm:$0xff] }
  0x1b   : > { %228 = vst [vmem:[%s1946_s7 + $0x8] sm:$0xff] %v227_v1  ;;  %v237_v6 = vld [vmem:[%s1941_s6 + $0x30] sm:$0xff]  ;;  %v239_v7 = vld [vmem:[%s1941_s6 + $0x38] sm:$0xff]  ;;  %v241_v8 = vld [vmem:[%s1941_s6 + $0x100] sm:$0xff] }
  0x1c   : > { %230 = vst [vmem:[%s1946_s7 + $0x10] sm:$0xff] %v229_v2  ;;  %v243_v9 = vld [vmem:[%s1941_s6 + $0x108] sm:$0xff]  ;;  %v245_v10 = vld [vmem:[%s1941_s6 + $0x110] sm:$0xff]  ;;  %v247_v11 = vld [vmem:[%s1941_s6 + $0x118] sm:$0xff] }
  0x1d   : > { %232 = vst [vmem:[%s1946_s7 + $0x18] sm:$0xff] %v231_v3  ;;  %v249_v12 = vld [vmem:[%s1941_s6 + $0x120] sm:$0xff]  ;;  %v251_v13 = vld [vmem:[%s1941_s6 + $0x128] sm:$0xff]  ;;  %v253_v14 = vld [vmem:[%s1941_s6 + $0x130] sm:$0xff] }
  0x1e   : > { %234 = vst [vmem:[%s1946_s7 + $0x20] sm:$0xff] %v233_v4  ;;  %v255_v15 = vld [vmem:[%s1941_s6 + $0x138] sm:$0xff]  ;;  %v257_v16 = vld [vmem:[%s1941_s6 + $0x200] sm:$0xff]  ;;  %v259_v17 = vld [vmem:[%s1941_s6 + $0x208] sm:$0xff] }
  0x1f   : > { %236 = vst [vmem:[%s1946_s7 + $0x28] sm:$0xff] %v235_v5  ;;  %v261_v18 = vld [vmem:[%s1941_s6 + $0x210] sm:$0xff]  ;;  %v263_v19 = vld [vmem:[%s1941_s6 + $0x218] sm:$0xff]  ;;  %v265_v20 = vld [vmem:[%s1941_s6 + $0x220] sm:$0xff] }
  0x20   : > { %238 = vst [vmem:[%s1946_s7 + $0x30] sm:$0xff] %v237_v6  ;;  %v267_v21 = vld [vmem:[%s1941_s6 + $0x228] sm:$0xff]  ;;  %v269_v22 = vld [vmem:[%s1941_s6 + $0x230] sm:$0xff]  ;;  %v271_v23 = vld [vmem:[%s1941_s6 + $0x238] sm:$0xff] }
  0x21   : > { %240 = vst [vmem:[%s1946_s7 + $0x38] sm:$0xff] %v239_v7  ;;  %v273_v24 = vld [vmem:[%s1941_s6 + $0x300] sm:$0xff]  ;;  %v275_v25 = vld [vmem:[%s1941_s6 + $0x308] sm:$0xff]  ;;  %v277_v26 = vld [vmem:[%s1941_s6 + $0x310] sm:$0xff] }
  0x22   : > { %242 = vst [vmem:[%s1946_s7 + $0x40] sm:$0xff] %v241_v8  ;;  %v279_v27 = vld [vmem:[%s1941_s6 + $0x318] sm:$0xff]  ;;  %v281_v28 = vld [vmem:[%s1941_s6 + $0x320] sm:$0xff]  ;;  %v283_v29 = vld [vmem:[%s1941_s6 + $0x328] sm:$0xff] }
  0x23   : > { %244 = vst [vmem:[%s1946_s7 + $0x48] sm:$0xff] %v243_v9  ;;  %v285_v30 = vld [vmem:[%s1941_s6 + $0x330] sm:$0xff]  ;;  %v287_v31 = vld [vmem:[%s1941_s6 + $0x338] sm:$0xff] }
  0x24   : > { %246 = vst [vmem:[%s1946_s7 + $0x50] sm:$0xff] %v245_v10 }
  0x25   : > { %248 = vst [vmem:[%s1946_s7 + $0x58] sm:$0xff] %v247_v11 }
  0x26   : > { %250 = vst [vmem:[%s1946_s7 + $0x60] sm:$0xff] %v249_v12 }
  0x27   : > { %252 = vst [vmem:[%s1946_s7 + $0x68] sm:$0xff] %v251_v13 }
  0x28   : > { %254 = vst [vmem:[%s1946_s7 + $0x70] sm:$0xff] %v253_v14 }
  0x29   : > { %256 = vst [vmem:[%s1946_s7 + $0x78] sm:$0xff] %v255_v15 }
  0x2a   : > { %258 = vst [vmem:[%s1946_s7 + $0x80] sm:$0xff] %v257_v16 }
  0x2b   : > { %260 = vst [vmem:[%s1946_s7 + $0x88] sm:$0xff] %v259_v17 }
  0x2c   : > { %262 = vst [vmem:[%s1946_s7 + $0x90] sm:$0xff] %v261_v18 }
  0x2d   : > { %264 = vst [vmem:[%s1946_s7 + $0x98] sm:$0xff] %v263_v19 }
  0x2e   : > { %266 = vst [vmem:[%s1946_s7 + $0xa0] sm:$0xff] %v265_v20 }
  0x2f   : > { %268 = vst [vmem:[%s1946_s7 + $0xa8] sm:$0xff] %v267_v21 }
  0x30   : > { %270 = vst [vmem:[%s1946_s7 + $0xb0] sm:$0xff] %v269_v22 }
  0x31   : > { %272 = vst [vmem:[%s1946_s7 + $0xb8] sm:$0xff] %v271_v23 }
  0x32   : > { %274 = vst [vmem:[%s1946_s7 + $0xc0] sm:$0xff] %v273_v24 }
  0x33   : > { %276 = vst [vmem:[%s1946_s7 + $0xc8] sm:$0xff] %v275_v25 }
  0x34   : > { %278 = vst [vmem:[%s1946_s7 + $0xd0] sm:$0xff] %v277_v26 }
  0x35   : > { %280 = vst [vmem:[%s1946_s7 + $0xd8] sm:$0xff] %v279_v27 }
  0x36   : > { %282 = vst [vmem:[%s1946_s7 + $0xe0] sm:$0xff] %v281_v28 }
  0x37   : > { %284 = vst [vmem:[%s1946_s7 + $0xe8] sm:$0xff] %v283_v29 }
  0x38   : > { %286 = vst [vmem:[%s1946_s7 + $0xf0] sm:$0xff] %v285_v30 }
  0x39   : > { %288 = vst [vmem:[%s1946_s7 + $0xf8] sm:$0xff] %v287_v31 }
  0x3a PF: > { %294 = sbr.rel (!%p1916_p5) target bundleno = 68 (0x44), region = 58  ;;  %s296_s8 = sand.u32 (%p1916_p5), 1, %s1828_s10  }
  0x3b   : > { %s1658_s18 = sshll.u32 (%p1916_p5), %s1844_s14, 4  ;;  %s1657_s19 = sshll.u32 (%p1916_p5), %s296_s8, 4 }
  0x3c   : > { %s300_s22 = sadd.s32 (%p1916_p5), %s1840_s13, %s1658_s18  ;;  %s298_s28 = scalar_lea.vmem (%p1916_p5), [#allocation3], %s1657_s19 }
  0x3d   : > { %s1659_s23 = sshll.u32 (%p1916_p5), %s300_s22, 2 }
  0x3e   : > { %s302_s27 = scalar_lea.vmem (%p1916_p5), %s2435_s1, %s1659_s23 }
  0x3f   : > { %v319_v32 = vld [vmem:[%s302_s27] sm:$0xf]  ;;  %v321_v33 = vld [vmem:[%s302_s27 + $0x10] sm:$0xf] }
  0x40   : > { %v323_v34 = vld [vmem:[%s302_s27 + $0x20] sm:$0xf]  ;;  %320 = vst [vmem:[%s298_s28] sm:$0xf] %v319_v32  ;;  %v325_v35 = vld [vmem:[%s302_s27 + $0x30] sm:$0xf] }
  0x41   : > { %322 = vst [vmem:[%s298_s28 + $0x4] sm:$0xf] %v321_v33 }
  0x42   : > { %324 = vst [vmem:[%s298_s28 + $0x8] sm:$0xf] %v323_v34 }
  0x43   : > { %326 = vst [vmem:[%s298_s28 + $0xc] sm:$0xf] %v325_v35 }
  0x44 PF: > { %p1660_p9 = scmp.ge.s32.totalorder %s1848_s15, 1  ;;  %p357_p10 = scmp.lt.s32.totalorder %s1848_s15, 9 }
  0x46   : > { %p358_p11 = pnand %p1660_p9, %p357_p10 }
  0x47   : > { %s364_s20 = sand.u32 (!%p358_p11), 1, %s1824_s9   ;;  %s1852_s3 = smov (!%p358_p11), 16  }
  0x48   : > { %361 = sbr.rel (%p358_p11) target bundleno = 693 (0x2b5), region = 99  ;;  %s1661_s29 = sshll.u32 (!%p358_p11), %s364_s20, 8 }
  0x49   : > { %s2022_s30 = scalar_lea.vmem (!%p358_p11), [#allocation2], %s1661_s29  ;;  %s1853_s4 = smov (!%p358_p11), 8  }
  0x4a   : > { %s1854_s5 = smov (!%p358_p11), 24   ;;  %s1662_s6 = sshll.u32 (!%p358_p11), %s364_s20, 4 }
  0x4b   : > { %s373_s7 = scalar_lea.vmem (!%p358_p11), [#allocation3], %s1662_s6  ;;  %s2382_s8 = scalar_lea.vmem (!%p358_p11), [#allocation4], %s1662_s6 }
  0x4d   : > { %v1850_v36 = vmov 1983009808   ;;  %v1851_v38 = vmov 1934713408   ;;  %v411_v40 = vld [vmem:[%s2022_s30 + $0x80] sm:$0xff]  ;;  %v2026_v41 = vld [vmem:[%s2022_s30 + $0x90] sm:$0xff] }
  0x4e   : > { %v447_v37 = vunpack.c.l.s4 %v1850_v36  ;;  %v473_v39 = vunpack.c.l.s4 %v1851_v38  ;;  %v415_v42 = vld [vmem:[%s2022_s30 + $0xa0] sm:$0xff]  ;;  %vm444_vm0 = vcmask 1047556   ;;  %v417_v43 = vld [vmem:[%s2022_s30 + $0xb0] sm:$0xff]  ;;  %v2034_v46 = vmul.f32 2.828427, %v411_v40  ;;  %s1697_s9 = sshll.u32 (%p1922_p6), %s1836_s12, 4 }
  0x4f   : > { %v419_v44 = vld [vmem:[%s2022_s30 + $0xc0] sm:$0xff]  ;;  %v2032_v45 = vld [vmem:[%s2022_s30 + $0xd0] sm:$0xff]  ;;  %v580_v47 = vrot.slane %v411_v40, 4  ;;  %v2038_v50 = vmul.f32 2.828427, %v415_v42  ;;  %v581_v59 = vrot.slane %v2026_v41, 4  ;;  %s1500_s18 = sadd.s32 (%p1922_p6), %s1832_s11, %s1697_s9 }
  0x50   : > { %v423_v48 = vld [vmem:[%s2022_s30 + $0xe0] sm:$0xff]  ;;  %v425_v49 = vld [vmem:[%s2022_s30 + $0xf0] sm:$0xff]  ;;  %v2040_v51 = vmul.f32 2.828427, %v417_v43  ;;  %v2042_v52 = vunpack.c.0.s8 %v447_v37  ;;  %v2044_v53 = vunpack.c.0.s8 %v473_v39  ;;  %v2046_v54 = vmul.f32 2.828427, %v419_v44 }
  0x51   : > { %v2048_v55 = vmul.f32 2.828427, %v423_v48  ;;  %v2050_v56 = vmul.f32 2.828427, %v425_v49  ;;  %v661_v57 = vsel %vm444_vm0, %v415_v42, %v580_v47  ;;  %v500_v58 = vrot.slane %v2038_v50, 4  ;;  %v395_v62 = vld [vmem:[%s2022_s30] sm:$0xff] }
  0x52   : > { %v584_v60 = vrot.slane %v419_v44, 4  ;;  %v585_v61 = vrot.slane %v2032_v45, 4  ;;  %v397_v63 = vld [vmem:[%s2022_s30 + $0x10] sm:$0xff]  ;;  %v665_v1 = vperm.slane %v661_v57, %v2042_v52  ;;  %v399_v2 = vld [vmem:[%s2022_s30 + $0x20] sm:$0xff]  ;;  %v572_v4 = vrot.slane %v395_v62, 4  ;;  %s1698_s19 = sshll.u32 (%p1922_p6), %s1500_s18, 2 }
  0x53   : > { %v512_v0 = vrot.slane %v2048_v55, 4  ;;  %v401_v3 = vld [vmem:[%s2022_s30 + $0x30] sm:$0xff]  ;;  %v573_v5 = vrot.slane %v397_v63, 4  ;;  %v667_v6 = vsel %vm444_vm0, %v417_v43, %v581_v59  ;;  %vm828_vm1 = vcmask 64512   ;;  %v407_v9 = vld [vmem:[%s2022_s30 + $0x60] sm:$0xff]  ;;  %s1502_s24 = scalar_lea.vmem (%p1922_p6), %s2436_s2, %s1698_s19 }
  0x54   : > { %v673_v7 = vsel %vm444_vm0, %v423_v48, %v584_v60  ;;  %v679_v8 = vsel %vm444_vm0, %v425_v49, %v585_v61  ;;  %v409_v10 = vld [vmem:[%s2022_s30 + $0x70] sm:$0xff]  ;;  %v429_v11 = vmul.f32 2.828427, %v399_v2  ;;  %v671_v12 = vperm.slane %v667_v6, %v2042_v52  ;;  %v403_v24 = vld [vmem:[%s2022_s30 + $0x40] sm:$0xff] }
  0x55   : > { %v677_v13 = vperm.slane %v673_v7, %v2042_v52  ;;  %v683_v14 = vperm.slane %v679_v8, %v2042_v52  ;;  %v686_v15 = vrot.slane %v665_v1, 4  ;;  %v430_v16 = vmul.f32 2.828427, %v401_v3  ;;  %v405_v26 = vld [vmem:[%s2022_s30 + $0x50] sm:$0xff] }
  0x56   : > { %v433_v17 = vmul.f32 2.828427, %v407_v9  ;;  %v434_v18 = vmul.f32 2.828427, %v409_v10  ;;  %v605_v19 = vsel %vm444_vm0, %v399_v2, %v572_v4  ;;  %v684_v20 = vrot.slane %v671_v12, 4 }
  0x57   : > { %v696_v21 = vrot.slane %v683_v14, 4  ;;  %v687_v22 = vsel %vm444_vm0, %v671_v12, %v686_v15  ;;  %v698_v23 = vrot.slane %v677_v13, 4  ;;  %v443_v27 = vrot.slane %v429_v11, 4 }
  0x58   : > { %v2074_v25 = vperm.slane %v687_v22, %v2044_v53  ;;  %v450_v28 = vrot.slane %v430_v16, 4  ;;  %v456_v29 = vrot.slane %v433_v17, 4  ;;  %v685_v30 = vsel %vm444_vm0, %v684_v20, %v665_v1 }
  0x59   : > { %v697_v31 = vsel %vm444_vm0, %v696_v21, %v677_v13  ;;  %v699_v32 = vsel %vm444_vm0, %v683_v14, %v698_v23  ;;  %v462_v33 = vrot.slane %v434_v18, 4  ;;  %v691_v34 = vperm.slane %v685_v30, %v2044_v53 }
  0x5a   : > { %v703_v35 = vperm.slane %v697_v31, %v2044_v53  ;;  %v707_v36 = vperm.slane %v699_v32, %v2044_v53  ;;  %v576_v37 = vrot.slane %v403_v24, 4  ;;  %v577_v38 = vrot.slane %v405_v26, 4 }
  0x5b   : > { %v609_v39 = vperm.slane %v605_v19, %v2042_v52  ;;  %v611_v40 = vsel %vm444_vm0, %v401_v3, %v573_v5  ;;  %v427_v42 = vmul.f32 2.828427, %v395_v62  ;;  %v428_v60 = vmul.f32 2.828427, %v397_v63 }
  0x5c   : > { %v708_v43 = vrot.slane %v703_v35, 4  ;;  %v712_v44 = vrot.slane %v707_v36, 4  ;;  %v615_v47 = vperm.slane %v611_v40, %v2042_v52  ;;  %v617_v48 = vsel %vm444_vm0, %v407_v9, %v576_v37 }
  0x5d   : > { %v621_v49 = vperm.slane %v617_v48, %v2042_v52  ;;  %v623_v57 = vsel %vm444_vm0, %v409_v10, %v577_v38  ;;  %v630_v59 = vrot.slane %v609_v39, 4  ;;  %v431_v5 = vmul.f32 2.828427, %v403_v24 }
  0x5e   : > { %v709_v61 = vsel %vm444_vm0, %v708_v43, %v691_v34  ;;  %v713_v1 = vsel %vm444_vm0, %v712_v44, %v2074_v25  ;;  %v627_v2 = vperm.slane %v623_v57, %v2042_v52  ;;  %v628_v62 = vrot.slane %v615_v47, 4 }
  0x5f   : > { %1672 = vmatpush.xpose.msk.msra.mxu0 %vm828_vm1, %v709_v61  ;;  %1680 = vmatpush.xpose.msk.msra.mxu2 %vm828_vm1, %v713_v1  ;;  %v631_v3 = vsel %vm444_vm0, %v615_v47, %v630_v59  ;;  %v642_v4 = vrot.slane %v621_v49, 4  ;;  %v432_v6 = vmul.f32 2.828427, %v405_v26  ;;  %v445_v9 = vsel %vm444_vm0, %v443_v27, %v427_v42 }
  0x60   : > { %v629_v7 = vsel %vm444_vm0, %v628_v62, %v609_v39  ;;  %v640_v63 = vrot.slane %v627_v2, 4  ;;  %v639_v8 = vperm.slane %v631_v3, %v2044_v53  ;;  %v449_v12 = vperm.slane %v445_v9, %v2042_v52 }
  0x61   : > { %v635_v10 = vperm.slane %v629_v7, %v2044_v53  ;;  %v643_v11 = vsel %vm444_vm0, %v627_v2, %v642_v4  ;;  %v451_v13 = vsel %vm444_vm0, %v450_v28, %v428_v60  ;;  %v457_v17 = vsel %vm444_vm0, %v456_v29, %v431_v5 }
  0x62   : > { %v641_v14 = vsel %vm444_vm0, %v640_v63, %v621_v49  ;;  %v651_v15 = vperm.slane %v643_v11, %v2044_v53  ;;  %v455_v16 = vperm.slane %v451_v13, %v2042_v52  ;;  %v461_v19 = vperm.slane %v457_v17, %v2042_v52 }
  0x63   : > { %v647_v18 = vperm.slane %v641_v14, %v2044_v53  ;;  %v463_v20 = vsel %vm444_vm0, %v462_v33, %v432_v6  ;;  %v470_v21 = vrot.slane %v449_v12, 4  ;;  %v710_v26 = vrot.slane %v691_v34, 4 }
  0x64   : > { %v656_v22 = vrot.slane %v651_v15, 4  ;;  %v467_v23 = vperm.slane %v463_v20, %v2042_v52  ;;  %v468_v24 = vrot.slane %v455_v16, 4  ;;  %v482_v30 = vrot.slane %v461_v19, 4 }
  0x65   : > { %v652_v27 = vrot.slane %v647_v18, 4  ;;  %v471_v28 = vsel %vm444_vm0, %v455_v16, %v470_v21  ;;  %v714_v31 = vrot.slane %v2074_v25, 4  ;;  %v711_v40 = vsel %vm444_vm0, %v703_v35, %v710_v26 }
  0x66   : > { %v657_v29 = vsel %vm444_vm0, %v656_v22, %v639_v8  ;;  %v469_v32 = vsel %vm444_vm0, %v468_v24, %v449_v12  ;;  %v480_v37 = vrot.slane %v467_v23, 4  ;;  %v479_v38 = vperm.slane %v471_v28, %v2044_v53  ;;  %1676 = vmatpush.xpose.msk.msra.mxu1 %vm828_vm1, %v711_v40 }
  0x67   : > { %v653_v33 = vsel %vm444_vm0, %v652_v27, %v635_v10  ;;  %1681 = vmatpush.xpose.msk.msra.mxu2 %vm828_vm1, %v657_v29  ;;  %v475_v39 = vperm.slane %v469_v32, %v2044_v53  ;;  %v483_v34 = vsel %vm444_vm0, %v467_v23, %v482_v30  ;;  %v715_v43 = vsel %vm444_vm0, %v707_v36, %v714_v31 }
  0x68   : > { %1673 = vmatpush.xpose.msk.msra.mxu0 %vm828_vm1, %v653_v33  ;;  %v481_v25 = vsel %vm444_vm0, %v480_v37, %v461_v19  ;;  %v491_v42 = vperm.slane %v483_v34, %v2044_v53  ;;  %v654_v44 = vrot.slane %v635_v10, 4  ;;  %1684 = vmatpush.xpose.msk.msra.mxu3 %vm828_vm1, %v715_v43  ;;  %v658_v48 = vrot.slane %v639_v8, 4  ;;  %v426_v43 = vld [vmem:[%s2022_s30 + $0xf8] sm:$0xf] }
  0x69   : > { %v487_v47 = vperm.slane %v481_v25, %v2044_v53  ;;  %v494_v49 = vrot.slane %v475_v39, 4  ;;  %v436_v57 = vmul.f32 2.828427, %v2026_v41  ;;  %v440_v60 = vmul.f32 2.828427, %v2032_v45 }
  0x6a   : > { %v496_v35 = vrot.slane %v491_v42, 4  ;;  %v655_v59 = vsel %vm444_vm0, %v647_v18, %v654_v44  ;;  %v501_v61 = vsel %vm444_vm0, %v500_v58, %v2034_v46  ;;  %v659_v1 = vsel %vm444_vm0, %v651_v15, %v658_v48  ;;  %v422_v48 = vld [vmem:[%s2022_s30 + $0xd8] sm:$0xf] }
  0x6b   : > { %v492_v36 = vrot.slane %v487_v47, 4  ;;  %v495_v2 = vsel %vm444_vm0, %v487_v47, %v494_v49  ;;  %v505_v62 = vperm.slane %v501_v61, %v2042_v52  ;;  %1677 = vmatpush.xpose.msk.msra.mxu1 %vm828_vm1, %v655_v59  ;;  %v506_v41 = vrot.slane %v2040_v51, 4  ;;  %v418_v47 = vld [vmem:[%s2022_s30 + $0xb8] sm:$0xf]  ;;  %v424_v49 = vld [vmem:[%s2022_s30 + $0xe8] sm:$0xf] }
  0x6c   : > { %v497_v3 = vsel %vm444_vm0, %v496_v35, %v479_v38  ;;  %v513_v45 = vsel %vm444_vm0, %v512_v0, %v2046_v54  ;;  %v518_v46 = vrot.slane %v2050_v56, 4  ;;  %1685 = vmatpush.xpose.msk.msra.mxu3 %vm828_vm1, %v659_v1  ;;  %v498_v5 = vrot.slane %v479_v38, 4  ;;  %v414_v61 = vld [vmem:[%s2022_s30 + $0x98] sm:$0xf]  ;;  %v420_v1 = vld [vmem:[%s2022_s30 + $0xc8] sm:$0xf] }
  0x6d   : > { %v493_v50 = vsel %vm444_vm0, %v492_v36, %v475_v39  ;;  %1682 = vmatmul.msk.f32.vlgmr.msra.gmra.mxu2 %vm828_vm1, %v497_v3  ;;  %v517_v58 = vperm.slane %v513_v45, %v2042_v52  ;;  %v526_v4 = vrot.slane %v505_v62, 4  ;;  %v507_v51 = vsel %vm444_vm0, %v506_v41, %v436_v57  ;;  %v416_v36 = vld [vmem:[%s2022_s30 + $0xa8] sm:$0xf]  ;;  %v402_v45 = vld [vmem:[%s2022_s30 + $0x38] sm:$0xf] }
  0x6e   : > { %1674 = vmatmul.msk.f32.vlgmr.msra.gmra.mxu0 %vm828_vm1, %v493_v50  ;;  %v519_v55 = vsel %vm444_vm0, %v518_v46, %v440_v60  ;;  %1678 = vmatmul.msk.f32.vlgmr.msra.gmra.mxu1 %vm828_vm1, %v495_v2  ;;  %v511_v54 = vperm.slane %v507_v51, %v2042_v52  ;;  %v499_v6 = vsel %vm444_vm0, %v491_v42, %v498_v5  ;;  %vm969_vm2 = vcmask 130048   ;;  %v410_v60 = vld [vmem:[%s2022_s30 + $0x78] sm:$0xf] }
  0x6f   : > { %v523_v56 = vperm.slane %v519_v55, %v2042_v52  ;;  %v538_v0 = vrot.slane %v517_v58, 4  ;;  %1686 = vmatmul.msk.f32.vlgmr.msra.gmra.mxu3 %vm828_vm1, %v499_v6  ;;  %v790_v44 = vrot.slane %v426_v43, 4  ;;  %v778_v57 = vrot.slane %v418_v47, 4  ;;  %v406_v46 = vld [vmem:[%s2022_s30 + $0x58] sm:$0xf] }
  0x70   : > { %v527_v7 = vsel %vm444_vm0, %v511_v54, %v526_v4  ;;  %v524_v8 = vrot.slane %v511_v54, 4  ;;  %v784_v35 = vrot.slane %v424_v49, 4  ;;  %v734_v50 = vrot.slane %v410_v60, 4  ;;  %v398_v55 = vld [vmem:[%s2022_s30 + $0x18] sm:$0xf] }
  0x71   : > { %v539_v63 = vsel %vm444_vm0, %v523_v56, %v538_v0  ;;  %v536_v9 = vrot.slane %v523_v56, 4  ;;  %v535_v10 = vperm.slane %v527_v7, %v2044_v53  ;;  %v791_v59 = vsel %vm444_vm0, %v790_v44, %v422_v48  ;;  %v400_v0 = vld [vmem:[%s2022_s30 + $0x28] sm:$0xf] }
  0x72   : > { %v547_v11 = vperm.slane %v539_v63, %v2044_v53  ;;  %v525_v12 = vsel %vm444_vm0, %v524_v8, %v505_v62  ;;  %v795_v2 = vperm.slane %v791_v59, %v2042_v52  ;;  %v772_v62 = vrot.slane %v416_v36, 4  ;;  %v408_v6 = vld [vmem:[%s2022_s30 + $0x68] sm:$0xf] }
  0x73   : > { %v537_v13 = vsel %vm444_vm0, %v536_v9, %v517_v58  ;;  %v531_v15 = vperm.slane %v525_v12, %v2044_v53  ;;  %v554_v17 = vrot.slane %v535_v10, 4  ;;  %v779_v3 = vsel %vm444_vm0, %v778_v57, %v414_v61  ;;  %v412_v58 = vld [vmem:[%s2022_s30 + $0x88] sm:$0xf] }
  0x74   : > { %v552_v14 = vrot.slane %v547_v11, 4  ;;  %v543_v16 = vperm.slane %v537_v13, %v2044_v53  ;;  %v785_v41 = vsel %vm444_vm0, %v784_v35, %v420_v1  ;;  %v783_v4 = vperm.slane %v779_v3, %v2042_v52 }
  0x75   : > { %v550_v19 = vrot.slane %v531_v15, 4  ;;  %v555_v20 = vsel %vm444_vm0, %v547_v11, %v554_v17  ;;  %v789_v5 = vperm.slane %v785_v41, %v2042_v52  ;;  %v808_v51 = vrot.slane %v795_v2, 4  ;;  %v404_v11 = vld [vmem:[%s2022_s30 + $0x48] sm:$0xf] }
  0x76   : > { %v553_v18 = vsel %vm444_vm0, %v552_v14, %v535_v10  ;;  %v548_v21 = vrot.slane %v543_v16, 4  ;;  %v722_v54 = vrot.slane %v402_v45, 4  ;;  %v773_v56 = vsel %vm444_vm0, %v772_v62, %v412_v58  ;;  %v396_v10 = vld [vmem:[%s2022_s30 + $0x8] sm:$0xf] }
  0x77   : > { %1683 = vmatmul.msk.f32.gmra.mxu2 %vm828_vm1, %v553_v18  ;;  %v551_v22 = vsel %vm444_vm0, %v543_v16, %v550_v19  ;;  %1687 = vmatmul.msk.f32.gmra.mxu3 %vm828_vm1, %v555_v20  ;;  %v735_v7 = vsel %vm444_vm0, %v734_v50, %v406_v46  ;;  %v777_v63 = vperm.slane %v773_v56, %v2042_v52  ;;  %v796_v8 = vrot.slane %v783_v4, 4 }
  0x78   : > { %v549_v23 = vsel %vm444_vm0, %v548_v21, %v531_v15  ;;  %1679 = vmatmul.msk.f32.gmra.mxu1 %vm828_vm1, %v551_v22  ;;  %v809_v9 = vsel %vm444_vm0, %v808_v51, %v789_v5  ;;  %v716_v12 = vrot.slane %v400_v0, 4  ;;  %v723_v14 = vsel %vm444_vm0, %v722_v54, %v398_v55 }
  0x79   : > { %1675 = vmatmul.msk.f32.gmra.mxu0 %vm828_vm1, %v549_v23  ;;  %v815_v13 = vperm.slane %v809_v9, %v2044_v53  ;;  %v728_v15 = vrot.slane %v408_v6, 4  ;;  %v739_v16 = vperm.slane %v735_v7, %v2042_v52  ;;  %v797_v17 = vsel %vm444_vm0, %v796_v8, %v777_v63 }
  0x7a   : > { %v717_v18 = vsel %vm444_vm0, %v716_v12, %v396_v10  ;;  %v727_v19 = vperm.slane %v723_v14, %v2042_v52  ;;  %v803_v20 = vperm.slane %v797_v17, %v2044_v53  ;;  %vm1474_vm3 = vcmask 195584  }
  0x7b   : > { %v820_v21 = vrot.slane %v815_v13, 4  ;;  %v721_v22 = vperm.slane %v717_v18, %v2042_v52  ;;  %v729_v23 = vsel %vm444_vm0, %v728_v15, %v404_v11  ;;  %vm1487_vm4 = vcmask 257024  }
  0x7c   : > { %v822_v41 = vrot.slane %v803_v20, 4 }
  0x7d   : > { %v742_v35 = vrot.slane %v721_v22, 4 }
  0x7e   : > { %v823_v50 = vsel %vm444_vm0, %v815_v13, %v822_v41 }
  0x7f   : > { %v743_v1 = vsel %vm444_vm0, %v727_v19, %v742_v35  ;;  %1123 = vmatpush.msrb.mxu1 %v823_v50 }
  0x80   : > { %v751_v45 = vperm.slane %v743_v1, %v2044_v53 }
  0x82   : > { %v770_v54 = vrot.slane %v751_v45, 4 }
  0xeb   : > { %v2174_v24 = vpop.f32.mrf.mxu0  ;;  %v2178_v27 = vpop.f32.mrf.mxu1 }
  0xec   : > { %v970_v26 = vsel %vm969_vm2, %v2174_v24, -inf  ;;  %v976_v31 = vsel %vm969_vm2, %v2178_v27, -inf }
  0xed   : > { %971 = vmax.xlane.f32.xlu1 %v970_v26  ;;  %v733_v26 = vperm.slane %v729_v23, %v2042_v52 }
  0xef   : > { %v754_v49 = vrot.slane %v733_v26, 4 }
  0xf0   : > { %v2180_v28 = vpop.f32.mrf.mxu2 }
  0xf1   : > { %v982_v30 = vsel %vm969_vm2, %v2180_v28, -inf  ;;  %v755_v36 = vsel %vm444_vm0, %v739_v16, %v754_v49 }
  0xf2   : > { %983 = vmax.xlane.f32.xlu0 %v982_v30  ;;  %v2186_v29 = vpop.f32.mrf.mxu3  ;;  %v740_v30 = vrot.slane %v727_v19, 4 }
  0xf3   : > { %v988_v32 = vsel %vm969_vm2, %v2186_v29, -inf }
  0xf5   : > { %977 = vmax.xlane.f32.xlu1 %v976_v31  ;;  %v2190_v37 = vpop.f32.mrf.mxu1  ;;  %v752_v31 = vrot.slane %v739_v16, 4 }
  0xf6   : > { %v979_v33 = vsel %vm969_vm2, %v2190_v37, -inf  ;;  %v2198_v34 = vpop.f32.mrf.mxu0 }
  0xf7   : > { %v973_v25 = vsel %vm969_vm2, %v2198_v34, -inf }
  0xfa   : > { %v2192_v38 = vpop.f32.mrf.mxu2  ;;  %989 = vmax.xlane.f32.xlu0 %v988_v32  ;;  %v2200_v40 = vpop.f32.mrf.mxu3  ;;  %v810_v32 = vrot.slane %v789_v5, 4 }
  0xfb   : > { %v985_v39 = vsel %vm969_vm2, %v2192_v38, -inf  ;;  %v991_v42 = vsel %vm969_vm2, %v2200_v40, -inf }
  0xfc   : > { %986 = vmax.xlane.f32.xlu2 %v985_v39  ;;  %v741_v39 = vsel %vm444_vm0, %v740_v30, %v721_v22  ;;  %v811_v43 = vsel %vm444_vm0, %v795_v2, %v810_v32  ;;  %v763_v2 = vperm.slane %v755_v36, %v2044_v53 }
  0xfd   : > { %980 = vmax.xlane.f32.xlu1 %v979_v33  ;;  %v821_v33 = vsel %vm444_vm0, %v820_v21, %v803_v20  ;;  %v747_v44 = vperm.slane %v741_v39, %v2044_v53  ;;  %v819_v48 = vperm.slane %v811_v43, %v2044_v53 }
  0xfe   : > { %1094 = vmatpush.msrb.mxu0 %v821_v33  ;;  %v768_v46 = vrot.slane %v763_v2, 4  ;;  %v771_v56 = vsel %vm444_vm0, %v763_v2, %v770_v54 }
  0xff   : > { %v824_v61 = vrot.slane %v819_v48, 4  ;;  %v766_v58 = vrot.slane %v747_v44, 4 }
 0x102   : > { %974 = vmax.xlane.f32.xlu0 %v973_v25  ;;  %v753_v25 = vsel %vm444_vm0, %v752_v31, %v733_v26 }
 0x103   : > { %v759_v47 = vperm.slane %v753_v25, %v2044_v53 }
 0x104   : > { %992 = vmax.xlane.f32.xlu2 %v991_v42  ;;  %v798_v42 = vrot.slane %v777_v63, 4 }
 0x105   : > { %v764_v59 = vrot.slane %v759_v47, 4  ;;  %v767_v5 = vsel %vm444_vm0, %v759_v47, %v766_v58 }
 0x106   : > { %v799_v57 = vsel %vm444_vm0, %v783_v4, %v798_v42  ;;  %v769_v4 = vsel %vm444_vm0, %v768_v46, %v751_v45  ;;  %1124 = vmatpush.msrb.mxu1 %v767_v5 }
 0x107   : > { %v807_v60 = vperm.slane %v799_v57, %v2044_v53  ;;  %v765_v62 = vsel %vm444_vm0, %v764_v59, %v747_v44 }
 0x108   : > { %1095 = vmatpush.msrb.mxu0 %v765_v62 }
 0x109   : > { %v825_v3 = vsel %vm444_vm0, %v824_v61, %v807_v60  ;;  %v826_v51 = vrot.slane %v807_v60, 4 }
 0x10a   : > { %1152 = vmatpush.msrb.mxu2 %v825_v3 }
 0x10b   : > { %v827_v55 = vsel %vm444_vm0, %v819_v48, %v826_v51 }
 0x10c   : > { %1153 = vmatpush.msrb.mxu2 %v769_v4  ;;  %1181 = vmatpush.msrb.mxu3 %v827_v55 }
 0x10e   : > { %1182 = vmatpush.msrb.mxu3 %v771_v56 }
 0x160   : > { %v972_v0 = vpop.xlane.xlu1 %971 }
 0x161   : > { %v994_v6 = vsub.f32 %v2174_v24, %v972_v0 }
 0x163   : > { %v1002_v7 = vmul.f32 1.442695, %v994_v6 }
 0x165   : > { %1762 = vpow2.f32 %v1002_v7  ;;  %v984_v63 = vpop.xlane.xlu0 %983 }
 0x166   : > { %v998_v8 = vsub.f32 %v2180_v28, %v984_v63 }
 0x168   : > { %v1010_v9 = vmul.f32 1.442695, %v998_v8  ;;  %v978_v10 = vpop.xlane.xlu1 %977 }
 0x169   : > { %v996_v11 = vsub.f32 %v2178_v27, %v978_v10 }
 0x16a   : > { %1764 = vpow2.f32 %v1010_v9 }
 0x16b   : > { %v1763_v12 = vpop.eup %1762  ;;  %v1006_v13 = vmul.f32 1.442695, %v996_v11 }
 0x16c   : > { %1688 = vmatmul.msk.f32.vlgmr.msrb.gmra.mxu0 %vm969_vm2, %v1763_v12  ;;  %v1018_v14 = vsel %vm969_vm2, %v1763_v12, 0.0 }
 0x16d   : > { %1766 = vpow2.f32 %v1006_v13  ;;  %1019 = vadd.xlane.f32.xlu2 %v1018_v14  ;;  %v990_v15 = vpop.xlane.xlu0 %989 }
 0x16e   : > { %v1000_v24 = vsub.f32 %v2186_v29, %v990_v15 }
 0x16f   : > { %v987_v16 = vpop.xlane.xlu2 %986 }
 0x170   : > { %v1765_v17 = vpop.eup %1764  ;;  %v1014_v18 = vmul.f32 1.442695, %v1000_v24  ;;  %v999_v28 = vsub.f32 %v2192_v38, %v987_v16  ;;  %v981_v19 = vpop.xlane.xlu1 %980 }
 0x171   : > { %v997_v27 = vsub.f32 %v2190_v37, %v981_v19  ;;  %1692 = vmatmul.msk.f32.vlgmr.msrb.gmra.mxu2 %vm969_vm2, %v1765_v17  ;;  %v1030_v20 = vsel %vm969_vm2, %v1765_v17, 0.0 }
 0x172   : > { %1768 = vpow2.f32 %v1014_v18  ;;  %v1012_v21 = vmul.f32 1.442695, %v999_v28  ;;  %1031 = vadd.xlane.f32.xlu1 %v1030_v20 }
 0x173   : > { %v1767_v22 = vpop.eup %1766  ;;  %v1008_v23 = vmul.f32 1.442695, %v997_v27 }
 0x174   : > { %1770 = vpow2.f32 %v1012_v21  ;;  %1690 = vmatmul.msk.f32.vlgmr.msrb.gmra.mxu1 %vm969_vm2, %v1767_v22  ;;  %v1024_v29 = vsel %vm969_vm2, %v1767_v22, 0.0 }
 0x175   : > { %1772 = vpow2.f32 %v1008_v23  ;;  %1025 = vadd.xlane.f32.xlu0 %v1024_v29  ;;  %v975_v38 = vpop.xlane.xlu0 %974 }
 0x176   : > { %v995_v26 = vsub.f32 %v2198_v34, %v975_v38 }
 0x177   : > { %v993_v37 = vpop.xlane.xlu2 %992 }
 0x178   : > { %v1769_v30 = vpop.eup %1768  ;;  %v1001_v31 = vsub.f32 %v2200_v40, %v993_v37  ;;  %v1004_v32 = vmul.f32 1.442695, %v995_v26 }
 0x179   : > { %1694 = vmatmul.msk.f32.vlgmr.msrb.gmra.mxu3 %vm969_vm2, %v1769_v30  ;;  %v1036_v47 = vsel %vm969_vm2, %v1769_v30, 0.0 }
 0x17a   : > { %v1771_v33 = vpop.eup %1770  ;;  %v1016_v39 = vmul.f32 1.442695, %v1001_v31  ;;  %1774 = vpow2.f32 %v1004_v32 }
 0x17b   : > { %v1773_v25 = vpop.eup %1772  ;;  %1693 = vmatmul.msk.f32.gmra.mxu2 %vm969_vm2, %v1771_v33  ;;  %v1033_v42 = vsel %vm969_vm2, %v1771_v33, 0.0 }
 0x17c   : > { %1776 = vpow2.f32 %v1016_v39  ;;  %1034 = vadd.xlane.f32.xlu2 %v1033_v42  ;;  %1691 = vmatmul.msk.f32.gmra.mxu1 %vm969_vm2, %v1773_v25  ;;  %v1027_v34 = vsel %vm969_vm2, %v1773_v25, 0.0 }
 0x17d   : > { %1028 = vadd.xlane.f32.xlu1 %v1027_v34 }
 0x180   : > { %v1775_v43 = vpop.eup %1774 }
 0x181   : > { %1689 = vmatmul.msk.f32.gmra.mxu0 %vm969_vm2, %v1775_v43  ;;  %v1021_v40 = vsel %vm969_vm2, %v1775_v43, 0.0 }
 0x182   : > { %v1777_v44 = vpop.eup %1776  ;;  %1022 = vadd.xlane.f32.xlu0 %v1021_v40 }
 0x183   : > { %1695 = vmatmul.msk.f32.gmra.mxu3 %vm969_vm2, %v1777_v44  ;;  %v1039_v48 = vsel %vm969_vm2, %v1777_v44, 0.0 }
 0x184   : > { %1037 = vadd.xlane.f32.xlu2 %v1036_v47 }
 0x18a   : > { %1040 = vadd.xlane.f32.xlu0 %v1039_v48 }
 0x1e0   : > { %v1020_v49 = vpop.xlane.xlu2 %1019 }
 0x1e1   : > { %1778 = vrcp.f32 %v1020_v49 }
 0x1e5   : > { %v1032_v57 = vpop.xlane.xlu1 %1031 }
 0x1e6   : > { %1780 = vrcp.f32 %v1032_v57 }
 0x1e7   : > { %v1779_v59 = vpop.eup %1778 }
 0x1e8   : > { %v1026_v35 = vpop.xlane.xlu0 %1025  ;;  %v1050_v61 = vmul.f32 %v1779_v59, %v1020_v49 }
 0x1e9   : > { %1782 = vrcp.f32 %v1026_v35  ;;  %v1097_v0 = vpop.f32.mrf.mxu0 }
 0x1ea   : > { %v1058_v3 = vsub.f32 2.0, %v1050_v61 }
 0x1ec   : > { %v1781_v60 = vpop.eup %1780  ;;  %v1066_v4 = vmul.f32 %v1779_v59, %v1058_v3 }
 0x1ed   : > { %v1054_v1 = vmul.f32 %v1781_v60, %v1032_v57 }
 0x1ee   : > { %v1190_v63 = vmul.f32 %v1097_v0, %v1066_v4 }
 0x1ef   : > { %v1035_v36 = vpop.xlane.xlu2 %1034  ;;  %v1783_v62 = vpop.eup %1782  ;;  %v1062_v41 = vsub.f32 2.0, %v1054_v1 }
 0x1f0   : > { %1784 = vrcp.f32 %v1035_v36  ;;  %v1029_v2 = vpop.xlane.xlu1 %1028  ;;  %v1052_v45 = vmul.f32 %v1783_v62, %v1026_v35  ;;  %v1200_v17 = vrot.slane %v1190_v63, 4 }
 0x1f1   : > { %1786 = vrcp.f32 %v1029_v2  ;;  %v1070_v54 = vmul.f32 %v1781_v60, %v1062_v41  ;;  %v1126_v11 = vpop.f32.mrf.mxu1 }
 0x1f2   : > { %v1060_v55 = vsub.f32 2.0, %v1052_v45 }
 0x1f4   : > { %v1155_v46 = vpop.f32.mrf.mxu2  ;;  %v1068_v10 = vmul.f32 %v1783_v62, %v1060_v55 }
 0x1f5   : > { %v1023_v50 = vpop.xlane.xlu0 %1022  ;;  %v1194_v7 = vmul.f32 %v1155_v46, %v1070_v54 }
 0x1f6   : > { %v1785_v58 = vpop.eup %1784  ;;  %1788 = vrcp.f32 %v1023_v50  ;;  %v1192_v27 = vmul.f32 %v1126_v11, %v1068_v10 }
 0x1f7   : > { %v1055_v5 = vmul.f32 %v1785_v58, %v1035_v36  ;;  %v1038_v51 = vpop.xlane.xlu2 %1037  ;;  %v1787_v56 = vpop.eup %1786  ;;  %v1198_v15 = vrot.slane %v1194_v7, 4  ;;  %v1201_v22 = vsel %vm444_vm0, %v1194_v7, %v1200_v17 }
 0x1f8   : > { %1790 = vrcp.f32 %v1038_v51  ;;  %v1053_v9 = vmul.f32 %v1787_v56, %v1029_v2  ;;  %v1212_v32 = vrot.slane %v1192_v27, 4  ;;  %v1209_v33 = vperm.slane %v1201_v22, %v2042_v52 }
 0x1f9   : > { %v1063_v6 = vsub.f32 2.0, %v1055_v5  ;;  %v1199_v38 = vsel %vm444_vm0, %v1198_v15, %v1190_v63  ;;  %v1129_v47 = vpop.f32.mrf.mxu1 }
 0x1fa   : > { %v1061_v19 = vsub.f32 2.0, %v1053_v9  ;;  %v1205_v42 = vperm.slane %v1199_v38, %v2042_v52  ;;  %v1236_v59 = vrot.slane %v1209_v33, 4 }
 0x1fb   : > { %v1071_v24 = vmul.f32 %v1785_v58, %v1063_v6 }
 0x1fc   : > { %v1789_v8 = vpop.eup %1788  ;;  %v1184_v21 = vpop.f32.mrf.mxu3  ;;  %v1069_v39 = vmul.f32 %v1787_v56, %v1061_v19  ;;  %v1224_v36 = vrot.slane %v1205_v42, 4 }
 0x1fd   : > { %v1051_v12 = vmul.f32 %v1789_v8, %v1023_v50  ;;  %v1041_v13 = vpop.xlane.xlu0 %1040 }
 0x1fe   : > { %v1791_v14 = vpop.eup %1790  ;;  %v1158_v16 = vpop.f32.mrf.mxu2  ;;  %1792 = vrcp.f32 %v1041_v13  ;;  %v1193_v60 = vmul.f32 %v1129_v47, %v1069_v39 }
 0x1ff   : > { %v1056_v18 = vmul.f32 %v1791_v14, %v1038_v51  ;;  %v1059_v28 = vsub.f32 2.0, %v1051_v12  ;;  %v1195_v20 = vmul.f32 %v1158_v16, %v1071_v24  ;;  %v1100_v26 = vpop.f32.mrf.mxu0 }
 0x200   : > { %v1268_v5 = vrot.slane %v1193_v60, 4 }
 0x201   : > { %v1064_v23 = vsub.f32 2.0, %v1056_v18  ;;  %v1067_v29 = vmul.f32 %v1789_v8, %v1059_v28  ;;  %v1254_v25 = vrot.slane %v1195_v20, 4 }
 0x203   : > { %v1072_v37 = vmul.f32 %v1791_v14, %v1064_v23  ;;  %v1191_v30 = vmul.f32 %v1100_v26, %v1067_v29 }
 0x204   : > { %v1793_v31 = vpop.eup %1792 }
 0x205   : > { %v1196_v34 = vmul.f32 %v1184_v21, %v1072_v37  ;;  %v1057_v43 = vmul.f32 %v1793_v31, %v1041_v13  ;;  %v1256_v40 = vrot.slane %v1191_v30, 4  ;;  %v1255_v44 = vsel %vm444_vm0, %v1254_v25, %v1191_v30 }
 0x206   : > { %v1261_v2 = vperm.slane %v1255_v44, %v2042_v52  ;;  %v1187_v50 = vpop.f32.mrf.mxu3 }
 0x207   : > { %v1210_v48 = vrot.slane %v1196_v34, 4  ;;  %v1213_v49 = vsel %vm444_vm0, %v1196_v34, %v1212_v32  ;;  %v1065_v57 = vsub.f32 2.0, %v1057_v43  ;;  %v1257_v35 = vsel %vm444_vm0, %v1195_v20, %v1256_v40 }
 0x208   : > { %v1221_v61 = vperm.slane %v1213_v49, %v2042_v52  ;;  %v1265_v46 = vperm.slane %v1257_v35, %v2042_v52  ;;  %v1280_v8 = vrot.slane %v1261_v2, 4 }
 0x209   : > { %v1211_v1 = vsel %vm444_vm0, %v1210_v48, %v1192_v27  ;;  %v1073_v62 = vmul.f32 %v1793_v31, %v1065_v57 }
 0x20a   : > { %v1217_v3 = vperm.slane %v1211_v1, %v2042_v52  ;;  %v1234_v41 = vrot.slane %v1221_v61, 4  ;;  %v1237_v45 = vsel %vm444_vm0, %v1221_v61, %v1236_v59  ;;  %v1292_v9 = vrot.slane %v1265_v46, 4 }
 0x20b   : > { %v1245_v58 = vperm.slane %v1237_v45, %v2044_v53  ;;  %v1197_v4 = vmul.f32 %v1187_v50, %v1073_v62 }
 0x20c   : > { %v1222_v51 = vrot.slane %v1217_v3, 4  ;;  %v1225_v55 = vsel %vm444_vm0, %v1217_v3, %v1224_v36  ;;  %v1235_v54 = vsel %vm444_vm0, %v1234_v41, %v1209_v33 }
 0x20d   : > { %v1233_v56 = vperm.slane %v1225_v55, %v2044_v53  ;;  %v1241_v0 = vperm.slane %v1235_v54, %v2044_v53  ;;  %v1252_v6 = vrot.slane %v1245_v58, 4  ;;  %v1266_v7 = vrot.slane %v1197_v4, 4 }
 0x20e   : > { %v1223_v63 = vsel %vm444_vm0, %v1222_v51, %v1205_v42  ;;  %v1269_v10 = vsel %vm444_vm0, %v1197_v4, %v1268_v5 }
 0x20f   : > { %v1229_v11 = vperm.slane %v1223_v63, %v2044_v53  ;;  %v1248_v12 = vrot.slane %v1233_v56, 4  ;;  %v1253_v13 = vsel %vm444_vm0, 0.0, %v1252_v6  ;;  %v1267_v14 = vsel %vm444_vm0, %v1266_v7, %v1193_v60 }
 0x210   : > { %v1342_v15 = vrot.slane %v1253_v13, 4  ;;  %v1273_v24 = vperm.slane %v1267_v14, %v2042_v52  ;;  %v1277_v16 = vperm.slane %v1269_v10, %v2042_v52  ;;  %v1250_v17 = vrot.slane %v1241_v0, 4 }
 0x211   : > { %v1337_v18 = vsel %vm444_vm0, %v1252_v6, %v1241_v0  ;;  %v1246_v28 = vrot.slane %v1229_v11, 4  ;;  %v1249_v19 = vsel %vm444_vm0, 0.0, %v1248_v12  ;;  %v1310_v27 = vsel %vm444_vm0, %v1248_v12, %v1229_v11 }
 0x212   : > { %v1278_v20 = vrot.slane %v1273_v24, 4  ;;  %v1281_v21 = vsel %vm444_vm0, %v1273_v24, %v1280_v8  ;;  %v1290_v22 = vrot.slane %v1277_v16, 4  ;;  %v1293_v23 = vsel %vm444_vm0, %v1277_v16, %v1292_v9 }
 0x213   : > { %v1289_v29 = vperm.slane %v1281_v21, %v2044_v53  ;;  %v1301_v38 = vperm.slane %v1293_v23, %v2044_v53  ;;  %v1251_v26 = vsel %vm444_vm0, 0.0, %v1250_v17  ;;  %v1341_v37 = vperm.slane %v1337_v18, %v2042_v52 }
 0x214   : > { %v1279_v30 = vsel %vm444_vm0, %v1278_v20, %v1261_v2  ;;  %v1291_v31 = vsel %vm444_vm0, %v1290_v22, %v1265_v46  ;;  %v1343_v32 = vsel %vm444_vm0, %v1342_v15, %v1251_v26  ;;  %v1247_v33 = vsel %vm444_vm0, 0.0, %v1246_v28 }
 0x215   : > { %v1285_v39 = vperm.slane %v1279_v30, %v2044_v53  ;;  %v1297_v25 = vperm.slane %v1291_v31, %v2044_v53  ;;  %v1304_v42 = vrot.slane %v1289_v29, 4  ;;  %v1308_v34 = vrot.slane %v1301_v38, 4 }
 0x216   : > { %v1347_v43 = vperm.slane %v1343_v32, %v2042_v52  ;;  %v1350_v40 = vrot.slane %v1341_v37, 4  ;;  %v1314_v44 = vperm.slane %v1310_v27, %v2042_v52  ;;  %v1315_v47 = vrot.slane %v1249_v19, 4 }
 0x217   : > { %v1309_v48 = vsel %vm444_vm0, 0.0, %v1308_v34  ;;  %v1302_v49 = vrot.slane %v1285_v39, 4  ;;  %v1305_v57 = vsel %vm444_vm0, 0.0, %v1304_v42  ;;  %v1364_v61 = vsel %vm444_vm0, %v1304_v42, %v1285_v39 }
 0x218   : > { %v1351_v35 = vsel %vm444_vm0, %v1347_v43, %v1350_v40  ;;  %v1316_v59 = vsel %vm444_vm0, %v1315_v47, %v1247_v33  ;;  %v1323_v60 = vrot.slane %v1314_v44, 4  ;;  %v1348_v2 = vrot.slane %v1347_v43, 4  ;;  %v1480_v47 = vld [vmem:[%s373_s7 + $0x4] sm:$0xf] }
 0x219   : > { %v2334_v36 = vperm.slane %v1351_v35, %v2044_v53  ;;  %v1320_v1 = vperm.slane %v1316_v59, %v2042_v52  ;;  %v1303_v62 = vsel %vm444_vm0, 0.0, %v1302_v49  ;;  %v1396_v3 = vrot.slane %v1309_v48, 4 }
 0x21a   : > { %v1369_v41 = vrot.slane %v1305_v57, 4  ;;  %v1306_v45 = vrot.slane %v1297_v25, 4  ;;  %v1349_v50 = vsel %vm444_vm0, %v1348_v2, %v1341_v37  ;;  %v1368_v4 = vperm.slane %v1364_v61, %v2042_v52  ;;  %v1479_v61 = vld [vmem:[%s373_s7] sm:$0xf] }
 0x21b   : > { %1440 = vrot.lane.b32.xlu0 %v2334_v36, %s1852_s3  ;;  %v1324_v46 = vsel %vm444_vm0, %v1320_v1, %v1323_v60  ;;  %v1321_v58 = vrot.slane %v1320_v1, 4  ;;  %v1355_v51 = vperm.slane %v1349_v50, %v2044_v53  ;;  %v1391_v54 = vsel %vm444_vm0, %v1308_v34, %v1297_v25 }
 0x21c   : > { %v1332_v5 = vperm.slane %v1324_v46, %v2044_v53  ;;  %v1370_v55 = vsel %vm444_vm0, %v1369_v41, %v1303_v62  ;;  %v1307_v6 = vsel %vm444_vm0, 0.0, %v1306_v45  ;;  %v1395_v11 = vperm.slane %v1391_v54, %v2042_v52  ;;  %v1482_v46 = vld [vmem:[%s373_s7 + $0xc] sm:$0xf] }
 0x21d   : > { %v1322_v56 = vsel %vm444_vm0, %v1321_v58, %v1314_v44  ;;  %v1374_v0 = vperm.slane %v1370_v55, %v2042_v52  ;;  %v1360_v7 = vrot.slane %v1355_v51, 4  ;;  %v1397_v9 = vsel %vm444_vm0, %v1396_v3, %v1307_v6  ;;  %v1481_v55 = vld [vmem:[%s373_s7 + $0x8] sm:$0xf] }
 0x21e   : > { %1438 = vrot.lane.b32.xlu1 %v1332_v5, %s1852_s3  ;;  %v1335_v63 = vrot.slane %v1332_v5, 4  ;;  %v2352_v8 = vperm.slane %v1322_v56, %v2044_v53  ;;  %v1401_v12 = vperm.slane %v1397_v9, %v2042_v52  ;;  %v1377_v14 = vrot.slane %v1368_v4, 4 }
 0x21f   : > { %v1375_v10 = vrot.slane %v1374_v0, 4  ;;  %v1361_v13 = vsel %vm444_vm0, 0.0, %v1360_v7  ;;  %v1404_v28 = vrot.slane %v1395_v11, 4  ;;  %v1362_v33 = vrot.slane %v2334_v36, 4 }
 0x220   : > { %1424 = vrot.lane.b32.xlu2 %v1361_v13, %s1853_s4  ;;  %v1333_v15 = vrot.slane %v2352_v8, 4  ;;  %v1402_v16 = vrot.slane %v1401_v12, 4  ;;  %v1336_v17 = vsel %vm444_vm0, 0.0, %v1335_v63  ;;  %v1378_v19 = vsel %vm444_vm0, %v1374_v0, %v1377_v14 }
 0x221   : > { %v1376_v24 = vsel %vm444_vm0, %v1375_v10, %v1368_v4  ;;  %v1386_v21 = vperm.slane %v1378_v19, %v2044_v53  ;;  %v1405_v22 = vsel %vm444_vm0, %v1401_v12, %v1404_v28 }
 0x222   : > { %v1382_v18 = vperm.slane %v1376_v24, %v2044_v53  ;;  %v1334_v27 = vsel %vm444_vm0, 0.0, %v1333_v15  ;;  %v1403_v20 = vsel %vm444_vm0, %v1402_v16, %v1395_v11  ;;  %v1413_v38 = vperm.slane %v1405_v22, %v2044_v53 }
 0x223   : > { %1454 = vrot.lane.b32.xlu0 %v1336_v17, %s1854_s5  ;;  %v1409_v29 = vperm.slane %v1403_v20, %v2044_v53  ;;  %v1389_v31 = vrot.slane %v1386_v21, 4  ;;  %v1363_v53 = vsel %vm444_vm0, 0.0, %v1362_v33 }
 0x224   : > { %v1387_v52 = vrot.slane %v1382_v18, 4  ;;  %v1416_v37 = vrot.slane %v1413_v38, 4 }
 0x225   : > { %v1414_v26 = vrot.slane %v1409_v29, 4  ;;  %v1390_v39 = vsel %vm444_vm0, 0.0, %v1389_v31 }
 0x226   : > { %1422 = vrot.lane.b32.xlu1 %v1334_v27, %s1853_s4  ;;  %v1388_v23 = vsel %vm444_vm0, 0.0, %v1387_v52  ;;  %v1417_v32 = vsel %vm444_vm0, 0.0, %v1416_v37 }
 0x227   : > { %v1415_v30 = vsel %vm444_vm0, 0.0, %v1414_v26 }
 0x228   : > { %1442 = vrot.lane.b32.xlu2 %v1386_v21, %s1852_s3 }
 0x22b   : > { %1426 = vrot.lane.b32.xlu0 %v1388_v23, %s1853_s4 }
 0x22e   : > { %1444 = vrot.lane.b32.xlu1 %v1413_v38, %s1852_s3 }
 0x230   : > { %1428 = vrot.lane.b32.xlu2 %v1415_v30, %s1853_s4 }
 0x233   : > { %1460 = vrot.lane.b32.xlu0 %v1417_v32, %s1854_s5 }
 0x236   : > { %1458 = vrot.lane.b32.xlu1 %v1390_v39, %s1854_s5 }
 0x238   : > { %1456 = vrot.lane.b32.xlu2 %v1363_v53, %s1854_s5 }
 0x27a   : > { %v1425_v25 = vpop.permute.xlu2 %1424 }
 0x27b   : > { %v1467_v44 = vsel %vm828_vm1, %v1355_v51, %v1425_v25 }
 0x282   : > { %v1443_v42 = vpop.permute.xlu2 %1442 }
 0x28a   : > { %v1429_v34 = vpop.permute.xlu2 %1428 }
 0x28b   : > { %v1469_v45 = vsel %vm828_vm1, %v1409_v29, %v1429_v34 }
 0x28d   : > { %v1441_v43 = vpop.permute.xlu0 %1440 }
 0x28e   : > { %v1471_v48 = vsel %vm969_vm2, %v1467_v44, %v1441_v43 }
 0x290   : > { %v1439_v40 = vpop.permute.xlu1 %1438 }
 0x292   : > { %v1457_v49 = vpop.permute.xlu2 %1456 }
 0x293   : > { %v1476_v57 = vsel %vm1474_vm3, %v1471_v48, %v1457_v49 }
 0x294   : > { %v1484_v35 = vadd.f32 %v1480_v47, %v1476_v57 }
 0x295   : > { %v1455_v59 = vpop.permute.xlu0 %1454 }
 0x296   : > { %1489 = vst.msk [vmem:[%s2382_s8 + $0x4] sm:$0xf] %vm1487_vm4, %v1484_v35 }
 0x298   : > { %v1423_v60 = vpop.permute.xlu1 %1422 }
 0x299   : > { %v1466_v36 = vsel %vm828_vm1, %v2352_v8, %v1423_v60 }
 0x29a   : > { %v1470_v1 = vsel %vm969_vm2, %v1466_v36, %v1439_v40 }
 0x29b   : > { %v1475_v2 = vsel %vm1474_vm3, %v1470_v1, %v1455_v59 }
 0x29c   : > { %v1483_v62 = vadd.f32 %v1479_v61, %v1475_v2 }
 0x29d   : > { %v1427_v3 = vpop.permute.xlu0 %1426  ;;  %v1521_v63 = vld [vmem:[%s2382_s8 + $0x4] sm:$0xf] (%p1922_p6) }
 0x29e   : > { %1488 = vst.msk [vmem:[%s2382_s8] sm:$0xf] %vm1487_vm4, %v1483_v62  ;;  %v1468_v50 = vsel %vm828_vm1, %v1382_v18, %v1427_v3 }
 0x29f   : > { %v1472_v56 = vsel %vm969_vm2, %v1468_v50, %v1443_v42  ;;  %1522 = vst [vmem:[%s1502_s24 + $0x10] sm:$0xf] (%p1922_p6), %v1521_v63 }
 0x2a0   : > { %v1445_v41 = vpop.permute.xlu1 %1444 }
 0x2a1   : > { %v1473_v58 = vsel %vm969_vm2, %v1469_v45, %v1445_v41 }
 0x2a5   : > { %v1461_v4 = vpop.permute.xlu0 %1460  ;;  %v1519_v7 = vld [vmem:[%s2382_s8] sm:$0xf] (%p1922_p6) }
 0x2a6   : > { %v1478_v5 = vsel %vm1474_vm3, %v1473_v58, %v1461_v4  ;;  %1520 = vst [vmem:[%s1502_s24] sm:$0xf] (%p1922_p6), %v1519_v7 }
 0x2a7   : > { %v1486_v51 = vadd.f32 %v1482_v46, %v1478_v5 }
 0x2a8   : > { %v1459_v54 = vpop.permute.xlu1 %1458  ;;  %1498 = sbr.rel (!%p1922_p6) target bundleno = 693 (0x2b5), region = 111 }
 0x2a9   : > { %1491 = vst.msk [vmem:[%s2382_s8 + $0xc] sm:$0xf] %vm1487_vm4, %v1486_v51  ;;  %v1477_v0 = vsel %vm1474_vm3, %v1472_v56, %v1459_v54 }
 0x2aa   : > { %v1485_v6 = vadd.f32 %v1481_v55, %v1477_v0 }
 0x2ac   : > { %1490 = vst.msk [vmem:[%s2382_s8 + $0x8] sm:$0xf] %vm1487_vm4, %v1485_v6 }
 0x2b0   : > { %v1525_v9 = vld [vmem:[%s2382_s8 + $0xc] sm:$0xf] }
 0x2b1   : > { %1526 = vst [vmem:[%s1502_s24 + $0x30] sm:$0xf] %v1525_v9 }
 0x2b3   : > { %v1523_v8 = vld [vmem:[%s2382_s8 + $0x8] sm:$0xf] }
 0x2b4   : > { %1524 = vst [vmem:[%s1502_s24 + $0x20] sm:$0xf] %v1523_v8 }
 0x2b5 PF: > { %s12_s15 = sadd.s32 1, %s1848_s15   ;;  %s2439_s9 = smov %s1828_s10 }
 0x2b6   : > { %p9_p12 = scmp.ge.s32.totalorder %s12_s15, 10   ;;  %s2440_s10 = smov %s1930_s25 }
 0x2b7   : > { %s2441_s11 = smov %s1840_s13  ;;  %s2442_s12 = smov %s1844_s14 }
 0x2b8   : > { %s2443_s13 = smov %s2446_s16  ;;  %s2444_s14 = smov %s2450_s17 }
 0x2b9   :  { %11 = sbr.rel (!%p9_p12) target bundleno = 4 (0x4), region = 191 }

// kernel: decomposed_attention_pallas.6
= control target key start
LH: loop header
LB: loop body
LE: loop exit
PB: predicated region body
PF: predicated region fallthrough
CT: control target
= control target key end

     0   :  { %s4818_s6 = smov 0   ;;  %s6799_s0 = inlined_call_operand.vmem [shape: f32[2,16,4,12,8], index: 0, kind: input, shape index: {}]   ;;  %s6800_s1 = inlined_call_operand.vmem [shape: f32[2,16,4,32], index: 1, kind: output, shape index: {}]  }
   0x1 LB: > { %s4513_s7 = sadd.s32 4294967295, %s4801_s6   ;;  %p4517_p0 = scmp.ge.s32.totalorder %s4801_s6, 1  ;;  %s4801_s6 = sphi %s4818_s6, %s11_s6  }
   0x2   : > { %p87_p1 = scmp.lt.s32.totalorder %s4801_s6, 3 }
   0x4   : > { %p88_p2 = pnand %p4517_p0, %p87_p1 }
   0x5   : > { %p107_p3 = scmp.lt.s32.totalorder (!%p88_p2), %s4513_s7, 1  ;;  %s4805_s12 = smov (!%p88_p2), 16  }
   0x6   : > { %91 = sbr.rel (%p88_p2) target bundleno = 806 (0x326), region = 24  ;;  %s4806_s13 = smov (!%p88_p2), 8  }
   0x7   : > { %s4807_s14 = smov (!%p88_p2), 24  }
   0xb   : > { %s6806_s7 = smov (!%p107_p3, %s4513_s7), 1  ;;  %v4803_v0 = vmov 1983009808   ;;  %v4804_v2 = vmov 1934713408   ;;  %vm310_vm0 = vcmask 1047556  }
   0xc   : > { %s4652_s8 = sshll.u32 %s6806_s7, 10  ;;  %v313_v1 = vunpack.c.l.s4 %v4803_v0  ;;  %v339_v3 = vunpack.c.l.s4 %v4804_v2  ;;  %vm1846_vm1 = vcmask 64512   ;;  %vm2407_vm2 = vcmask 130048   ;;  %s4653_s15 = sshll.u32 %s6806_s7, 6 }
   0xd   : > { %s4832_s11 = scalar_lea.vmem %s6799_s0, %s4652_s8  ;;  %vm4424_vm3 = vcmask 195584   ;;  %s6695_s18 = scalar_lea.vmem %s6800_s1, %s4653_s15  ;;  %vm4441_vm4 = vcmask 257024  }
   0xe   : > { %v181_v4 = vld [vmem:[%s4832_s11 + $0x200] sm:$0xff]  ;;  %v4852_v16 = vunpack.c.0.s8 %v313_v1  ;;  %v4854_v17 = vunpack.c.0.s8 %v339_v3 }
   0xf   : > { %v189_v5 = vld [vmem:[%s4832_s11 + $0x240] sm:$0xff]  ;;  %v4844_v10 = vmul.f32 2.828427, %v181_v4  ;;  %v830_v11 = vrot.slane %v181_v4, 4 }
  0x10   : > { %v197_v6 = vld [vmem:[%s4832_s11 + $0x280] sm:$0xff]  ;;  %v4848_v14 = vmul.f32 2.828427, %v189_v5  ;;  %v831_v23 = vrot.slane %v189_v5, 4 }
  0x11   : > { %v205_v7 = vld [vmem:[%s4832_s11 + $0x2c0] sm:$0xff]  ;;  %v4850_v15 = vmul.f32 2.828427, %v197_v6  ;;  %v1007_v21 = vsel %vm310_vm0, %v197_v6, %v830_v11 }
  0x12   : > { %v4839_v8 = vld [vmem:[%s4832_s11 + $0x300] sm:$0xff]  ;;  %v4856_v18 = vmul.f32 2.828427, %v205_v7  ;;  %v1011_v29 = vperm.slane %v1007_v21, %v4852_v16  ;;  %v1013_v34 = vsel %vm310_vm0, %v205_v7, %v831_v23 }
  0x13   : > { %v4842_v9 = vld [vmem:[%s4832_s11 + $0x340] sm:$0xff]  ;;  %v366_v22 = vrot.slane %v4850_v15, 4  ;;  %v834_v24 = vrot.slane %v4839_v8, 4  ;;  %v1017_v40 = vperm.slane %v1013_v34, %v4852_v16 }
  0x14   : > { %v229_v12 = vld [vmem:[%s4832_s11 + $0x380] sm:$0xff]  ;;  %v835_v25 = vrot.slane %v4842_v9, 4  ;;  %v372_v28 = vrot.slane %v4856_v18, 4  ;;  %v1032_v43 = vrot.slane %v1011_v29, 4 }
  0x15   : > { %v237_v13 = vld [vmem:[%s4832_s11 + $0x3c0] sm:$0xff]  ;;  %v4858_v19 = vmul.f32 2.828427, %v229_v12  ;;  %v1019_v35 = vsel %vm310_vm0, %v229_v12, %v834_v24  ;;  %v1030_v48 = vrot.slane %v1017_v40, 4 }
  0x16   : > { %v4860_v20 = vmul.f32 2.828427, %v237_v13  ;;  %v4867_v26 = vld [vmem:[%s4832_s11] sm:$0xff]  ;;  %v1025_v36 = vsel %vm310_vm0, %v237_v13, %v835_v25  ;;  %v1023_v41 = vperm.slane %v1019_v35, %v4852_v16  ;;  %v1033_v50 = vsel %vm310_vm0, %v1017_v40, %v1032_v43 }
  0x17   : > { %v4870_v27 = vld [vmem:[%s4832_s11 + $0x40] sm:$0xff]  ;;  %v822_v32 = vrot.slane %v4867_v26, 4  ;;  %v1029_v42 = vperm.slane %v1025_v36, %v4852_v16  ;;  %v1041_v52 = vperm.slane %v1033_v50, %v4854_v17  ;;  %v1031_v58 = vsel %vm310_vm0, %v1030_v48, %v1011_v29 }
  0x18   : > { %v133_v30 = vld [vmem:[%s4832_s11 + $0x80] sm:$0xff]  ;;  %v823_v33 = vrot.slane %v4870_v27, 4  ;;  %v1044_v51 = vrot.slane %v1023_v41, 4  ;;  %v1037_v62 = vperm.slane %v1031_v58, %v4854_v17  ;;  %v245_v35 = vmul.f32 2.828427, %v4867_v26 }
  0x19   : > { %v141_v31 = vld [vmem:[%s4832_s11 + $0xc0] sm:$0xff]  ;;  %v253_v39 = vmul.f32 2.828427, %v133_v30  ;;  %v951_v47 = vsel %vm310_vm0, %v133_v30, %v822_v32  ;;  %v1042_v49 = vrot.slane %v1029_v42, 4  ;;  %v1060_v1 = vrot.slane %v1041_v52, 4 }
  0x1a   : > { %v165_v37 = vld [vmem:[%s4832_s11 + $0x180] sm:$0xff]  ;;  %v257_v44 = vmul.f32 2.828427, %v141_v31  ;;  %v1045_v60 = vsel %vm310_vm0, %v1029_v42, %v1044_v51  ;;  %v955_v4 = vperm.slane %v951_v47, %v4852_v16  ;;  %v957_v5 = vsel %vm310_vm0, %v141_v31, %v823_v33 }
  0x1b   : > { %v173_v38 = vld [vmem:[%s4832_s11 + $0x1c0] sm:$0xff]  ;;  %v269_v45 = vmul.f32 2.828427, %v165_v37  ;;  %v309_v55 = vrot.slane %v253_v39, 4  ;;  %v1043_v59 = vsel %vm310_vm0, %v1042_v49, %v1023_v41  ;;  %v1053_v0 = vperm.slane %v1045_v60, %v4854_v17 }
  0x1c   : > { %v4886_v46 = vmul.f32 2.828427, %v173_v38  ;;  %v149_v53 = vld [vmem:[%s4832_s11 + $0x100] sm:$0xff]  ;;  %v316_v56 = vrot.slane %v257_v44, 4  ;;  %v1049_v63 = vperm.slane %v1043_v59, %v4854_v17  ;;  %v1056_v7 = vrot.slane %v1037_v62, 4 }
  0x1d   : > { %v157_v54 = vld [vmem:[%s4832_s11 + $0x140] sm:$0xff]  ;;  %v322_v57 = vrot.slane %v269_v45, 4  ;;  %v826_v2 = vrot.slane %v149_v53, 4  ;;  %v1058_v11 = vrot.slane %v1053_v0, 4  ;;  %v1061_v12 = vsel %vm310_vm0, %v1053_v0, %v1060_v1 }
  0x1e   : > { %v328_v61 = vrot.slane %v4886_v46, 4  ;;  %v827_v3 = vrot.slane %v157_v54, 4  ;;  %v1054_v6 = vrot.slane %v1049_v63, 4  ;;  %4566 = vmatpush.xpose.msk.msra.mxu3 %vm1846_vm1, %v1061_v12  ;;  %v961_v13 = vperm.slane %v957_v5, %v4852_v16 }
  0x1f   : > { %v963_v21 = vsel %vm310_vm0, %v165_v37, %v826_v2  ;;  %v976_v24 = vrot.slane %v955_v4, 4  ;;  %v1057_v29 = vsel %vm310_vm0, %v1049_v63, %v1056_v7  ;;  %v1059_v30 = vsel %vm310_vm0, %v1058_v11, %v1041_v52  ;;  %v199_v63 = vld [vmem:[%s4832_s11 + $0x290] sm:$0xff] }
  0x20   : > { %v969_v23 = vsel %vm310_vm0, %v173_v38, %v827_v3  ;;  %v1055_v25 = vsel %vm310_vm0, %v1054_v6, %v1037_v62  ;;  %v967_v31 = vperm.slane %v963_v21, %v4852_v16  ;;  %4558 = vmatpush.xpose.msk.msra.mxu1 %vm1846_vm1, %v1057_v29  ;;  %v974_v33 = vrot.slane %v961_v13, 4  ;;  %4562 = vmatpush.xpose.msk.msra.mxu2 %vm1846_vm1, %v1059_v30  ;;  %v207_v7 = vld [vmem:[%s4832_s11 + $0x2d0] sm:$0xff] }
  0x21   : > { %4554 = vmatpush.xpose.msk.msra.mxu0 %vm1846_vm1, %v1055_v25  ;;  %v973_v32 = vperm.slane %v969_v23, %v4852_v16  ;;  %v977_v34 = vsel %vm310_vm0, %v961_v13, %v976_v24  ;;  %v249_v38 = vmul.f32 2.828427, %v4870_v27  ;;  %v261_v39 = vmul.f32 2.828427, %v149_v53  ;;  %v231_v11 = vld [vmem:[%s4832_s11 + $0x390] sm:$0xff] }
  0x22   : > { %v985_v36 = vperm.slane %v977_v34, %v4854_v17  ;;  %v988_v37 = vrot.slane %v967_v31, 4  ;;  %v975_v40 = vsel %vm310_vm0, %v974_v33, %v955_v4  ;;  %v265_v42 = vmul.f32 2.828427, %v157_v54  ;;  %v239_v21 = vld [vmem:[%s4832_s11 + $0x3d0] sm:$0xff] }
  0x23   : > { %v986_v41 = vrot.slane %v973_v32, 4  ;;  %v311_v43 = vsel %vm310_vm0, %v309_v55, %v245_v35  ;;  %v981_v44 = vperm.slane %v975_v40, %v4854_v17  ;;  %v317_v27 = vsel %vm310_vm0, %v316_v56, %v249_v38 }
  0x24   : > { %v989_v45 = vsel %vm310_vm0, %v973_v32, %v988_v37  ;;  %v1004_v46 = vrot.slane %v985_v36, 4  ;;  %v315_v26 = vperm.slane %v311_v43, %v4852_v16  ;;  %v323_v49 = vsel %vm310_vm0, %v322_v57, %v261_v39  ;;  %v4962_v32 = vld [vmem:[%s4832_s11 + $0x250] sm:$0xff] }
  0x25   : > { %v987_v47 = vsel %vm310_vm0, %v986_v41, %v967_v31  ;;  %v997_v48 = vperm.slane %v989_v45, %v4854_v17  ;;  %v1000_v51 = vrot.slane %v981_v44, 4  ;;  %v321_v52 = vperm.slane %v317_v27, %v4852_v16  ;;  %v4959_v31 = vld [vmem:[%s4832_s11 + $0x210] sm:$0xff] }
  0x26   : > { %v993_v50 = vperm.slane %v987_v47, %v4854_v17  ;;  %v327_v53 = vperm.slane %v323_v49, %v4852_v16  ;;  %v329_v58 = vsel %vm310_vm0, %v328_v61, %v265_v42  ;;  %v336_v59 = vrot.slane %v315_v26, 4  ;;  %v4971_v37 = vld [vmem:[%s4832_s11 + $0x350] sm:$0xff] }
  0x27   : > { %v1002_v54 = vrot.slane %v997_v48, 4  ;;  %v1005_v55 = vsel %vm310_vm0, %v997_v48, %v1004_v46  ;;  %v333_v56 = vperm.slane %v329_v58, %v4852_v16  ;;  %v334_v57 = vrot.slane %v321_v52, 4 }
  0x28   : > { %v998_v60 = vrot.slane %v993_v50, 4  ;;  %v1001_v62 = vsel %vm310_vm0, %v993_v50, %v1000_v51  ;;  %4567 = vmatpush.xpose.msk.msra.mxu3 %vm1846_vm1, %v1005_v55  ;;  %v337_v1 = vsel %vm310_vm0, %v321_v52, %v336_v59  ;;  %v348_v61 = vrot.slane %v327_v53, 4 }
  0x29   : > { %4559 = vmatpush.xpose.msk.msra.mxu1 %vm1846_vm1, %v1001_v62  ;;  %v1003_v0 = vsel %vm310_vm0, %v1002_v54, %v985_v36  ;;  %v4940_v2 = vmul.f32 2.828427, %v199_v63  ;;  %v335_v4 = vsel %vm310_vm0, %v334_v57, %v315_v26  ;;  %v346_v5 = vrot.slane %v333_v56, 4  ;;  %v4968_v36 = vld [vmem:[%s4832_s11 + $0x310] sm:$0xff] }
  0x2a   : > { %v999_v3 = vsel %vm310_vm0, %v998_v60, %v981_v44  ;;  %4563 = vmatpush.xpose.msk.msra.mxu2 %vm1846_vm1, %v1003_v0  ;;  %v345_v6 = vperm.slane %v337_v1, %v4854_v17  ;;  %v341_v12 = vperm.slane %v335_v4, %v4854_v17  ;;  %v349_v13 = vsel %vm310_vm0, %v333_v56, %v348_v61 }
  0x2b   : > { %4555 = vmatpush.xpose.msk.msra.mxu0 %vm1846_vm1, %v999_v3  ;;  %v4952_v23 = vmul.f32 2.828427, %v207_v7  ;;  %v4954_v24 = vmul.f32 2.828427, %v231_v11  ;;  %v347_v25 = vsel %vm310_vm0, %v346_v5, %v327_v53  ;;  %v357_v29 = vperm.slane %v349_v13, %v4854_v17 }
  0x2c   : > { %v364_v30 = vrot.slane %v345_v6, 4  ;;  %v4964_v33 = vmul.f32 2.828427, %v239_v21  ;;  %v353_v34 = vperm.slane %v347_v25, %v4854_v17  ;;  %v360_v35 = vrot.slane %v341_v12, 4 }
  0x2d   : > { %v478_v38 = vrot.slane %v4940_v2, 4  ;;  %v484_v39 = vrot.slane %v4952_v23, 4  ;;  %v362_v40 = vrot.slane %v357_v29, 4  ;;  %v490_v42 = vrot.slane %v4954_v24, 4  ;;  %v5128_v2 = vld [vmem:[%s4832_s11 + $0x320] sm:$0xff] }
  0x2e   : > { %v365_v41 = vsel %vm310_vm0, %v357_v29, %v364_v30  ;;  %v496_v43 = vrot.slane %v4964_v33, 4  ;;  %v358_v44 = vrot.slane %v353_v34, 4  ;;  %v361_v45 = vsel %vm310_vm0, %v353_v34, %v360_v35  ;;  %v5135_v24 = vld [vmem:[%s4832_s11 + $0x360] sm:$0xff] }
  0x2f   : > { %4568 = vmatmul.msk.f32.vlgmr.msra.gmra.mxu3 %vm1846_vm1, %v365_v41  ;;  %v846_v46 = vrot.slane %v4959_v31, 4  ;;  %v847_v26 = vrot.slane %v4962_v32, 4  ;;  %4560 = vmatmul.msk.f32.vlgmr.msra.gmra.mxu1 %vm1846_vm1, %v361_v45  ;;  %v363_v47 = vsel %vm310_vm0, %v362_v40, %v345_v6  ;;  %v850_v48 = vrot.slane %v4968_v36, 4  ;;  %v135_v40 = vld [vmem:[%s4832_s11 + $0x90] sm:$0xff] }
  0x30   : > { %v851_v27 = vrot.slane %v4971_v37, 4  ;;  %v293_v49 = vmul.f32 2.828427, %v4839_v8  ;;  %v359_v50 = vsel %vm310_vm0, %v358_v44, %v341_v12  ;;  %4564 = vmatmul.msk.f32.vlgmr.msra.gmra.mxu2 %vm1846_vm1, %v363_v47  ;;  %v297_v53 = vmul.f32 2.828427, %v4842_v9  ;;  %v143_v41 = vld [vmem:[%s4832_s11 + $0xd0] sm:$0xff] }
  0x31   : > { %v1119_v51 = vsel %vm310_vm0, %v199_v63, %v846_v46  ;;  %v1125_v52 = vsel %vm310_vm0, %v207_v7, %v847_v26  ;;  %4556 = vmatmul.msk.f32.vlgmr.msra.gmra.mxu0 %vm1846_vm1, %v359_v50  ;;  %v1131_v58 = vsel %vm310_vm0, %v231_v11, %v850_v48  ;;  %v367_v62 = vsel %vm310_vm0, %v366_v22, %v4844_v10  ;;  %v167_v47 = vld [vmem:[%s4832_s11 + $0x190] sm:$0xff] }
  0x32   : > { %v1123_v54 = vperm.slane %v1119_v51, %v4852_v16  ;;  %v1129_v55 = vperm.slane %v1125_v52, %v4852_v16  ;;  %v1137_v8 = vsel %vm310_vm0, %v239_v21, %v851_v27  ;;  %v1135_v59 = vperm.slane %v1131_v58, %v4852_v16  ;;  %v175_v51 = vld [vmem:[%s4832_s11 + $0x1d0] sm:$0xff] }
  0x33   : > { %v1141_v60 = vperm.slane %v1137_v8, %v4852_v16  ;;  %v373_v9 = vsel %vm310_vm0, %v372_v28, %v4848_v14  ;;  %v371_v57 = vperm.slane %v367_v62, %v4852_v16  ;;  %v378_v0 = vrot.slane %v4858_v19, 4  ;;  %v127_v62 = vld [vmem:[%s4832_s11 + $0x50] sm:$0xff] }
  0x34   : > { %v1144_v56 = vrot.slane %v1123_v54, 4  ;;  %v377_v63 = vperm.slane %v373_v9, %v4852_v16  ;;  %v1156_v1 = vrot.slane %v1135_v59, 4  ;;  %v384_v61 = vrot.slane %v4860_v20, 4  ;;  %v151_v9 = vld [vmem:[%s4832_s11 + $0x110] sm:$0xff] }
  0x35   : > { %v1142_v3 = vrot.slane %v1129_v55, 4  ;;  %v1154_v4 = vrot.slane %v1141_v60, 4  ;;  %v379_v10 = vsel %vm310_vm0, %v378_v0, %v293_v49  ;;  %v392_v18 = vrot.slane %v371_v57, 4 }
  0x36   : > { %v1145_v15 = vsel %vm310_vm0, %v1129_v55, %v1144_v56  ;;  %v390_v22 = vrot.slane %v377_v63, 4  ;;  %v1157_v28 = vsel %vm310_vm0, %v1141_v60, %v1156_v1  ;;  %v383_v19 = vperm.slane %v379_v10, %v4852_v16  ;;  %v159_v56 = vld [vmem:[%s4832_s11 + $0x150] sm:$0xff] }
  0x37   : > { %v5014_v14 = vperm.slane %v1145_v15, %v4854_v17  ;;  %v385_v5 = vsel %vm310_vm0, %v384_v61, %v297_v53  ;;  %v5020_v20 = vperm.slane %v1157_v28, %v4854_v17  ;;  %v393_v11 = vsel %vm310_vm0, %v377_v63, %v392_v18 }
  0x38   : > { %v389_v6 = vperm.slane %v385_v5, %v4852_v16  ;;  %v391_v7 = vsel %vm310_vm0, %v390_v22, %v371_v57  ;;  %v401_v13 = vperm.slane %v393_v11, %v4854_v17  ;;  %v404_v21 = vrot.slane %v383_v19, 4 }
  0x39   : > { %v5026_v12 = vperm.slane %v391_v7, %v4854_v17  ;;  %v1143_v25 = vsel %vm310_vm0, %v1142_v3, %v1123_v54  ;;  %v1170_v29 = vrot.slane %v5020_v20, 4  ;;  %v1155_v35 = vsel %vm310_vm0, %v1154_v4, %v1135_v59  ;;  %v119_v54 = vld [vmem:[%s4832_s11 + $0x10] sm:$0xff] }
  0x3a   : > { %v402_v30 = vrot.slane %v389_v6, 4  ;;  %v1149_v34 = vperm.slane %v1143_v25, %v4854_v17  ;;  %v405_v45 = vsel %vm310_vm0, %v389_v6, %v404_v21  ;;  %v1161_v46 = vperm.slane %v1155_v35, %v4854_v17 }
  0x3b   : > { %v416_v44 = vrot.slane %v5026_v12, 4  ;;  %v420_v26 = vrot.slane %v401_v13, 4  ;;  %v1171_v48 = vsel %vm310_vm0, %v1170_v29, %v5014_v14  ;;  %v413_v49 = vperm.slane %v405_v45, %v4854_v17 }
  0x3c   : > { %v403_v27 = vsel %vm310_vm0, %v402_v30, %v383_v19  ;;  %v1168_v50 = vrot.slane %v1149_v34, 4  ;;  %4578 = vmatpush.xpose.msk.msrb.mxu2 %vm1846_vm1, %v1171_v48  ;;  %v1166_v53 = vrot.slane %v1161_v46, 4  ;;  %v254_v55 = vmul.f32 2.828427, %v135_v40 }
  0x3d   : > { %v409_v52 = vperm.slane %v403_v27, %v4854_v17  ;;  %v258_v58 = vmul.f32 2.828427, %v143_v41  ;;  %v418_v8 = vrot.slane %v413_v49, 4  ;;  %v421_v59 = vsel %vm310_vm0, %v413_v49, %v420_v26 }
  0x3e   : > { %v1169_v60 = vsel %vm310_vm0, %v1161_v46, %v1168_v50  ;;  %v270_v57 = vmul.f32 2.828427, %v167_v47  ;;  %v1167_v0 = vsel %vm310_vm0, %v1166_v53, %v1149_v34  ;;  %4569 = vmatmul.msk.f32.gmra.mxu3 %vm1846_vm1, %v421_v59  ;;  %v274_v1 = vmul.f32 2.828427, %v175_v51 }
  0x3f   : > { %v417_v63 = vsel %vm310_vm0, %v409_v52, %v416_v44  ;;  %4574 = vmatpush.xpose.msk.msrb.mxu1 %vm1846_vm1, %v1169_v60  ;;  %v422_v61 = vrot.slane %v254_v55, 4  ;;  %v419_v3 = vsel %vm310_vm0, %v418_v8, %v401_v13  ;;  %4570 = vmatpush.xpose.msk.msrb.mxu0 %vm1846_vm1, %v1167_v0  ;;  %v428_v4 = vrot.slane %v258_v58, 4 }
  0x40   : > { %4561 = vmatmul.msk.f32.gmra.mxu1 %vm1846_vm1, %v417_v63  ;;  %v434_v15 = vrot.slane %v270_v57, 4  ;;  %v838_v10 = vrot.slane %v119_v54, 4  ;;  %4565 = vmatmul.msk.f32.gmra.mxu2 %vm1846_vm1, %v419_v3  ;;  %v440_v22 = vrot.slane %v274_v1, 4  ;;  %v839_v18 = vrot.slane %v127_v62, 4 }
  0x41   : > { %v842_v28 = vrot.slane %v151_v9, 4  ;;  %v843_v19 = vrot.slane %v159_v56, 4  ;;  %v1172_v6 = vrot.slane %v5014_v14, 4  ;;  %v414_v7 = vrot.slane %v409_v52, 4 }
  0x42   : > { %v1063_v5 = vsel %vm310_vm0, %v135_v40, %v838_v10  ;;  %v246_v11 = vmul.f32 2.828427, %v119_v54  ;;  %v1069_v13 = vsel %vm310_vm0, %v143_v41, %v839_v18  ;;  %v250_v41 = vmul.f32 2.828427, %v127_v62 }
  0x43   : > { %v1067_v21 = vperm.slane %v1063_v5, %v4852_v16  ;;  %v1075_v25 = vsel %vm310_vm0, %v167_v47, %v842_v28  ;;  %v1081_v29 = vsel %vm310_vm0, %v175_v51, %v843_v19  ;;  %v1073_v30 = vperm.slane %v1069_v13, %v4852_v16 }
  0x44   : > { %v1079_v34 = vperm.slane %v1075_v25, %v4852_v16  ;;  %v1085_v35 = vperm.slane %v1081_v29, %v4852_v16  ;;  %v1173_v40 = vsel %vm310_vm0, %v5020_v20, %v1172_v6  ;;  %v415_v44 = vsel %vm310_vm0, %v414_v7, %v5026_v12 }
  0x45   : > { %v1088_v14 = vrot.slane %v1067_v21, 4  ;;  %4582 = vmatpush.xpose.msk.msrb.mxu3 %vm1846_vm1, %v1173_v40  ;;  %v262_v45 = vmul.f32 2.828427, %v151_v9  ;;  %4557 = vmatmul.msk.f32.gmra.mxu0 %vm1846_vm1, %v415_v44  ;;  %v1086_v26 = vrot.slane %v1073_v30, 4  ;;  %v266_v48 = vmul.f32 2.828427, %v159_v56 }
  0x46   : > { %v1100_v46 = vrot.slane %v1079_v34, 4  ;;  %v1098_v47 = vrot.slane %v1085_v35, 4  ;;  %v423_v49 = vsel %vm310_vm0, %v422_v61, %v246_v11  ;;  %v429_v20 = vsel %vm310_vm0, %v428_v4, %v250_v41 }
  0x47   : > { %v1089_v27 = vsel %vm310_vm0, %v1073_v30, %v1088_v14  ;;  %v435_v50 = vsel %vm310_vm0, %v434_v15, %v262_v45  ;;  %v1087_v52 = vsel %vm310_vm0, %v1086_v26, %v1067_v21  ;;  %v427_v8 = vperm.slane %v423_v49, %v4852_v16  ;;  %v5148_v49 = vld [vmem:[%s4832_s11 + $0x2e0] sm:$0xff] }
  0x48   : > { %v1097_v51 = vperm.slane %v1089_v27, %v4854_v17  ;;  %v1101_v12 = vsel %vm310_vm0, %v1085_v35, %v1100_v46  ;;  %v1099_v53 = vsel %vm310_vm0, %v1098_v47, %v1079_v34  ;;  %v1093_v55 = vperm.slane %v1087_v52, %v4854_v17  ;;  %v5145_v27 = vld [vmem:[%s4832_s11 + $0x2a0] sm:$0xff] }
  0x49   : > { %v1109_v54 = vperm.slane %v1101_v12, %v4854_v17  ;;  %v1105_v58 = vperm.slane %v1099_v53, %v4854_v17  ;;  %v433_v59 = vperm.slane %v429_v20, %v4852_v16  ;;  %v439_v60 = vperm.slane %v435_v50, %v4852_v16  ;;  %v5151_v20 = vld [vmem:[%s4832_s11 + $0x3a0] sm:$0xff] }
  0x4a   : > { %v441_v62 = vsel %vm310_vm0, %v440_v22, %v266_v48  ;;  %v1116_v9 = vrot.slane %v1097_v51, 4  ;;  %v1112_v63 = vrot.slane %v1093_v55, 4  ;;  %v448_v1 = vrot.slane %v427_v8, 4  ;;  %v5161_v53 = vld [vmem:[%s4832_s11 + $0x3e0] sm:$0xff] }
  0x4b   : > { %v1114_v56 = vrot.slane %v1109_v54, 4  ;;  %v1110_v57 = vrot.slane %v1105_v58, 4  ;;  %v445_v0 = vperm.slane %v441_v62, %v4852_v16  ;;  %v460_v61 = vrot.slane %v439_v60, 4 }
  0x4c   : > { %v1117_v3 = vsel %vm310_vm0, %v1109_v54, %v1116_v9  ;;  %v446_v4 = vrot.slane %v433_v59, 4  ;;  %v1113_v18 = vsel %vm310_vm0, %v1105_v58, %v1112_v63  ;;  %v449_v28 = vsel %vm310_vm0, %v433_v59, %v448_v1 }
  0x4d   : > { %v1115_v15 = vsel %vm310_vm0, %v1114_v56, %v1097_v51  ;;  %v1111_v10 = vsel %vm310_vm0, %v1110_v57, %v1093_v55  ;;  %4583 = vmatpush.xpose.msk.msrb.mxu3 %vm1846_vm1, %v1117_v3  ;;  %v458_v22 = vrot.slane %v445_v0, 4  ;;  %v461_v19 = vsel %vm310_vm0, %v445_v0, %v460_v61  ;;  %4575 = vmatpush.xpose.msk.msrb.mxu1 %vm1846_vm1, %v1113_v18 }
  0x4e   : > { %4579 = vmatpush.xpose.msk.msrb.mxu2 %vm1846_vm1, %v1115_v15  ;;  %4571 = vmatpush.xpose.msk.msrb.mxu0 %vm1846_vm1, %v1111_v10  ;;  %v447_v5 = vsel %vm310_vm0, %v446_v4, %v427_v8  ;;  %v278_v6 = vmul.f32 2.828427, %v4959_v31  ;;  %v457_v7 = vperm.slane %v449_v28, %v4854_v17  ;;  %v469_v11 = vperm.slane %v461_v19, %v4854_v17 }
  0x4f   : > { %v453_v21 = vperm.slane %v447_v5, %v4854_v17  ;;  %v459_v13 = vsel %vm310_vm0, %v458_v22, %v439_v60  ;;  %v282_v29 = vmul.f32 2.828427, %v4962_v32  ;;  %v294_v30 = vmul.f32 2.828427, %v4968_v36  ;;  %v5122_v36 = vld [vmem:[%s4832_s11 + $0x220] sm:$0xff] }
  0x50   : > { %v465_v25 = vperm.slane %v459_v13, %v4854_v17  ;;  %v298_v31 = vmul.f32 2.828427, %v4971_v37  ;;  %v474_v34 = vrot.slane %v469_v11, 4  ;;  %v476_v40 = vrot.slane %v457_v7, 4  ;;  %v5125_v37 = vld [vmem:[%s4832_s11 + $0x260] sm:$0xff] }
  0x51   : > { %v472_v35 = vrot.slane %v453_v21, 4  ;;  %v479_v14 = vsel %vm310_vm0, %v478_v38, %v278_v6  ;;  %v485_v45 = vsel %vm310_vm0, %v484_v39, %v282_v29  ;;  %v491_v32 = vsel %vm310_vm0, %v490_v42, %v294_v30  ;;  %v137_v30 = vld [vmem:[%s4832_s11 + $0xa0] sm:$0xff] }
  0x52   : > { %v470_v44 = vrot.slane %v465_v25, 4  ;;  %v483_v41 = vperm.slane %v479_v14, %v4852_v16  ;;  %v475_v38 = vsel %vm310_vm0, %v474_v34, %v457_v7  ;;  %v477_v23 = vsel %vm310_vm0, %v469_v11, %v476_v40  ;;  %v121_v14 = vld [vmem:[%s4832_s11 + $0x20] sm:$0xff] }
  0x53   : > { %v473_v46 = vsel %vm310_vm0, %v465_v25, %v472_v35  ;;  %v489_v39 = vperm.slane %v485_v45, %v4852_v16  ;;  %4580 = vmatmul.msk.f32.vlgmr.msrb.gmra.mxu2 %vm1846_vm1, %v475_v38  ;;  %v495_v26 = vperm.slane %v491_v32, %v4852_v16  ;;  %v497_v47 = vsel %vm310_vm0, %v496_v43, %v298_v31  ;;  %v129_v38 = vld [vmem:[%s4832_s11 + $0x60] sm:$0xff] }
  0x54   : > { %v471_v42 = vsel %vm310_vm0, %v470_v44, %v453_v21  ;;  %4576 = vmatmul.msk.f32.vlgmr.msrb.gmra.mxu1 %vm1846_vm1, %v473_v46  ;;  %v504_v48 = vrot.slane %v483_v41, 4  ;;  %4584 = vmatmul.msk.f32.vlgmr.msrb.gmra.mxu3 %vm1846_vm1, %v477_v23  ;;  %v501_v50 = vperm.slane %v497_v47, %v4852_v16  ;;  %v862_v51 = vrot.slane %v5122_v36, 4  ;;  %v145_v44 = vld [vmem:[%s4832_s11 + $0xe0] sm:$0xff] }
  0x55   : > { %4572 = vmatmul.msk.f32.vlgmr.msrb.gmra.mxu0 %vm1846_vm1, %v471_v42  ;;  %v863_v12 = vrot.slane %v5125_v37, 4  ;;  %v866_v33 = vrot.slane %v5128_v2, 4  ;;  %v516_v52 = vrot.slane %v495_v26, 4  ;;  %v867_v54 = vrot.slane %v5135_v24, 4  ;;  %v169_v46 = vld [vmem:[%s4832_s11 + $0x1a0] sm:$0xff] }
  0x56   : > { %v505_v43 = vsel %vm310_vm0, %v489_v39, %v504_v48  ;;  %v502_v55 = vrot.slane %v489_v39, 4  ;;  %v1231_v8 = vsel %vm310_vm0, %v5145_v27, %v862_v51  ;;  %v514_v61 = vrot.slane %v501_v50, 4 }
  0x57   : > { %v513_v58 = vperm.slane %v505_v43, %v4854_v17  ;;  %v1237_v59 = vsel %vm310_vm0, %v5148_v49, %v863_v12  ;;  %v1243_v60 = vsel %vm310_vm0, %v5151_v20, %v866_v33  ;;  %v517_v62 = vsel %vm310_vm0, %v501_v50, %v516_v52  ;;  %v153_v33 = vld [vmem:[%s4832_s11 + $0x120] sm:$0xff] }
  0x58   : > { %v1235_v9 = vperm.slane %v1231_v8, %v4852_v16  ;;  %v1241_v56 = vperm.slane %v1237_v59, %v4852_v16  ;;  %v1247_v57 = vperm.slane %v1243_v60, %v4852_v16  ;;  %v525_v63 = vperm.slane %v517_v62, %v4854_v17  ;;  %v161_v43 = vld [vmem:[%s4832_s11 + $0x160] sm:$0xff] }
  0x59   : > { %v1249_v0 = vsel %vm310_vm0, %v5161_v53, %v867_v54  ;;  %v503_v1 = vsel %vm310_vm0, %v502_v55, %v483_v41  ;;  %v515_v28 = vsel %vm310_vm0, %v514_v61, %v495_v26  ;;  %v532_v19 = vrot.slane %v513_v58, 4  ;;  %v177_v26 = vld [vmem:[%s4832_s11 + $0x1e0] sm:$0xff] }
  0x5a   : > { %v1253_v3 = vperm.slane %v1249_v0, %v4852_v16  ;;  %v1254_v4 = vrot.slane %v1241_v56, 4  ;;  %v1256_v15 = vrot.slane %v1235_v9, 4  ;;  %v1268_v10 = vrot.slane %v1247_v57, 4 }
  0x5b   : > { %v530_v18 = vrot.slane %v525_v63, 4  ;;  %v509_v22 = vperm.slane %v503_v1, %v4854_v17  ;;  %v521_v34 = vperm.slane %v515_v28, %v4854_v17  ;;  %v533_v40 = vsel %vm310_vm0, %v525_v63, %v532_v19 }
  0x5c   : > { %v1255_v5 = vsel %vm310_vm0, %v1254_v4, %v1235_v9  ;;  %v1266_v6 = vrot.slane %v1253_v3, 4  ;;  %v1257_v7 = vsel %vm310_vm0, %v1241_v56, %v1256_v15  ;;  %v1269_v11 = vsel %vm310_vm0, %v1253_v3, %v1268_v10  ;;  %4585 = vmatmul.msk.f32.gmra.mxu3 %vm1846_vm1, %v533_v40 }
  0x5d   : > { %v531_v21 = vsel %vm310_vm0, %v530_v18, %v513_v58  ;;  %v1261_v13 = vperm.slane %v1255_v5, %v4854_v17  ;;  %v1265_v25 = vperm.slane %v1257_v7, %v4854_v17  ;;  %v1277_v29 = vperm.slane %v1269_v11, %v4854_v17 }
  0x5e   : > { %4581 = vmatmul.msk.f32.gmra.mxu2 %vm1846_vm1, %v531_v21  ;;  %v1267_v31 = vsel %vm310_vm0, %v1266_v6, %v1247_v57  ;;  %v528_v35 = vrot.slane %v509_v22, 4  ;;  %v247_v23 = vmul.f32 2.828427, %v121_v14  ;;  %v526_v39 = vrot.slane %v521_v34, 4 }
  0x5f   : > { %v1273_v41 = vperm.slane %v1267_v31, %v4854_v17  ;;  %v1280_v45 = vrot.slane %v1261_v13, 4  ;;  %v1282_v32 = vrot.slane %v1277_v29, 4  ;;  %v251_v47 = vmul.f32 2.828427, %v129_v38 }
  0x60   : > { %v529_v42 = vsel %vm310_vm0, %v521_v34, %v528_v35  ;;  %v255_v48 = vmul.f32 2.828427, %v137_v30  ;;  %v259_v52 = vmul.f32 2.828427, %v145_v44  ;;  %v527_v54 = vsel %vm310_vm0, %v526_v39, %v509_v22 }
  0x61   : > { %v1278_v50 = vrot.slane %v1273_v41, 4  ;;  %v1281_v51 = vsel %vm310_vm0, %v1273_v41, %v1280_v45  ;;  %v1283_v12 = vsel %vm310_vm0, %v1282_v32, %v1265_v25  ;;  %4577 = vmatmul.msk.f32.gmra.mxu1 %vm1846_vm1, %v529_v42  ;;  %v263_v55 = vmul.f32 2.828427, %v153_v33  ;;  %4573 = vmatmul.msk.f32.gmra.mxu0 %vm1846_vm1, %v527_v54 }
  0x62   : > { %4590 = vmatpush.xpose.msk.msra.mxu1 %vm1846_vm1, %v1281_v51  ;;  %4594 = vmatpush.xpose.msk.msra.mxu2 %vm1846_vm1, %v1283_v12  ;;  %v267_v58 = vmul.f32 2.828427, %v161_v43  ;;  %v271_v8 = vmul.f32 2.828427, %v169_v46  ;;  %v275_v60 = vmul.f32 2.828427, %v177_v26 }
  0x63   : > { %v1279_v59 = vsel %vm310_vm0, %v1278_v50, %v1261_v13  ;;  %v534_v62 = vrot.slane %v255_v48, 4  ;;  %v540_v9 = vrot.slane %v259_v52, 4  ;;  %v854_v57 = vrot.slane %v121_v14, 4 }
  0x64   : > { %4586 = vmatpush.xpose.msk.msra.mxu0 %vm1846_vm1, %v1279_v59  ;;  %v546_v56 = vrot.slane %v271_v8, 4  ;;  %v855_v63 = vrot.slane %v129_v38, 4  ;;  %v858_v0 = vrot.slane %v153_v33, 4  ;;  %v552_v1 = vrot.slane %v275_v60, 4 }
  0x65   : > { %v859_v61 = vrot.slane %v161_v43, 4  ;;  %v1284_v3 = vrot.slane %v1265_v25, 4  ;;  %v535_v4 = vsel %vm310_vm0, %v534_v62, %v247_v23  ;;  %v1175_v15 = vsel %vm310_vm0, %v137_v30, %v854_v57  ;;  %v5248_v62 = vld [vmem:[%s4832_s11 + $0x230] sm:$0xff] }
  0x66   : > { %v1181_v10 = vsel %vm310_vm0, %v145_v44, %v855_v63  ;;  %v1187_v18 = vsel %vm310_vm0, %v169_v46, %v858_v0  ;;  %v539_v22 = vperm.slane %v535_v4, %v4852_v16  ;;  %v1179_v28 = vperm.slane %v1175_v15, %v4852_v16  ;;  %v5261_v4 = vld [vmem:[%s4832_s11 + $0x270] sm:$0xff] }
  0x67   : > { %v1185_v19 = vperm.slane %v1181_v10, %v4852_v16  ;;  %v1191_v5 = vperm.slane %v1187_v18, %v4852_v16  ;;  %v1193_v6 = vsel %vm310_vm0, %v177_v26, %v859_v61  ;;  %v1285_v11 = vsel %vm310_vm0, %v1277_v29, %v1284_v3 }
  0x68   : > { %v1197_v7 = vperm.slane %v1193_v6, %v4852_v16  ;;  %v541_v21 = vsel %vm310_vm0, %v540_v9, %v251_v47  ;;  %v547_v13 = vsel %vm310_vm0, %v546_v56, %v263_v55  ;;  %v1200_v30 = vrot.slane %v1179_v28, 4  ;;  %4598 = vmatpush.xpose.msk.msra.mxu3 %vm1846_vm1, %v1285_v11  ;;  %v5279_v11 = vld [vmem:[%s4832_s11 + $0x370] sm:$0xff] }
  0x69   : > { %v1198_v25 = vrot.slane %v1185_v19, 4  ;;  %v1212_v31 = vrot.slane %v1191_v5, 4  ;;  %v545_v34 = vperm.slane %v541_v21, %v4852_v16  ;;  %v551_v40 = vperm.slane %v547_v13, %v4852_v16 }
  0x6a   : > { %v1210_v35 = vrot.slane %v1197_v7, 4  ;;  %v553_v14 = vsel %vm310_vm0, %v552_v1, %v267_v58  ;;  %v560_v44 = vrot.slane %v539_v22, 4  ;;  %v1201_v29 = vsel %vm310_vm0, %v1185_v19, %v1200_v30 }
  0x6b   : > { %v1199_v41 = vsel %vm310_vm0, %v1198_v25, %v1179_v28  ;;  %v1213_v45 = vsel %vm310_vm0, %v1197_v7, %v1212_v31  ;;  %v557_v32 = vperm.slane %v553_v14, %v4852_v16  ;;  %v1209_v23 = vperm.slane %v1201_v29, %v4854_v17  ;;  %v5273_v7 = vld [vmem:[%s4832_s11 + $0x2f0] sm:$0xff] }
  0x6c   : > { %v1205_v38 = vperm.slane %v1199_v41, %v4854_v17  ;;  %v1211_v46 = vsel %vm310_vm0, %v1210_v35, %v1191_v5  ;;  %v1221_v39 = vperm.slane %v1213_v45, %v4854_v17  ;;  %v558_v26 = vrot.slane %v545_v34, 4  ;;  %v5296_v14 = vld [vmem:[%s4832_s11 + $0x3b0] sm:$0xff] }
  0x6d   : > { %v1217_v42 = vperm.slane %v1211_v46, %v4854_v17  ;;  %v570_v47 = vrot.slane %v557_v32, 4  ;;  %v561_v48 = vsel %vm310_vm0, %v545_v34, %v560_v44  ;;  %v1228_v12 = vrot.slane %v1209_v23, 4  ;;  %v5299_v44 = vld [vmem:[%s4832_s11 + $0x3f0] sm:$0xff] }
  0x6e   : > { %v1224_v50 = vrot.slane %v1205_v38, 4  ;;  %v1226_v51 = vrot.slane %v1221_v39, 4  ;;  %v569_v33 = vperm.slane %v561_v48, %v4854_v17  ;;  %v559_v52 = vsel %vm310_vm0, %v558_v26, %v539_v22  ;;  %v5266_v22 = vld [vmem:[%s4832_s11 + $0x2b0] sm:$0xff] }
  0x6f   : > { %v1222_v43 = vrot.slane %v1217_v42, 4  ;;  %v571_v54 = vsel %vm310_vm0, %v570_v47, %v551_v40  ;;  %v572_v55 = vrot.slane %v551_v40, 4  ;;  %v1229_v59 = vsel %vm310_vm0, %v1221_v39, %v1228_v12 }
  0x70   : > { %v1225_v58 = vsel %vm310_vm0, %v1217_v42, %v1224_v50  ;;  %v1227_v8 = vsel %vm310_vm0, %v1226_v51, %v1209_v23  ;;  %v565_v60 = vperm.slane %v559_v52, %v4854_v17  ;;  %v577_v56 = vperm.slane %v571_v54, %v4854_v17  ;;  %4599 = vmatpush.xpose.msk.msra.mxu3 %vm1846_vm1, %v1229_v59 }
  0x71   : > { %v1223_v9 = vsel %vm310_vm0, %v1222_v43, %v1205_v38  ;;  %4591 = vmatpush.xpose.msk.msra.mxu1 %vm1846_vm1, %v1225_v58  ;;  %4595 = vmatpush.xpose.msk.msra.mxu2 %vm1846_vm1, %v1227_v8  ;;  %v573_v57 = vsel %vm310_vm0, %v557_v32, %v572_v55  ;;  %v588_v63 = vrot.slane %v569_v33, 4  ;;  %v279_v61 = vmul.f32 2.828427, %v5122_v36 }
  0x72   : > { %4587 = vmatpush.xpose.msk.msra.mxu0 %vm1846_vm1, %v1223_v9  ;;  %v584_v0 = vrot.slane %v565_v60, 4  ;;  %v581_v1 = vperm.slane %v573_v57, %v4854_v17  ;;  %v283_v3 = vmul.f32 2.828427, %v5125_v37  ;;  %v582_v15 = vrot.slane %v577_v56, 4  ;;  %v5276_v37 = vld [vmem:[%s4832_s11 + $0x330] sm:$0xff] }
  0x73   : > { %v287_v10 = vmul.f32 2.828427, %v5145_v27  ;;  %v291_v18 = vmul.f32 2.828427, %v5148_v49  ;;  %v878_v28 = vrot.slane %v5248_v62, 4  ;;  %v879_v31 = vrot.slane %v5261_v4, 4 }
  0x74   : > { %v585_v19 = vsel %vm310_vm0, %v577_v56, %v584_v0  ;;  %v586_v5 = vrot.slane %v581_v1, 4  ;;  %v589_v6 = vsel %vm310_vm0, %v581_v1, %v588_v63  ;;  %v295_v36 = vmul.f32 2.828427, %v5128_v2 }
  0x75   : > { %v583_v27 = vsel %vm310_vm0, %v582_v15, %v565_v60  ;;  %4592 = vmatmul.msk.f32.vlgmr.msra.gmra.mxu1 %vm1846_vm1, %v585_v19  ;;  %4600 = vmatmul.msk.f32.vlgmr.msra.gmra.mxu3 %vm1846_vm1, %v589_v6  ;;  %v299_v49 = vmul.f32 2.828427, %v5135_v24  ;;  %v303_v21 = vmul.f32 2.828427, %v5151_v20  ;;  %v307_v2 = vmul.f32 2.828427, %v5161_v53 }
  0x76   : > { %4588 = vmatmul.msk.f32.vlgmr.msra.gmra.mxu0 %vm1846_vm1, %v583_v27  ;;  %v587_v13 = vsel %vm310_vm0, %v586_v5, %v569_v33  ;;  %v590_v25 = vrot.slane %v287_v10, 4  ;;  %v596_v30 = vrot.slane %v291_v18, 4  ;;  %v882_v40 = vrot.slane %v5276_v37, 4  ;;  %v123_v6 = vld [vmem:[%s4832_s11 + $0x30] sm:$0xff] }
  0x77   : > { %4596 = vmatmul.msk.f32.vlgmr.msra.gmra.mxu2 %vm1846_vm1, %v587_v13  ;;  %v602_v34 = vrot.slane %v303_v21, 4  ;;  %v608_v35 = vrot.slane %v307_v2, 4  ;;  %v883_v24 = vrot.slane %v5279_v11, 4  ;;  %v1343_v41 = vsel %vm310_vm0, %v5266_v22, %v878_v28  ;;  %v139_v21 = vld [vmem:[%s4832_s11 + $0xb0] sm:$0xff] }
  0x78   : > { %v591_v20 = vsel %vm310_vm0, %v590_v25, %v279_v61  ;;  %v597_v53 = vsel %vm310_vm0, %v596_v30, %v283_v3  ;;  %v1349_v29 = vsel %vm310_vm0, %v5273_v7, %v879_v31  ;;  %v1347_v42 = vperm.slane %v1343_v41, %v4852_v16  ;;  %v147_v2 = vld [vmem:[%s4832_s11 + $0xf0] sm:$0xff] }
  0x79   : > { %v595_v45 = vperm.slane %v591_v20, %v4852_v16  ;;  %v601_v32 = vperm.slane %v597_v53, %v4852_v16  ;;  %v603_v38 = vsel %vm310_vm0, %v602_v34, %v295_v36  ;;  %v609_v46 = vsel %vm310_vm0, %v608_v35, %v299_v49  ;;  %v131_v35 = vld [vmem:[%s4832_s11 + $0x70] sm:$0xff] }
  0x7a   : > { %v607_v23 = vperm.slane %v603_v38, %v4852_v16  ;;  %v613_v39 = vperm.slane %v609_v46, %v4852_v16  ;;  %v1353_v26 = vperm.slane %v1349_v29, %v4852_v16  ;;  %v1355_v48 = vsel %vm310_vm0, %v5296_v14, %v882_v40  ;;  %v171_v40 = vld [vmem:[%s4832_s11 + $0x1b0] sm:$0xff] }
  0x7b   : > { %v614_v47 = vrot.slane %v601_v32, 4  ;;  %v1361_v50 = vsel %vm310_vm0, %v5299_v44, %v883_v24  ;;  %v616_v51 = vrot.slane %v595_v45, 4  ;;  %v1359_v33 = vperm.slane %v1355_v48, %v4852_v16  ;;  %v155_v41 = vld [vmem:[%s4832_s11 + $0x130] sm:$0xff] }
  0x7c   : > { %v626_v12 = vrot.slane %v613_v39, 4  ;;  %v1365_v43 = vperm.slane %v1361_v50, %v4852_v16  ;;  %v1366_v52 = vrot.slane %v1353_v26, 4  ;;  %v628_v58 = vrot.slane %v607_v23, 4  ;;  %v163_v29 = vld [vmem:[%s4832_s11 + $0x170] sm:$0xff] }
  0x7d   : > { %v615_v54 = vsel %vm310_vm0, %v614_v47, %v595_v45  ;;  %v617_v55 = vsel %vm310_vm0, %v601_v32, %v616_v51  ;;  %v1368_v8 = vrot.slane %v1347_v42, 4  ;;  %v1380_v5 = vrot.slane %v1359_v33, 4  ;;  %v179_v45 = vld [vmem:[%s4832_s11 + $0x1f0] sm:$0xff] }
  0x7e   : > { %v621_v59 = vperm.slane %v615_v54, %v4854_v17  ;;  %v627_v60 = vsel %vm310_vm0, %v626_v12, %v607_v23  ;;  %v1367_v9 = vsel %vm310_vm0, %v1366_v52, %v1347_v42  ;;  %v1378_v56 = vrot.slane %v1365_v43, 4 }
  0x7f   : > { %v633_v57 = vperm.slane %v627_v60, %v4854_v17  ;;  %v5326_v63 = vperm.slane %v1367_v9, %v4854_v17  ;;  %v625_v0 = vperm.slane %v617_v55, %v4854_v17  ;;  %v629_v1 = vsel %vm310_vm0, %v613_v39, %v628_v58 }
  0x80   : > { %v640_v61 = vrot.slane %v621_v59, 4  ;;  %v1379_v3 = vsel %vm310_vm0, %v1378_v56, %v1359_v33  ;;  %v637_v15 = vperm.slane %v629_v1, %v4854_v17  ;;  %v1369_v10 = vsel %vm310_vm0, %v1353_v26, %v1368_v8 }
  0x81   : > { %v1385_v18 = vperm.slane %v1379_v3, %v4854_v17  ;;  %v644_v28 = vrot.slane %v625_v0, 4  ;;  %v1377_v19 = vperm.slane %v1369_v10, %v4854_v17  ;;  %v638_v49 = vrot.slane %v633_v57, 4 }
  0x82   : > { %v641_v36 = vsel %vm310_vm0, %v633_v57, %v640_v61  ;;  %v642_v27 = vrot.slane %v637_v15, 4  ;;  %v248_v13 = vmul.f32 2.828427, %v123_v6  ;;  %v1381_v31 = vsel %vm310_vm0, %v1365_v43, %v1380_v5 }
  0x83   : > { %4593 = vmatmul.msk.f32.gmra.mxu1 %vm1846_vm1, %v641_v36  ;;  %v1390_v25 = vrot.slane %v1385_v18, 4  ;;  %v645_v30 = vsel %vm310_vm0, %v637_v15, %v644_v28  ;;  %v1396_v34 = vrot.slane %v1377_v19, 4  ;;  %v1389_v20 = vperm.slane %v1381_v31, %v4854_v17 }
  0x84   : > { %v643_v24 = vsel %vm310_vm0, %v642_v27, %v625_v0  ;;  %4601 = vmatmul.msk.f32.gmra.mxu3 %vm1846_vm1, %v645_v30  ;;  %v639_v53 = vsel %vm310_vm0, %v638_v49, %v621_v59  ;;  %v252_v32 = vmul.f32 2.828427, %v131_v35  ;;  %v256_v46 = vmul.f32 2.828427, %v139_v21 }
  0x85   : > { %v1391_v38 = vsel %vm310_vm0, %v1390_v25, %v5326_v63  ;;  %4597 = vmatmul.msk.f32.gmra.mxu2 %vm1846_vm1, %v643_v24  ;;  %4589 = vmatmul.msk.f32.gmra.mxu0 %vm1846_vm1, %v639_v53  ;;  %v260_v23 = vmul.f32 2.828427, %v147_v2  ;;  %v264_v39 = vmul.f32 2.828427, %v155_v41  ;;  %v1394_v42 = vrot.slane %v1389_v20, 4 }
  0x86   : > { %4602 = vmatpush.xpose.msk.msrb.mxu0 %vm1846_vm1, %v1391_v38  ;;  %v1397_v26 = vsel %vm310_vm0, %v1389_v20, %v1396_v34  ;;  %v268_v47 = vmul.f32 2.828427, %v163_v29  ;;  %v272_v48 = vmul.f32 2.828427, %v171_v40  ;;  %v276_v50 = vmul.f32 2.828427, %v179_v45 }
  0x87   : > { %4614 = vmatpush.xpose.msk.msrb.mxu3 %vm1846_vm1, %v1397_v26  ;;  %v646_v51 = vrot.slane %v256_v46, 4  ;;  %v652_v12 = vrot.slane %v260_v23, 4  ;;  %v870_v33 = vrot.slane %v123_v6, 4  ;;  %v1395_v43 = vsel %vm310_vm0, %v1394_v42, %v1377_v19 }
  0x88   : > { %v658_v52 = vrot.slane %v272_v48, 4  ;;  %v871_v54 = vrot.slane %v131_v35, 4  ;;  %v874_v55 = vrot.slane %v155_v41, 4  ;;  %4610 = vmatpush.xpose.msk.msrb.mxu2 %vm1846_vm1, %v1395_v43  ;;  %v664_v58 = vrot.slane %v276_v50, 4 }
  0x89   : > { %v875_v8 = vrot.slane %v163_v29, 4  ;;  %v1287_v59 = vsel %vm310_vm0, %v139_v21, %v870_v33  ;;  %v1392_v60 = vrot.slane %v5326_v63, 4  ;;  %v647_v0 = vsel %vm310_vm0, %v646_v51, %v248_v13 }
  0x8a   : > { %v1291_v9 = vperm.slane %v1287_v59, %v4852_v16  ;;  %v1293_v56 = vsel %vm310_vm0, %v147_v2, %v871_v54  ;;  %v1299_v57 = vsel %vm310_vm0, %v171_v40, %v874_v55  ;;  %v651_v63 = vperm.slane %v647_v0, %v4852_v16 }
  0x8b   : > { %v1297_v1 = vperm.slane %v1293_v56, %v4852_v16  ;;  %v1303_v61 = vperm.slane %v1299_v57, %v4852_v16  ;;  %v1305_v3 = vsel %vm310_vm0, %v179_v45, %v875_v8  ;;  %v1393_v15 = vsel %vm310_vm0, %v1385_v18, %v1392_v60 }
  0x8c   : > { %v1309_v10 = vperm.slane %v1305_v3, %v4852_v16  ;;  %v1312_v28 = vrot.slane %v1291_v9, 4  ;;  %4606 = vmatpush.xpose.msk.msrb.mxu1 %vm1846_vm1, %v1393_v15  ;;  %v653_v19 = vsel %vm310_vm0, %v652_v12, %v252_v32  ;;  %v659_v27 = vsel %vm310_vm0, %v658_v52, %v264_v39 }
  0x8d   : > { %v1324_v5 = vrot.slane %v1303_v61, 4  ;;  %v1310_v6 = vrot.slane %v1297_v1, 4  ;;  %v657_v36 = vperm.slane %v653_v19, %v4852_v16  ;;  %v663_v18 = vperm.slane %v659_v27, %v4852_v16 }
  0x8e   : > { %v1313_v49 = vsel %vm310_vm0, %v1297_v1, %v1312_v28  ;;  %v1322_v21 = vrot.slane %v1309_v10, 4  ;;  %v665_v2 = vsel %vm310_vm0, %v664_v58, %v268_v47  ;;  %v672_v24 = vrot.slane %v651_v63, 4 }
  0x8f   : > { %v1321_v13 = vperm.slane %v1313_v49, %v4854_v17  ;;  %v1325_v25 = vsel %vm310_vm0, %v1309_v10, %v1324_v5  ;;  %v1311_v30 = vsel %vm310_vm0, %v1310_v6, %v1291_v9  ;;  %v669_v31 = vperm.slane %v665_v2, %v4852_v16 }
  0x90   : > { %v1333_v34 = vperm.slane %v1325_v25, %v4854_v17  ;;  %v1317_v35 = vperm.slane %v1311_v30, %v4854_v17  ;;  %v1323_v40 = vsel %vm310_vm0, %v1322_v21, %v1303_v61  ;;  %v684_v41 = vrot.slane %v663_v18, 4 }
  0x91   : > { %v1340_v20 = vrot.slane %v1321_v13, 4  ;;  %v1329_v53 = vperm.slane %v1323_v40, %v4854_v17  ;;  %v670_v29 = vrot.slane %v657_v36, 4  ;;  %v673_v32 = vsel %vm310_vm0, %v657_v36, %v672_v24 }
  0x92   : > { %v1338_v45 = vrot.slane %v1333_v34, 4  ;;  %v682_v38 = vrot.slane %v669_v31, 4  ;;  %v1336_v46 = vrot.slane %v1317_v35, 4  ;;  %v681_v42 = vperm.slane %v673_v32, %v4854_v17 }
  0x93   : > { %v1341_v23 = vsel %vm310_vm0, %v1333_v34, %v1340_v20  ;;  %v1334_v39 = vrot.slane %v1329_v53, 4  ;;  %v685_v26 = vsel %vm310_vm0, %v669_v31, %v684_v41  ;;  %v671_v50 = vsel %vm310_vm0, %v670_v29, %v651_v63 }
  0x94   : > { %4615 = vmatpush.xpose.msk.msrb.mxu3 %vm1846_vm1, %v1341_v23  ;;  %v1339_v47 = vsel %vm310_vm0, %v1338_v45, %v1321_v13  ;;  %v693_v48 = vperm.slane %v685_v26, %v4854_v17  ;;  %v683_v51 = vsel %vm310_vm0, %v682_v38, %v663_v18  ;;  %v700_v33 = vrot.slane %v681_v42, 4 }
  0x95   : > { %v1335_v12 = vsel %vm310_vm0, %v1334_v39, %v1317_v35  ;;  %4611 = vmatpush.xpose.msk.msrb.mxu2 %vm1846_vm1, %v1339_v47  ;;  %v677_v43 = vperm.slane %v671_v50, %v4854_v17  ;;  %v689_v52 = vperm.slane %v683_v51, %v4854_v17  ;;  %v1337_v54 = vsel %vm310_vm0, %v1329_v53, %v1336_v46 }
  0x96   : > { %4603 = vmatpush.xpose.msk.msrb.mxu0 %vm1846_vm1, %v1335_v12  ;;  %v698_v55 = vrot.slane %v693_v48, 4  ;;  %v280_v58 = vmul.f32 2.828427, %v5248_v62  ;;  %v284_v8 = vmul.f32 2.828427, %v5261_v4  ;;  %v701_v59 = vsel %vm310_vm0, %v693_v48, %v700_v33  ;;  %4607 = vmatpush.xpose.msk.msrb.mxu1 %vm1846_vm1, %v1337_v54 }
  0x97   : > { %v694_v60 = vrot.slane %v689_v52, 4  ;;  %v696_v9 = vrot.slane %v677_v43, 4  ;;  %v288_v56 = vmul.f32 2.828427, %v5266_v22  ;;  %4616 = vmatmul.msk.f32.vlgmr.msrb.gmra.mxu3 %vm1846_vm1, %v701_v59  ;;  %v292_v0 = vmul.f32 2.828427, %v5273_v7 }
  0x98   : > { %v699_v57 = vsel %vm310_vm0, %v698_v55, %v681_v42  ;;  %v296_v1 = vmul.f32 2.828427, %v5276_v37  ;;  %v300_v62 = vmul.f32 2.828427, %v5279_v11  ;;  %v304_v3 = vmul.f32 2.828427, %v5296_v14 }
  0x99   : > { %v695_v4 = vsel %vm310_vm0, %v694_v60, %v677_v43  ;;  %4612 = vmatmul.msk.f32.vlgmr.msrb.gmra.mxu2 %vm1846_vm1, %v699_v57  ;;  %v697_v61 = vsel %vm310_vm0, %v689_v52, %v696_v9  ;;  %v308_v22 = vmul.f32 2.828427, %v5299_v44  ;;  %v702_v15 = vrot.slane %v288_v56, 4 }
  0x9a   : > { %4604 = vmatmul.msk.f32.vlgmr.msrb.gmra.mxu0 %vm1846_vm1, %v695_v4  ;;  %4608 = vmatmul.msk.f32.vlgmr.msrb.gmra.mxu1 %vm1846_vm1, %v697_v61  ;;  %v708_v7 = vrot.slane %v292_v0, 4  ;;  %v714_v10 = vrot.slane %v304_v3, 4 }
  0x9b   : > { %v720_v37 = vrot.slane %v308_v22, 4  ;;  %v703_v11 = vsel %vm310_vm0, %v702_v15, %v280_v58 }
  0x9c   : > { %v709_v28 = vsel %vm310_vm0, %v708_v7, %v284_v8  ;;  %v707_v63 = vperm.slane %v703_v11, %v4852_v16  ;;  %v715_v14 = vsel %vm310_vm0, %v714_v10, %v296_v1 }
  0x9d   : > { %v713_v19 = vperm.slane %v709_v28, %v4852_v16  ;;  %v721_v44 = vsel %vm310_vm0, %v720_v37, %v300_v62  ;;  %v719_v5 = vperm.slane %v715_v14, %v4852_v16 }
  0x9e   : > { %v725_v6 = vperm.slane %v721_v44, %v4852_v16  ;;  %v728_v27 = vrot.slane %v707_v63, 4 }
  0x9f   : > { %v726_v36 = vrot.slane %v713_v19, 4  ;;  %v740_v21 = vrot.slane %v719_v5, 4 }
  0xa0   : > { %v738_v49 = vrot.slane %v725_v6, 4  ;;  %v729_v2 = vsel %vm310_vm0, %v713_v19, %v728_v27 }
  0xa1   : > { %v727_v18 = vsel %vm310_vm0, %v726_v36, %v707_v63  ;;  %v737_v30 = vperm.slane %v729_v2, %v4854_v17  ;;  %v741_v31 = vsel %vm310_vm0, %v725_v6, %v740_v21 }
  0xa2   : > { %v733_v13 = vperm.slane %v727_v18, %v4854_v17  ;;  %v739_v25 = vsel %vm310_vm0, %v738_v49, %v719_v5  ;;  %v749_v35 = vperm.slane %v741_v31, %v4854_v17  ;;  %v198_v31 = vld [vmem:[%s4832_s11 + $0x288] sm:$0xf] }
  0xa3   : > { %v745_v34 = vperm.slane %v739_v25, %v4854_v17  ;;  %v756_v40 = vrot.slane %v737_v30, 4 }
  0xa4   : > { %v752_v24 = vrot.slane %v733_v13, 4  ;;  %v754_v53 = vrot.slane %v749_v35, 4 }
  0xa5   : > { %v750_v20 = vrot.slane %v745_v34, 4  ;;  %v757_v41 = vsel %vm310_vm0, %v749_v35, %v756_v40  ;;  %v190_v40 = vld [vmem:[%s4832_s11 + $0x248] sm:$0xf] }
  0xa6   : > { %v753_v29 = vsel %vm310_vm0, %v745_v34, %v752_v24  ;;  %v755_v32 = vsel %vm310_vm0, %v754_v53, %v737_v30  ;;  %4617 = vmatmul.msk.f32.gmra.mxu3 %vm1846_vm1, %v757_v41  ;;  %v182_v30 = vld [vmem:[%s4832_s11 + $0x208] sm:$0xf] }
  0xa7   : > { %v751_v45 = vsel %vm310_vm0, %v750_v20, %v733_v13  ;;  %4609 = vmatmul.msk.f32.gmra.mxu1 %vm1846_vm1, %v753_v29  ;;  %4613 = vmatmul.msk.f32.gmra.mxu2 %vm1846_vm1, %v755_v32  ;;  %v206_v24 = vld [vmem:[%s4832_s11 + $0x2c8] sm:$0xf] }
  0xa8   : > { %4605 = vmatmul.msk.f32.gmra.mxu0 %vm1846_vm1, %v751_v45  ;;  %v214_v20 = vld [vmem:[%s4832_s11 + $0x308] sm:$0xf]  ;;  %v1454_v45 = vrot.slane %v198_v31, 4  ;;  %v1460_v32 = vrot.slane %v206_v24, 4 }
  0xa9   : > { %v230_v53 = vld [vmem:[%s4832_s11 + $0x388] sm:$0xf] }
  0xaa   : > { %v238_v41 = vld [vmem:[%s4832_s11 + $0x3c8] sm:$0xf] }
  0xab   : > { %v222_v29 = vld [vmem:[%s4832_s11 + $0x348] sm:$0xf] }
  0xac   : > { %v5443_v38 = vpop.f32.mrf.mxu1  ;;  %v158_v31 = vld [vmem:[%s4832_s11 + $0x148] sm:$0xf] }
  0xad   : > { %v2414_v46 = vsel %vm2407_vm2, %v5443_v38, -inf }
  0xae   : > { %v5447_v23 = vpop.f32.mrf.mxu0  ;;  %2415 = vmax.xlane.f32.xlu1 %v2414_v46  ;;  %v1466_v46 = vrot.slane %v230_v53, 4 }
  0xaf   : > { %v2408_v39 = vsel %vm2407_vm2, %v5447_v23, -inf }
  0xb0   : > { %2409 = vmax.xlane.f32.xlu0 %v2408_v39  ;;  %v1472_v39 = vrot.slane %v238_v41, 4 }
  0xb2   : > { %v5451_v42 = vpop.f32.mrf.mxu3 }
  0xb3   : > { %v5453_v26 = vpop.f32.mrf.mxu2  ;;  %v2426_v48 = vsel %vm2407_vm2, %v5451_v42, -inf }
  0xb4   : > { %v2420_v47 = vsel %vm2407_vm2, %v5453_v26, -inf }
  0xb5   : > { %2421 = vmax.xlane.f32.xlu2 %v2420_v47 }
  0xb8   : > { %2427 = vmax.xlane.f32.xlu0 %v2426_v48  ;;  %v118_v48 = vld [vmem:[%s4832_s11 + $0x8] sm:$0xf] }
  0xbd   : > { %v5459_v50 = vpop.f32.mrf.mxu1 }
  0xbe   : > { %v2417_v51 = vsel %vm2407_vm2, %v5459_v50, -inf }
  0xbf   : > { %2418 = vmax.xlane.f32.xlu1 %v2417_v51  ;;  %v134_v51 = vld [vmem:[%s4832_s11 + $0x88] sm:$0xf] }
  0xc1   : > { %v5463_v12 = vpop.f32.mrf.mxu3 }
  0xc2   : > { %v5465_v33 = vpop.f32.mrf.mxu0  ;;  %v2429_v52 = vsel %vm2407_vm2, %v5463_v12, -inf }
  0xc3   : > { %v5467_v43 = vpop.f32.mrf.mxu2  ;;  %v2411_v54 = vsel %vm2407_vm2, %v5465_v33, -inf }
  0xc4   : > { %v2423_v55 = vsel %vm2407_vm2, %v5467_v43, -inf  ;;  %2412 = vmax.xlane.f32.xlu0 %v2411_v54 }
  0xc5   : > { %2424 = vmax.xlane.f32.xlu2 %v2423_v55 }
  0xc7   : > { %2430 = vmax.xlane.f32.xlu1 %v2429_v52  ;;  %v142_v52 = vld [vmem:[%s4832_s11 + $0xc8] sm:$0xf] }
  0xd1   : > { %v5475_v58 = vpop.f32.mrf.mxu1 }
  0xd2   : > { %v5477_v8 = vpop.f32.mrf.mxu0  ;;  %v2438_v59 = vsel %vm2407_vm2, %v5475_v58, -inf }
  0xd3   : > { %v2432_v60 = vsel %vm2407_vm2, %v5477_v8, -inf  ;;  %2439 = vmax.xlane.f32.xlu1 %v2438_v59  ;;  %v1455_v59 = vsel %vm310_vm0, %v1454_v45, %v182_v30 }
  0xd4   : > { %2433 = vmax.xlane.f32.xlu2 %v2432_v60  ;;  %v1461_v60 = vsel %vm310_vm0, %v1460_v32, %v190_v40 }
  0xd6   : > { %v5483_v9 = vpop.f32.mrf.mxu2 }
  0xd7   : > { %v2444_v56 = vsel %vm2407_vm2, %v5483_v9, -inf  ;;  %v5487_v57 = vpop.f32.mrf.mxu3 }
  0xd8   : > { %2445 = vmax.xlane.f32.xlu0 %v2444_v56  ;;  %v2450_v0 = vsel %vm2407_vm2, %v5487_v57, -inf  ;;  %v1467_v56 = vsel %vm310_vm0, %v1466_v46, %v214_v20 }
  0xdc   : > { %2451 = vmax.xlane.f32.xlu2 %v2450_v0  ;;  %v126_v0 = vld [vmem:[%s4832_s11 + $0x48] sm:$0xf] }
  0xde   : > { %v5491_v1 = vpop.f32.mrf.mxu0  ;;  %v5497_v61 = vpop.f32.mrf.mxu1 }
  0xdf   : > { %v2435_v4 = vsel %vm2407_vm2, %v5491_v1, -inf  ;;  %v2441_v22 = vsel %vm2407_vm2, %v5497_v61, -inf  ;;  %v5503_v15 = vpop.f32.mrf.mxu3 }
  0xe0   : > { %2436 = vmax.xlane.f32.xlu0 %v2435_v4  ;;  %v2453_v7 = vsel %vm2407_vm2, %v5503_v15, -inf  ;;  %v150_v4 = vld [vmem:[%s4832_s11 + $0x108] sm:$0xf] }
  0xe1   : > { %v5493_v62 = vpop.f32.mrf.mxu2 }
  0xe2   : > { %v2447_v3 = vsel %vm2407_vm2, %v5493_v62, -inf }
  0xe3   : > { %2448 = vmax.xlane.f32.xlu1 %v2447_v3 }
  0xe4   : > { %2442 = vmax.xlane.f32.xlu2 %v2441_v22  ;;  %v1459_v22 = vperm.slane %v1455_v59, %v4852_v16 }
  0xe8   : > { %2454 = vmax.xlane.f32.xlu0 %v2453_v7  ;;  %v1465_v7 = vperm.slane %v1461_v60, %v4852_v16 }
  0xea   : > { %v1478_v30 = vrot.slane %v1465_v7, 4 }
  0xec   : > { %v1479_v41 = vsel %vm310_vm0, %v1478_v30, %v1459_v22 }
  0xf2   : > { %v5507_v10 = vpop.f32.mrf.mxu1 }
  0xf3   : > { %v5509_v37 = vpop.f32.mrf.mxu0  ;;  %v2462_v11 = vsel %vm2407_vm2, %v5507_v10, -inf }
  0xf4   : > { %v2456_v28 = vsel %vm2407_vm2, %v5509_v37, -inf  ;;  %2463 = vmax.xlane.f32.xlu0 %v2462_v11  ;;  %v1471_v11 = vperm.slane %v1467_v56, %v4852_v16 }
  0xf5   : > { %2457 = vmax.xlane.f32.xlu1 %v2456_v28  ;;  %v166_v28 = vld [vmem:[%s4832_s11 + $0x188] sm:$0xf] }
  0xf6   : > { %v1492_v53 = vrot.slane %v1471_v11, 4 }
  0xf8   : > { %v5515_v63 = vpop.f32.mrf.mxu3 }
  0xf9   : > { %v2474_v19 = vsel %vm2407_vm2, %v5515_v63, -inf }
  0xfa   : > { %v5519_v14 = vpop.f32.mrf.mxu2 }
  0xfb   : > { %v2468_v44 = vsel %vm2407_vm2, %v5519_v14, -inf }
  0xfc   : > { %2469 = vmax.xlane.f32.xlu2 %v2468_v44  ;;  %2475 = vmax.xlane.f32.xlu0 %v2474_v19  ;;  %v174_v19 = vld [vmem:[%s4832_s11 + $0x1c8] sm:$0xf]  ;;  %v1473_v44 = vsel %vm310_vm0, %v1472_v39, %v222_v29  ;;  %v1485_v39 = vperm.slane %v1479_v41, %v4854_v17 }
 0x100   : > { %v5523_v5 = vpop.f32.mrf.mxu1 }
 0x101   : > { %v2465_v6 = vsel %vm2407_vm2, %v5523_v5, -inf }
 0x102   : > { %2466 = vmax.xlane.f32.xlu1 %v2465_v6  ;;  %v5527_v36 = vpop.f32.mrf.mxu0  ;;  %v1398_v6 = vrot.slane %v134_v51, 4 }
 0x103   : > { %v2459_v27 = vsel %vm2407_vm2, %v5527_v36, -inf }
 0x104   : > { %2460 = vmax.xlane.f32.xlu2 %v2459_v27  ;;  %v1404_v27 = vrot.slane %v142_v52, 4  ;;  %v1399_v40 = vsel %vm310_vm0, %v1398_v6, %v118_v48 }
 0x105   : > { %v1403_v45 = vperm.slane %v1399_v40, %v4852_v16 }
 0x106   : > { %v1405_v24 = vsel %vm310_vm0, %v1404_v27, %v126_v0 }
 0x107   : > { %v5533_v21 = vpop.f32.mrf.mxu3  ;;  %v1409_v32 = vperm.slane %v1405_v24, %v4852_v16  ;;  %v1424_v24 = vrot.slane %v1403_v45, 4 }
 0x108   : > { %v5531_v49 = vpop.f32.mrf.mxu2  ;;  %v2477_v2 = vsel %vm2407_vm2, %v5533_v21, -inf }
 0x109   : > { %v2471_v18 = vsel %vm2407_vm2, %v5531_v49, -inf  ;;  %v1422_v56 = vrot.slane %v1409_v32, 4 }
 0x10a   : > { %2472 = vmax.xlane.f32.xlu1 %v2471_v18  ;;  %v1410_v18 = vrot.slane %v166_v28, 4 }
 0x10b   : > { %v1423_v6 = vsel %vm310_vm0, %v1422_v56, %v1403_v45 }
 0x10c   : > { %2478 = vmax.xlane.f32.xlu2 %v2477_v2  ;;  %v1477_v2 = vperm.slane %v1473_v44, %v4852_v16  ;;  %v1411_v20 = vsel %vm310_vm0, %v1410_v18, %v150_v4 }
 0x10d   : > { %v1415_v51 = vperm.slane %v1411_v20, %v4852_v16 }
 0x10e   : > { %v1490_v29 = vrot.slane %v1477_v2, 4 }
 0x10f   : > { %v1436_v20 = vrot.slane %v1415_v51, 4 }
 0x110   : > { %v1491_v59 = vsel %vm310_vm0, %v1490_v29, %v1471_v11 }
 0x117   : > { %v5539_v13 = vpop.f32.mrf.mxu0  ;;  %v5541_v25 = vpop.f32.mrf.mxu1 }
 0x118   : > { %v2480_v34 = vsel %vm2407_vm2, %v5539_v13, -inf  ;;  %v2486_v35 = vsel %vm2407_vm2, %v5541_v25, -inf }
 0x119   : > { %2481 = vmax.xlane.f32.xlu0 %v2480_v34  ;;  %2487 = vmax.xlane.f32.xlu2 %v2486_v35  ;;  %v1416_v34 = vrot.slane %v174_v19, 4  ;;  %v1480_v35 = vrot.slane %v1459_v22, 4  ;;  %v1504_v22 = vrot.slane %v1485_v39, 4  ;;  %v1493_v19 = vsel %vm310_vm0, %v1477_v2, %v1492_v53 }
 0x11a   : > { %v5555_v47 = vpop.f32.mrf.mxu3 }
 0x11b   : > { %v2498_v54 = vsel %vm2407_vm2, %v5555_v47, -inf  ;;  %v1417_v48 = vsel %vm310_vm0, %v1416_v34, %v158_v31  ;;  %v1481_v52 = vsel %vm310_vm0, %v1465_v7, %v1480_v35  ;;  %v1429_v31 = vperm.slane %v1423_v6, %v4854_v17 }
 0x11c   : > { %v5562_v55 = vpop.f32.mrf.mxu2  ;;  %2499 = vmax.xlane.f32.xlu1 %v2498_v54  ;;  %v1421_v60 = vperm.slane %v1417_v48, %v4852_v16  ;;  %v1489_v28 = vperm.slane %v1481_v52, %v4854_v17  ;;  %v1501_v35 = vperm.slane %v1493_v19, %v4854_v17 }
 0x11d   : > { %v2492_v3 = vsel %vm2407_vm2, %v5562_v55, -inf }
 0x11e   : > { %v1434_v34 = vrot.slane %v1421_v60, 4  ;;  %v1506_v29 = vrot.slane %v1501_v35, 4 }
 0x120   : > { %v1435_v41 = vsel %vm310_vm0, %v1434_v34, %v1415_v51 }
 0x121   : > { %2493 = vmax.xlane.f32.xlu0 %v2492_v3  ;;  %v2416_v46 = vpop.xlane.xlu1 %2415  ;;  %v1497_v3 = vperm.slane %v1491_v59, %v4854_v17  ;;  %v1425_v59 = vsel %vm310_vm0, %v1409_v32, %v1424_v24 }
 0x122   : > { %v2506_v54 = vsub.f32 %v5443_v38, %v2416_v46  ;;  %v1508_v46 = vrot.slane %v1489_v28, 4  ;;  %v1433_v51 = vperm.slane %v1425_v59, %v4854_v17 }
 0x123   : > { %v2410_v4 = vpop.xlane.xlu0 %2409  ;;  %v1502_v18 = vrot.slane %v1497_v3, 4  ;;  %v1505_v30 = vsel %vm310_vm0, %v1497_v3, %v1504_v22 }
 0x124   : > { %v5592_v0 = vpop.f32.mrf.mxu1  ;;  %v2540_v7 = vmul.f32 1.442695, %v2506_v54  ;;  %v2504_v11 = vsub.f32 %v5447_v23, %v2410_v4  ;;  %2873 = vmatpush.msra.mxu1 %v1505_v30  ;;  %v1448_v23 = vrot.slane %v1429_v31, 4  ;;  %v1441_v54 = vperm.slane %v1435_v41, %v4854_v17 }
 0x125   : > { %v5597_v44 = vpop.f32.mrf.mxu0  ;;  %v2489_v38 = vsel %vm2407_vm2, %v5592_v0, -inf  ;;  %v1503_v40 = vsel %vm310_vm0, %v1502_v18, %v1485_v39  ;;  %v1437_v39 = vsel %vm310_vm0, %v1421_v60, %v1436_v20  ;;  %v1507_v4 = vsel %vm310_vm0, %v1506_v29, %v1489_v28 }
 0x126   : > { %v2483_v27 = vsel %vm2407_vm2, %v5597_v44, -inf  ;;  %4667 = vpow2.f32 %v2540_v7  ;;  %v2536_v2 = vmul.f32 1.442695, %v2504_v11  ;;  %2844 = vmatpush.msra.mxu0 %v1503_v40  ;;  %v1445_v3 = vperm.slane %v1437_v39, %v4854_v17  ;;  %2902 = vmatpush.msra.mxu2 %v1507_v4 }
 0x127   : > { %2484 = vmax.xlane.f32.xlu1 %v2483_v27  ;;  %v1446_v32 = vrot.slane %v1441_v54, 4  ;;  %v1449_v60 = vsel %vm310_vm0, %v1441_v54, %v1448_v23  ;;  %v1509_v6 = vsel %vm310_vm0, %v1501_v35, %v1508_v46  ;;  %v1452_v27 = vrot.slane %v1433_v51, 4 }
 0x128   : > { %4669 = vpow2.f32 %v2536_v2  ;;  %v2422_v53 = vpop.xlane.xlu2 %2421  ;;  %2874 = vmatpush.msra.mxu1 %v1449_v60  ;;  %v1450_v28 = vrot.slane %v1445_v3, 4  ;;  %2931 = vmatpush.msra.mxu3 %v1509_v6 }
 0x129   : > { %v5610_v48 = vpop.f32.mrf.mxu3  ;;  %v2508_v52 = vsub.f32 %v5453_v26, %v2422_v53  ;;  %v1447_v18 = vsel %vm310_vm0, %v1446_v32, %v1429_v31  ;;  %v1453_v40 = vsel %vm310_vm0, %v1445_v3, %v1452_v27  ;;  %v200_v3 = vld [vmem:[%s4832_s11 + $0x298] sm:$0xf] }
 0x12a   : > { %v5616_v56 = vpop.f32.mrf.mxu2  ;;  %v2501_v45 = vsel %vm2407_vm2, %v5610_v48, -inf  ;;  %2845 = vmatpush.msra.mxu0 %v1447_v18  ;;  %v1451_v34 = vsel %vm310_vm0, %v1450_v28, %v1433_v51  ;;  %2932 = vmatpush.msra.mxu3 %v1453_v40  ;;  %v192_v51 = vld [vmem:[%s4832_s11 + $0x258] sm:$0xf]  ;;  %v1566_v60 = vrot.slane %v200_v3, 4 }
 0x12b   : > { %v2495_v26 = vsel %vm2407_vm2, %v5616_v56, -inf  ;;  %2502 = vmax.xlane.f32.xlu0 %v2501_v45  ;;  %v2544_v22 = vmul.f32 1.442695, %v2508_v52  ;;  %v2428_v19 = vpop.xlane.xlu0 %2427  ;;  %2903 = vmatpush.msra.mxu2 %v1451_v34  ;;  %v184_v45 = vld [vmem:[%s4832_s11 + $0x218] sm:$0xf] }
 0x12c   : > { %v4668_v7 = vpop.eup %4667  ;;  %2496 = vmax.xlane.f32.xlu2 %v2495_v26  ;;  %v2510_v11 = vsub.f32 %v5451_v42, %v2428_v19  ;;  %v208_v26 = vld [vmem:[%s4832_s11 + $0x2d8] sm:$0xf]  ;;  %v1567_v6 = vsel %vm310_vm0, %v1566_v60, %v184_v45 }
 0x12d   : > { %4671 = vpow2.f32 %v2544_v22  ;;  %4620 = vmatmul.msk.f32.vlgmr.msra.gmra.mxu1 %vm2407_vm2, %v4668_v7  ;;  %v2606_v24 = vsel %vm2407_vm2, %v4668_v7, 0.0  ;;  %v240_v32 = vld [vmem:[%s4832_s11 + $0x3d8] sm:$0xf]  ;;  %v1572_v7 = vrot.slane %v208_v26, 4 }
 0x12e   : > { %v4670_v30 = vpop.eup %4669  ;;  %v2548_v2 = vmul.f32 1.442695, %v2510_v11  ;;  %v1584_v28 = vrot.slane %v240_v32, 4  ;;  %v136_v27 = vld [vmem:[%s4832_s11 + $0x98] sm:$0xf] }
 0x12f   : > { %2490 = vmax.xlane.f32.xlu1 %v2489_v38  ;;  %4618 = vmatmul.msk.f32.vlgmr.msra.gmra.mxu0 %vm2407_vm2, %v4670_v30  ;;  %v2600_v35 = vsel %vm2407_vm2, %v4670_v30, 0.0  ;;  %v144_v18 = vld [vmem:[%s4832_s11 + $0xd8] sm:$0xf]  ;;  %v1571_v30 = vperm.slane %v1567_v6, %v4852_v16 }
 0x130   : > { %4673 = vpow2.f32 %v2548_v2  ;;  %v1573_v2 = vsel %vm310_vm0, %v1572_v7, %v192_v51  ;;  %v152_v60 = vld [vmem:[%s4832_s11 + $0x118] sm:$0xf] }
 0x132   : > { %v2419_v42 = vpop.xlane.xlu1 %2418 }
 0x133   : > { %v2507_v31 = vsub.f32 %v5459_v50, %v2419_v42  ;;  %v4672_v23 = vpop.eup %4671  ;;  %v168_v42 = vld [vmem:[%s4832_s11 + $0x198] sm:$0xf] }
 0x134   : > { %2601 = vadd.xlane.f32.xlu2 %v2600_v35  ;;  %4622 = vmatmul.msk.f32.vlgmr.msra.gmra.mxu2 %vm2407_vm2, %v4672_v23  ;;  %v2612_v20 = vsel %vm2407_vm2, %v4672_v23, 0.0  ;;  %v1577_v35 = vperm.slane %v1573_v2, %v4852_v16  ;;  %v160_v2 = vld [vmem:[%s4832_s11 + $0x158] sm:$0xf] }
 0x135   : > { %v2542_v38 = vmul.f32 1.442695, %v2507_v31  ;;  %2613 = vadd.xlane.f32.xlu0 %v2612_v20  ;;  %v1510_v20 = vrot.slane %v136_v27, 4 }
 0x136   : > { %v4674_v53 = vpop.eup %4673 }
 0x137   : > { %4675 = vpow2.f32 %v2542_v38  ;;  %2607 = vadd.xlane.f32.xlu1 %v2606_v24  ;;  %v2413_v41 = vpop.xlane.xlu0 %2412  ;;  %4624 = vmatmul.msk.f32.vlgmr.msra.gmra.mxu3 %vm2407_vm2, %v4674_v53  ;;  %v2618_v54 = vsel %vm2407_vm2, %v4674_v53, 0.0  ;;  %v120_v24 = vld [vmem:[%s4832_s11 + $0x18] sm:$0xf] }
 0x138   : > { %v2425_v50 = vpop.xlane.xlu2 %2424  ;;  %v2505_v29 = vsub.f32 %v5465_v33, %v2413_v41  ;;  %v216_v33 = vld [vmem:[%s4832_s11 + $0x318] sm:$0xf] }
 0x139   : > { %v2509_v46 = vsub.f32 %v5467_v43, %v2425_v50  ;;  %v224_v43 = vld [vmem:[%s4832_s11 + $0x358] sm:$0xf]  ;;  %v1592_v50 = vrot.slane %v1571_v30, 4 }
 0x13a   : > { %v2431_v52 = vpop.xlane.xlu1 %2430  ;;  %v2538_v39 = vmul.f32 1.442695, %v2505_v29  ;;  %v1585_v40 = vsel %vm310_vm0, %v1584_v28, %v224_v43  ;;  %v128_v38 = vld [vmem:[%s4832_s11 + $0x58] sm:$0xf] }
 0x13b   : > { %v2511_v59 = vsub.f32 %v5463_v12, %v2431_v52  ;;  %v2546_v4 = vmul.f32 1.442695, %v2509_v46  ;;  %v232_v12 = vld [vmem:[%s4832_s11 + $0x398] sm:$0xf]  ;;  %v1589_v23 = vperm.slane %v1585_v40, %v4852_v16  ;;  %v1516_v46 = vrot.slane %v144_v18, 4 }
 0x13c   : > { %4677 = vpow2.f32 %v2538_v39  ;;  %2619 = vadd.xlane.f32.xlu2 %v2618_v54  ;;  %v1578_v11 = vrot.slane %v232_v12, 4  ;;  %v176_v29 = vld [vmem:[%s4832_s11 + $0x1d8] sm:$0xf]  ;;  %v1522_v52 = vrot.slane %v168_v42, 4  ;;  %v1590_v39 = vrot.slane %v1577_v35, 4 }
 0x13d   : > { %v4676_v22 = vpop.eup %4675  ;;  %v2550_v19 = vmul.f32 1.442695, %v2511_v59  ;;  %4679 = vpow2.f32 %v2546_v4  ;;  %v1602_v45 = vrot.slane %v1589_v23, 4  ;;  %v1593_v26 = vsel %vm310_vm0, %v1577_v35, %v1592_v50 }
 0x13e   : > { %4621 = vmatmul.msk.f32.gmra.mxu1 %vm2407_vm2, %v4676_v22  ;;  %v1579_v34 = vsel %vm310_vm0, %v1578_v11, %v216_v33  ;;  %v2609_v41 = vsel %vm2407_vm2, %v4676_v22, 0.0  ;;  %v1511_v22 = vsel %vm310_vm0, %v1510_v20, %v120_v24  ;;  %v1591_v43 = vsel %vm310_vm0, %v1590_v39, %v1571_v30 }
 0x13f   : > { %4681 = vpow2.f32 %v2550_v19  ;;  %v1583_v31 = vperm.slane %v1579_v34, %v4852_v16  ;;  %v1517_v19 = vsel %vm310_vm0, %v1516_v46, %v128_v38  ;;  %v1601_v32 = vperm.slane %v1593_v26, %v4854_v17 }
 0x140   : > { %v1528_v7 = vrot.slane %v176_v29, 4  ;;  %v1597_v6 = vperm.slane %v1591_v43, %v4854_v17  ;;  %v1515_v40 = vperm.slane %v1511_v22, %v4852_v16  ;;  %v1521_v42 = vperm.slane %v1517_v19, %v4852_v16 }
 0x141   : > { %v1604_v4 = vrot.slane %v1583_v31, 4  ;;  %v1603_v12 = vsel %vm310_vm0, %v1602_v45, %v1583_v31 }
 0x142   : > { %v4678_v53 = vpop.eup %4677  ;;  %v1609_v27 = vperm.slane %v1603_v12, %v4854_v17  ;;  %v1616_v24 = vrot.slane %v1597_v6, 4 }
 0x143   : > { %v4680_v54 = vpop.eup %4679  ;;  %4619 = vmatmul.msk.f32.gmra.mxu0 %vm2407_vm2, %v4678_v53  ;;  %v2603_v59 = vsel %vm2407_vm2, %v4678_v53, 0.0  ;;  %v1605_v18 = vsel %vm310_vm0, %v1589_v23, %v1604_v4  ;;  %v1529_v23 = vsel %vm310_vm0, %v1528_v7, %v160_v2  ;;  %v1620_v4 = vrot.slane %v1601_v32, 4 }
 0x144   : > { %4623 = vmatmul.msk.f32.gmra.mxu2 %vm2407_vm2, %v4680_v54  ;;  %v2615_v3 = vsel %vm2407_vm2, %v4680_v54, 0.0  ;;  %2610 = vadd.xlane.f32.xlu2 %v2609_v41  ;;  %v1613_v30 = vperm.slane %v1605_v18, %v4854_v17  ;;  %v1614_v31 = vrot.slane %v1609_v27, 4  ;;  %v1617_v41 = vsel %vm310_vm0, %v1609_v27, %v1616_v24 }
 0x145   : > { %v4682_v51 = vpop.eup %4681  ;;  %2616 = vadd.xlane.f32.xlu1 %v2615_v3  ;;  %2604 = vadd.xlane.f32.xlu0 %v2603_v59  ;;  %v1533_v50 = vperm.slane %v1529_v23, %v4852_v16  ;;  %v1536_v54 = vrot.slane %v1515_v40, 4 }
 0x146   : > { %v2440_v33 = vpop.xlane.xlu1 %2439  ;;  %4625 = vmatmul.msk.f32.gmra.mxu3 %vm2407_vm2, %v4682_v51  ;;  %v1618_v20 = vrot.slane %v1613_v30, 4  ;;  %2989 = vmatpush.msrb.mxu1 %v1617_v41  ;;  %v2621_v22 = vsel %vm2407_vm2, %v4682_v51, 0.0 }
 0x147   : > { %v2434_v11 = vpop.xlane.xlu2 %2433  ;;  %v2514_v28 = vsub.f32 %v5475_v58, %v2440_v33  ;;  %v1523_v58 = vsel %vm310_vm0, %v1522_v52, %v152_v60  ;;  %v1534_v52 = vrot.slane %v1521_v42, 4  ;;  %v1546_v39 = vrot.slane %v1533_v50, 4 }
 0x148   : > { %v2512_v34 = vsub.f32 %v5477_v8, %v2434_v11  ;;  %v1527_v53 = vperm.slane %v1523_v58, %v4852_v16  ;;  %v1615_v8 = vsel %vm310_vm0, %v1614_v31, %v1597_v6  ;;  %v1619_v46 = vsel %vm310_vm0, %v1618_v20, %v1601_v32  ;;  %v242_v58 = vld [vmem:[%s4832_s11 + $0x3e8] sm:$0xf] }
 0x149   : > { %v2556_v35 = vmul.f32 1.442695, %v2514_v28  ;;  %2960 = vmatpush.msrb.mxu0 %v1615_v8  ;;  %3018 = vmatpush.msrb.mxu2 %v1619_v46  ;;  %v1535_v3 = vsel %vm310_vm0, %v1534_v52, %v1515_v40  ;;  %v1537_v26 = vsel %vm310_vm0, %v1521_v42, %v1536_v54  ;;  %v1621_v11 = vsel %vm310_vm0, %v1613_v30, %v1620_v4  ;;  %v226_v46 = vld [vmem:[%s4832_s11 + $0x368] sm:$0xf] }
 0x14a   : > { %v2552_v38 = vmul.f32 1.442695, %v2512_v34  ;;  %v1548_v45 = vrot.slane %v1527_v53, 4  ;;  %v1541_v43 = vperm.slane %v1535_v3, %v4854_v17  ;;  %v1547_v12 = vsel %vm310_vm0, %v1546_v39, %v1527_v53  ;;  %3047 = vmatpush.msrb.mxu3 %v1621_v11  ;;  %v202_v4 = vld [vmem:[%s4832_s11 + $0x2a8] sm:$0xf] }
 0x14b   : > { %4683 = vpow2.f32 %v2556_v35  ;;  %v2446_v29 = vpop.xlane.xlu0 %2445  ;;  %v1545_v60 = vperm.slane %v1537_v26, %v4854_v17  ;;  %v1553_v7 = vperm.slane %v1547_v12, %v4854_v17  ;;  %v1696_v23 = vrot.slane %v242_v58, 4  ;;  %v154_v58 = vld [vmem:[%s4832_s11 + $0x128] sm:$0xf] }
 0x14c   : > { %4685 = vpow2.f32 %v2552_v38  ;;  %v2516_v59 = vsub.f32 %v5483_v9, %v2446_v29  ;;  %v1549_v32 = vsel %vm310_vm0, %v1533_v50, %v1548_v45  ;;  %v1560_v51 = vrot.slane %v1541_v43, 4  ;;  %v210_v29 = vld [vmem:[%s4832_s11 + $0x2e8] sm:$0xf] }
 0x14d   : > { %2622 = vadd.xlane.f32.xlu0 %v2621_v22  ;;  %v1557_v6 = vperm.slane %v1549_v32, %v4854_v17  ;;  %v1564_v27 = vrot.slane %v1545_v60, 4  ;;  %v1558_v34 = vrot.slane %v1553_v7, 4  ;;  %v1684_v39 = vrot.slane %v210_v29, 4  ;;  %v122_v32 = vld [vmem:[%s4832_s11 + $0x28] sm:$0xf] }
 0x14e   : > { %v2560_v19 = vmul.f32 1.442695, %v2516_v59  ;;  %v1561_v40 = vsel %vm310_vm0, %v1553_v7, %v1560_v51  ;;  %v234_v59 = vld [vmem:[%s4832_s11 + $0x3a8] sm:$0xf]  ;;  %v1697_v3 = vsel %vm310_vm0, %v1696_v23, %v226_v46 }
 0x14f   : > { %v2452_v33 = vpop.xlane.xlu2 %2451  ;;  %v1559_v35 = vsel %vm310_vm0, %v1558_v34, %v1541_v43  ;;  %2990 = vmatpush.msrb.mxu1 %v1561_v40  ;;  %v1565_v30 = vsel %vm310_vm0, %v1557_v6, %v1564_v27  ;;  %v178_v43 = vld [vmem:[%s4832_s11 + $0x1e8] sm:$0xf]  ;;  %v1690_v11 = vrot.slane %v234_v59, 4 }
 0x150   : > { %v2518_v9 = vsub.f32 %v5487_v57, %v2452_v33  ;;  %4687 = vpow2.f32 %v2560_v19  ;;  %v1562_v57 = vrot.slane %v1557_v6, 4  ;;  %2961 = vmatpush.msrb.mxu0 %v1559_v35  ;;  %3048 = vmatpush.msrb.mxu3 %v1565_v30  ;;  %v186_v19 = vld [vmem:[%s4832_s11 + $0x228] sm:$0xf]  ;;  %v1640_v23 = vrot.slane %v178_v43, 4 }
 0x151   : > { %v4684_v28 = vpop.eup %4683  ;;  %v146_v51 = vld [vmem:[%s4832_s11 + $0xe8] sm:$0xf] }
 0x152   : > { %v4686_v18 = vpop.eup %4685  ;;  %v2564_v2 = vmul.f32 1.442695, %v2518_v9  ;;  %v1563_v24 = vsel %vm310_vm0, %v1562_v57, %v1545_v60  ;;  %4628 = vmatmul.msk.f32.vlgmr.msrb.gmra.mxu1 %vm2407_vm2, %v4684_v28  ;;  %v2630_v53 = vsel %vm2407_vm2, %v4684_v28, 0.0  ;;  %v218_v60 = vld [vmem:[%s4832_s11 + $0x328] sm:$0xf]  ;;  %v1678_v9 = vrot.slane %v202_v4, 4 }
 0x153   : > { %v2624_v42 = vsel %vm2407_vm2, %v4686_v18, 0.0  ;;  %v2437_v31 = vpop.xlane.xlu0 %2436  ;;  %3019 = vmatpush.msrb.mxu2 %v1563_v24  ;;  %4626 = vmatmul.msk.f32.vlgmr.msrb.gmra.mxu0 %vm2407_vm2, %v4686_v18  ;;  %v138_v28 = vld [vmem:[%s4832_s11 + $0xa8] sm:$0xf]  ;;  %v1691_v35 = vsel %vm310_vm0, %v1690_v11, %v218_v60 }
 0x154   : > { %4689 = vpow2.f32 %v2564_v2  ;;  %2625 = vadd.xlane.f32.xlu1 %v2624_v42  ;;  %v2513_v20 = vsub.f32 %v5491_v1, %v2437_v31  ;;  %v1679_v27 = vsel %vm310_vm0, %v1678_v9, %v186_v19  ;;  %v130_v34 = vld [vmem:[%s4832_s11 + $0x68] sm:$0xf]  ;;  %v1622_v40 = vrot.slane %v138_v28, 4 }
 0x155   : > { %2631 = vadd.xlane.f32.xlu0 %v2630_v53  ;;  %v1683_v42 = vperm.slane %v1679_v27, %v4852_v16  ;;  %v170_v30 = vld [vmem:[%s4832_s11 + $0x1a8] sm:$0xf]  ;;  %v1628_v31 = vrot.slane %v146_v51, 4  ;;  %v1695_v24 = vperm.slane %v1691_v35, %v4852_v16 }
 0x156   : > { %v2449_v38 = vpop.xlane.xlu1 %2448  ;;  %v4688_v8 = vpop.eup %4687  ;;  %v2554_v52 = vmul.f32 1.442695, %v2513_v20  ;;  %v1623_v20 = vsel %vm310_vm0, %v1622_v40, %v122_v32  ;;  %v1634_v53 = vrot.slane %v170_v30, 4 }
 0x157   : > { %v2517_v41 = vsub.f32 %v5493_v62, %v2449_v38  ;;  %v2443_v50 = vpop.xlane.xlu2 %2442  ;;  %4630 = vmatmul.msk.f32.vlgmr.msrb.gmra.mxu2 %vm2407_vm2, %v4688_v8  ;;  %v2636_v1 = vsel %vm2407_vm2, %v4688_v8, 0.0  ;;  %v194_v62 = vld [vmem:[%s4832_s11 + $0x268] sm:$0xf]  ;;  %v1629_v29 = vsel %vm310_vm0, %v1628_v31, %v130_v34  ;;  %v1704_v43 = vrot.slane %v1683_v42, 4 }
 0x158   : > { %v2515_v54 = vsub.f32 %v5497_v61, %v2443_v50  ;;  %2637 = vadd.xlane.f32.xlu2 %v2636_v1  ;;  %4691 = vpow2.f32 %v2554_v52  ;;  %v1685_v33 = vsel %vm310_vm0, %v1684_v39, %v194_v62  ;;  %v5730_v61 = vperm.slane %v1697_v3, %v4852_v16  ;;  %v162_v38 = vld [vmem:[%s4832_s11 + $0x168] sm:$0xf] }
 0x159   : > { %v2562_v45 = vmul.f32 1.442695, %v2517_v41  ;;  %v1689_v7 = vperm.slane %v1685_v33, %v4852_v16  ;;  %v1633_v59 = vperm.slane %v1629_v29, %v4852_v16  ;;  %v1635_v62 = vsel %vm310_vm0, %v1634_v53, %v154_v58 }
 0x15a   : > { %v4690_v26 = vpop.eup %4689  ;;  %v2558_v22 = vmul.f32 1.442695, %v2515_v54  ;;  %v1714_v2 = vrot.slane %v5730_v61, 4  ;;  %v1641_v4 = vsel %vm310_vm0, %v1640_v23, %v162_v38  ;;  %v1639_v3 = vperm.slane %v1635_v62, %v4852_v16 }
 0x15b   : > { %4693 = vpow2.f32 %v2562_v45  ;;  %4632 = vmatmul.msk.f32.vlgmr.msrb.gmra.mxu3 %vm2407_vm2, %v4690_v26  ;;  %v2642_v12 = vsel %vm2407_vm2, %v4690_v26, 0.0  ;;  %v2455_v6 = vpop.xlane.xlu0 %2454  ;;  %v1702_v18 = vrot.slane %v1689_v7, 4  ;;  %v1645_v26 = vperm.slane %v1641_v4, %v4852_v16 }
 0x15c   : > { %4695 = vpow2.f32 %v2558_v22  ;;  %2643 = vadd.xlane.f32.xlu1 %v2642_v12  ;;  %v2519_v57 = vsub.f32 %v5503_v15, %v2455_v6  ;;  %v1627_v15 = vperm.slane %v1623_v20, %v4852_v16  ;;  %v1715_v54 = vsel %vm310_vm0, %v1714_v2, %v1695_v24 }
 0x15d   : > { %v1703_v50 = vsel %vm310_vm0, %v1702_v18, %v1683_v42  ;;  %v1721_v45 = vperm.slane %v1715_v54, %v4854_v17  ;;  %v1646_v22 = vrot.slane %v1633_v59, 4  ;;  %v1716_v12 = vrot.slane %v1695_v24, 4 }
 0x15e   : > { %v4692_v8 = vpop.eup %4691  ;;  %v2566_v41 = vmul.f32 1.442695, %v2519_v57  ;;  %v1709_v1 = vperm.slane %v1703_v50, %v4854_v17  ;;  %v1658_v32 = vrot.slane %v1645_v26, 4  ;;  %v1648_v28 = vrot.slane %v1627_v15, 4 }
 0x15f   : > { %4627 = vmatmul.msk.f32.gmra.mxu0 %vm2407_vm2, %v4692_v8  ;;  %v2627_v52 = vsel %vm2407_vm2, %v4692_v8, 0.0  ;;  %v1726_v33 = vrot.slane %v1721_v45, 4  ;;  %v1647_v9 = vsel %vm310_vm0, %v1646_v22, %v1627_v15  ;;  %v1705_v27 = vsel %vm310_vm0, %v1689_v7, %v1704_v43  ;;  %v212_v22 = vld [vmem:[%s4832_s11 + $0x2f8] sm:$0xf] }
 0x160   : > { %4697 = vpow2.f32 %v2566_v41  ;;  %2628 = vadd.xlane.f32.xlu2 %v2627_v52  ;;  %v1728_v11 = vrot.slane %v1709_v1, 4  ;;  %v1653_v6 = vperm.slane %v1647_v9, %v4854_v17  ;;  %v1717_v18 = vsel %vm310_vm0, %v5730_v61, %v1716_v12 }
 0x161   : > { %v4694_v46 = vpop.eup %4693  ;;  %v1727_v51 = vsel %vm310_vm0, %v1726_v33, %v1709_v1  ;;  %v1659_v34 = vsel %vm310_vm0, %v1658_v32, %v1639_v3  ;;  %v1713_v40 = vperm.slane %v1705_v27, %v4854_v17  ;;  %v1725_v57 = vperm.slane %v1717_v18, %v4854_v17  ;;  %v236_v33 = vld [vmem:[%s4832_s11 + $0x3b8] sm:$0xf] }
 0x162   : > { %v4696_v39 = vpop.eup %4695  ;;  %4631 = vmatmul.msk.f32.gmra.mxu2 %vm2407_vm2, %v4694_v46  ;;  %v2639_v60 = vsel %vm2407_vm2, %v4694_v46, 0.0  ;;  %3076 = vmatpush.msra.mxu0 %v1727_v51  ;;  %v1729_v42 = vsel %vm310_vm0, %v1721_v45, %v1728_v11  ;;  %v1665_v24 = vperm.slane %v1659_v34, %v4854_v17  ;;  %v1649_v7 = vsel %vm310_vm0, %v1633_v59, %v1648_v28  ;;  %v244_v59 = vld [vmem:[%s4832_s11 + $0x3f8] sm:$0xf] }
 0x163   : > { %4629 = vmatmul.msk.f32.gmra.mxu1 %vm2407_vm2, %v4696_v39  ;;  %v2633_v19 = vsel %vm2407_vm2, %v4696_v39, 0.0  ;;  %2640 = vadd.xlane.f32.xlu0 %v2639_v60  ;;  %v1660_v61 = vrot.slane %v1639_v3, 4  ;;  %v1730_v38 = vrot.slane %v1725_v57, 4  ;;  %v1732_v20 = vrot.slane %v1713_v40, 4  ;;  %v196_v32 = vld [vmem:[%s4832_s11 + $0x278] sm:$0xf] }
 0x164   : > { %2634 = vadd.xlane.f32.xlu1 %v2633_v19  ;;  %3105 = vmatpush.msra.mxu1 %v1729_v42  ;;  %v1670_v8 = vrot.slane %v1665_v24, 4  ;;  %v1672_v52 = vrot.slane %v1653_v6, 4  ;;  %v1808_v62 = vrot.slane %v244_v59, 4  ;;  %v228_v19 = vld [vmem:[%s4832_s11 + $0x378] sm:$0xf]  ;;  %v1796_v60 = vrot.slane %v212_v22, 4 }
 0x165   : > { %v1661_v41 = vsel %vm310_vm0, %v1645_v26, %v1660_v61  ;;  %v1731_v15 = vsel %vm310_vm0, %v1730_v38, %v1713_v40  ;;  %v1733_v29 = vsel %vm310_vm0, %v1725_v57, %v1732_v20  ;;  %v1802_v9 = vrot.slane %v236_v33, 4  ;;  %v204_v11 = vld [vmem:[%s4832_s11 + $0x2b8] sm:$0xf] }
 0x166   : > { %v4698_v35 = vpop.eup %4697  ;;  %v1671_v46 = vsel %vm310_vm0, %v1670_v8, %v1653_v6  ;;  %3134 = vmatpush.msra.mxu2 %v1731_v15  ;;  %3163 = vmatpush.msra.mxu3 %v1733_v29  ;;  %v1673_v39 = vsel %vm310_vm0, %v1665_v24, %v1672_v52  ;;  %v220_v28 = vld [vmem:[%s4832_s11 + $0x338] sm:$0xf]  ;;  %v1809_v51 = vsel %vm310_vm0, %v1808_v62, %v228_v19 }
 0x167   : > { %v2464_v2 = vpop.xlane.xlu0 %2463  ;;  %4633 = vmatmul.msk.f32.gmra.mxu3 %vm2407_vm2, %v4698_v35  ;;  %v2645_v53 = vsel %vm2407_vm2, %v4698_v35, 0.0  ;;  %3077 = vmatpush.msra.mxu0 %v1671_v46  ;;  %v1797_v34 = vsel %vm310_vm0, %v1796_v60, %v196_v32  ;;  %v188_v40 = vld [vmem:[%s4832_s11 + $0x238] sm:$0xf]  ;;  %v1803_v42 = vsel %vm310_vm0, %v1802_v9, %v220_v28  ;;  %v1813_v35 = vperm.slane %v1809_v51, %v4852_v16 }
 0x168   : > { %v2458_v30 = vpop.xlane.xlu1 %2457  ;;  %v2522_v31 = vsub.f32 %v5507_v10, %v2464_v2  ;;  %2646 = vadd.xlane.f32.xlu2 %v2645_v53  ;;  %v1657_v10 = vperm.slane %v1649_v7, %v4854_v17  ;;  %3106 = vmatpush.msra.mxu1 %v1673_v39  ;;  %v1790_v2 = vrot.slane %v204_v11, 4  ;;  %v1801_v57 = vperm.slane %v1797_v34, %v4852_v16  ;;  %v140_v7 = vld [vmem:[%s4832_s11 + $0xb8] sm:$0xf] }
 0x169   : > { %v2520_v58 = vsub.f32 %v5509_v37, %v2458_v30  ;;  %v1669_v37 = vperm.slane %v1661_v41, %v4854_v17  ;;  %v1807_v24 = vperm.slane %v1803_v42, %v4852_v16  ;;  %v148_v61 = vld [vmem:[%s4832_s11 + $0xf8] sm:$0xf]  ;;  %v1826_v53 = vrot.slane %v1813_v35, 4 }
 0x16a   : > { %v2572_v23 = vmul.f32 1.442695, %v2522_v31  ;;  %v1676_v1 = vrot.slane %v1657_v10, 4  ;;  %v1791_v31 = vsel %vm310_vm0, %v1790_v2, %v188_v40  ;;  %v1814_v20 = vrot.slane %v1801_v57, 4  ;;  %v132_v62 = vld [vmem:[%s4832_s11 + $0x78] sm:$0xf] }
 0x16b   : > { %v2568_v50 = vmul.f32 1.442695, %v2520_v58  ;;  %v1674_v54 = vrot.slane %v1669_v37, 4  ;;  %v1795_v38 = vperm.slane %v1791_v31, %v4852_v16  ;;  %v1828_v8 = vrot.slane %v1807_v24, 4  ;;  %v172_v19 = vld [vmem:[%s4832_s11 + $0x1b8] sm:$0xf] }
 0x16c   : > { %4699 = vpow2.f32 %v2572_v23  ;;  %v1677_v45 = vsel %vm310_vm0, %v1669_v37, %v1676_v1  ;;  %v1734_v41 = vrot.slane %v140_v7, 4  ;;  %v1827_v37 = vsel %vm310_vm0, %v1826_v53, %v1807_v24  ;;  %v180_v9 = vld [vmem:[%s4832_s11 + $0x1f8] sm:$0xf] }
 0x16d   : > { %4701 = vpow2.f32 %v2568_v50  ;;  %v1675_v26 = vsel %vm310_vm0, %v1674_v54, %v1657_v10  ;;  %3164 = vmatpush.msra.mxu3 %v1677_v45  ;;  %v124_v10 = vld [vmem:[%s4832_s11 + $0x38] sm:$0xf]  ;;  %v1816_v15 = vrot.slane %v1795_v38, 4  ;;  %v1815_v29 = vsel %vm310_vm0, %v1814_v20, %v1795_v38 }
 0x16e   : > { %3135 = vmatpush.msra.mxu2 %v1675_v26  ;;  %v1740_v46 = vrot.slane %v148_v61, 4  ;;  %v1829_v54 = vsel %vm310_vm0, %v1813_v35, %v1828_v8  ;;  %v1821_v59 = vperm.slane %v1815_v29, %v4854_v17  ;;  %v1833_v45 = vperm.slane %v1827_v37, %v4854_v17  ;;  %v164_v34 = vld [vmem:[%s4832_s11 + $0x178] sm:$0xf] }
 0x16f   : > { %v2470_v4 = vpop.xlane.xlu2 %2469  ;;  %v2476_v3 = vpop.xlane.xlu0 %2475  ;;  %v1837_v39 = vperm.slane %v1829_v54, %v4854_v17  ;;  %v1752_v35 = vrot.slane %v180_v9, 4 }
 0x170   : > { %v2524_v43 = vsub.f32 %v5519_v14, %v2470_v4  ;;  %v2526_v12 = vsub.f32 %v5515_v63, %v2476_v3  ;;  %v1735_v4 = vsel %vm310_vm0, %v1734_v41, %v124_v10  ;;  %v1838_v60 = vrot.slane %v1833_v45, 4 }
 0x171   : > { %v1739_v32 = vperm.slane %v1735_v4, %v4852_v16 }
 0x172   : > { %v4700_v6 = vpop.eup %4699  ;;  %v2576_v27 = vmul.f32 1.442695, %v2524_v43  ;;  %v2580_v18 = vmul.f32 1.442695, %v2526_v12  ;;  %v1842_v12 = vrot.slane %v1837_v39, 4  ;;  %v1839_v2 = vsel %vm310_vm0, %v1838_v60, %v1821_v59 }
 0x173   : > { %v4702_v14 = vpop.eup %4701  ;;  %4636 = vmatmul.msk.f32.vlgmr.msra.gmra.mxu1 %vm2407_vm2, %v4700_v6  ;;  %v2654_v63 = vsel %vm2407_vm2, %v4700_v6, 0.0  ;;  %v156_v6 = vld [vmem:[%s4832_s11 + $0x138] sm:$0xf]  ;;  %3192 = vmatpush.msrb.mxu0 %v1839_v2  ;;  %v1760_v24 = vrot.slane %v1739_v32, 4 }
 0x174   : > { %4703 = vpow2.f32 %v2576_v27  ;;  %4634 = vmatmul.msk.f32.vlgmr.msra.gmra.mxu0 %vm2407_vm2, %v4702_v14  ;;  %2655 = vadd.xlane.f32.xlu2 %v2654_v63  ;;  %v2648_v30 = vsel %vm2407_vm2, %v4702_v14, 0.0  ;;  %v1741_v14 = vsel %vm310_vm0, %v1740_v46, %v132_v62  ;;  %v1746_v63 = vrot.slane %v172_v19, 4 }
 0x175   : > { %v2467_v58 = vpop.xlane.xlu1 %2466  ;;  %4705 = vpow2.f32 %v2580_v18  ;;  %2649 = vadd.xlane.f32.xlu0 %v2648_v30  ;;  %v1745_v42 = vperm.slane %v1741_v14, %v4852_v16 }
 0x176   : > { %v2523_v23 = vsub.f32 %v5523_v5, %v2467_v58  ;;  %v1817_v5 = vsel %vm310_vm0, %v1801_v57, %v1816_v15  ;;  %v1747_v31 = vsel %vm310_vm0, %v1746_v63, %v156_v6 }
 0x177   : > { %v2461_v50 = vpop.xlane.xlu2 %2460  ;;  %v1825_v22 = vperm.slane %v1817_v5, %v4854_v17  ;;  %v1751_v38 = vperm.slane %v1747_v31, %v4852_v16  ;;  %v1758_v53 = vrot.slane %v1745_v42, 4 }
 0x178   : > { %v2574_v52 = vmul.f32 1.442695, %v2523_v23  ;;  %v2521_v1 = vsub.f32 %v5527_v36, %v2461_v50  ;;  %v1840_v36 = vrot.slane %v1821_v59, 4  ;;  %v1761_v23 = vsel %vm310_vm0, %v1745_v42, %v1760_v24 }
 0x179   : > { %v1844_v11 = vrot.slane %v1825_v22, 4  ;;  %v1843_v18 = vsel %vm310_vm0, %v1842_v12, %v1825_v22  ;;  %v1769_v41 = vperm.slane %v1761_v23, %v4854_v17  ;;  %v1772_v50 = vrot.slane %v1751_v38, 4 }
 0x17a   : > { %v4704_v3 = vpop.eup %4703  ;;  %4707 = vpow2.f32 %v2574_v52  ;;  %v2570_v26 = vmul.f32 1.442695, %v2521_v1  ;;  %v1841_v51 = vsel %vm310_vm0, %v1833_v45, %v1840_v36  ;;  %3250 = vmatpush.msrb.mxu2 %v1843_v18  ;;  %v1759_v15 = vsel %vm310_vm0, %v1758_v53, %v1739_v32 }
 0x17b   : > { %v4706_v33 = vpop.eup %4705  ;;  %4638 = vmatmul.msk.f32.vlgmr.msra.gmra.mxu2 %vm2407_vm2, %v4704_v3  ;;  %v2660_v43 = vsel %vm2407_vm2, %v4704_v3, 0.0  ;;  %3221 = vmatpush.msrb.mxu1 %v1841_v51  ;;  %v1845_v57 = vsel %vm310_vm0, %v1837_v39, %v1844_v11  ;;  %v1765_v46 = vperm.slane %v1759_v15, %v4854_v17  ;;  %v1788_v1 = vrot.slane %v1769_v41, 4 }
 0x17c   : > { %4709 = vpow2.f32 %v2570_v26  ;;  %2661 = vadd.xlane.f32.xlu1 %v2660_v43  ;;  %4640 = vmatmul.msk.f32.vlgmr.msra.gmra.mxu3 %vm2407_vm2, %v4706_v33  ;;  %v2666_v28 = vsel %vm2407_vm2, %v4706_v33, 0.0 }
 0x17d   : > { %v2473_v27 = vpop.xlane.xlu1 %2472  ;;  %2667 = vadd.xlane.f32.xlu0 %v2666_v28  ;;  %3279 = vmatpush.msrb.mxu3 %v1845_v57  ;;  %v1784_v39 = vrot.slane %v1765_v46, 4 }
 0x17e   : > { %v2525_v40 = vsub.f32 %v5531_v49, %v2473_v27  ;;  %v1753_v49 = vsel %vm310_vm0, %v1752_v35, %v164_v34 }
 0x17f   : > { %v2479_v30 = vpop.xlane.xlu2 %2478  ;;  %v1757_v20 = vperm.slane %v1753_v49, %v4852_v16 }
 0x180   : > { %v4708_v7 = vpop.eup %4707  ;;  %v2578_v61 = vmul.f32 1.442695, %v2525_v40  ;;  %v2527_v58 = vsub.f32 %v5533_v21, %v2479_v30 }
 0x181   : > { %4637 = vmatmul.msk.f32.gmra.mxu1 %vm2407_vm2, %v4708_v7  ;;  %v1770_v29 = vrot.slane %v1757_v20, 4  ;;  %v2657_v37 = vsel %vm2407_vm2, %v4708_v7, 0.0  ;;  %v1773_v52 = vsel %vm310_vm0, %v1757_v20, %v1772_v50 }
 0x182   : > { %v4710_v8 = vpop.eup %4709  ;;  %4711 = vpow2.f32 %v2578_v61  ;;  %v2582_v10 = vmul.f32 1.442695, %v2527_v58  ;;  %v1781_v59 = vperm.slane %v1773_v52, %v4854_v17 }
 0x183   : > { %4635 = vmatmul.msk.f32.gmra.mxu0 %vm2407_vm2, %v4710_v8  ;;  %v2651_v21 = vsel %vm2407_vm2, %v4710_v8, 0.0  ;;  %v1771_v54 = vsel %vm310_vm0, %v1770_v29, %v1751_v38 }
 0x184   : > { %4713 = vpow2.f32 %v2582_v10  ;;  %2652 = vadd.xlane.f32.xlu1 %v2651_v21  ;;  %v1777_v5 = vperm.slane %v1771_v54, %v4854_v17  ;;  %v1786_v45 = vrot.slane %v1781_v59, 4  ;;  %v1789_v62 = vsel %vm310_vm0, %v1781_v59, %v1788_v1 }
 0x185   : > { %2658 = vadd.xlane.f32.xlu0 %v2657_v37  ;;  %3280 = vmatpush.msrb.mxu3 %v1789_v62 }
 0x186   : > { %v1782_v3 = vrot.slane %v1777_v5, 4  ;;  %v1785_v26 = vsel %vm310_vm0, %v1777_v5, %v1784_v39  ;;  %v1787_v36 = vsel %vm310_vm0, %v1786_v45, %v1769_v41 }
 0x187   : > { %3222 = vmatpush.msrb.mxu1 %v1785_v26  ;;  %3251 = vmatpush.msrb.mxu2 %v1787_v36 }
 0x188   : > { %v4712_v4 = vpop.eup %4711  ;;  %v1783_v33 = vsel %vm310_vm0, %v1782_v3, %v1765_v46 }
 0x189   : > { %4639 = vmatmul.msk.f32.gmra.mxu2 %vm2407_vm2, %v4712_v4  ;;  %v2663_v22 = vsel %vm2407_vm2, %v4712_v4, 0.0  ;;  %3193 = vmatpush.msrb.mxu0 %v1783_v33 }
 0x18a   : > { %v4714_v19 = vpop.eup %4713  ;;  %2664 = vadd.xlane.f32.xlu2 %v2663_v22 }
 0x18b   : > { %v2669_v43 = vsel %vm2407_vm2, %v4714_v19, 0.0  ;;  %4641 = vmatmul.msk.f32.gmra.mxu3 %vm2407_vm2, %v4714_v19 }
 0x18c   : > { %v2482_v12 = vpop.xlane.xlu0 %2481  ;;  %v2488_v60 = vpop.xlane.xlu2 %2487  ;;  %2670 = vadd.xlane.f32.xlu1 %v2669_v43 }
 0x18d   : > { %v2528_v9 = vsub.f32 %v5539_v13, %v2482_v12  ;;  %v2530_v32 = vsub.f32 %v5541_v25, %v2488_v60 }
 0x18f   : > { %v2584_v11 = vmul.f32 1.442695, %v2528_v9  ;;  %v2588_v28 = vmul.f32 1.442695, %v2530_v32  ;;  %v2500_v51 = vpop.xlane.xlu1 %2499 }
 0x190   : > { %v2534_v6 = vsub.f32 %v5555_v47, %v2500_v51 }
 0x191   : > { %4715 = vpow2.f32 %v2584_v11 }
 0x192   : > { %4717 = vpow2.f32 %v2588_v28  ;;  %v2596_v27 = vmul.f32 1.442695, %v2534_v6 }
 0x194   : > { %v2494_v18 = vpop.xlane.xlu0 %2493  ;;  %4719 = vpow2.f32 %v2596_v27 }
 0x195   : > { %v2532_v2 = vsub.f32 %v5562_v55, %v2494_v18 }
 0x197   : > { %v4716_v34 = vpop.eup %4715  ;;  %v2592_v14 = vmul.f32 1.442695, %v2532_v2 }
 0x198   : > { %v4718_v63 = vpop.eup %4717  ;;  %4642 = vmatmul.msk.f32.vlgmr.msrb.gmra.mxu0 %vm2407_vm2, %v4716_v34  ;;  %v2672_v13 = vsel %vm2407_vm2, %v4716_v34, 0.0 }
 0x199   : > { %4721 = vpow2.f32 %v2592_v14  ;;  %2673 = vadd.xlane.f32.xlu2 %v2672_v13  ;;  %4644 = vmatmul.msk.f32.vlgmr.msrb.gmra.mxu1 %vm2407_vm2, %v4718_v63  ;;  %v2678_v25 = vsel %vm2407_vm2, %v4718_v63, 0.0 }
 0x19a   : > { %v2485_v47 = vpop.xlane.xlu1 %2484  ;;  %2679 = vadd.xlane.f32.xlu1 %v2678_v25  ;;  %v4720_v40 = vpop.eup %4719 }
 0x19b   : > { %v2529_v57 = vsub.f32 %v5597_v44, %v2485_v47  ;;  %4648 = vmatmul.msk.f32.vlgmr.msrb.gmra.mxu3 %vm2407_vm2, %v4720_v40  ;;  %v2690_v24 = vsel %vm2407_vm2, %v4720_v40, 0.0 }
 0x19d   : > { %v2586_v55 = vmul.f32 1.442695, %v2529_v57 }
 0x19e   : > { %v2503_v35 = vpop.xlane.xlu0 %2502 }
 0x19f   : > { %v4722_v42 = vpop.eup %4721  ;;  %4723 = vpow2.f32 %v2586_v55  ;;  %v2497_v30 = vpop.xlane.xlu2 %2496  ;;  %v2535_v31 = vsub.f32 %v5610_v48, %v2503_v35 }
 0x1a0   : > { %4646 = vmatmul.msk.f32.vlgmr.msrb.gmra.mxu2 %vm2407_vm2, %v4722_v42  ;;  %v2684_v7 = vsel %vm2407_vm2, %v4722_v42, 0.0  ;;  %v2533_v61 = vsub.f32 %v5616_v56, %v2497_v30 }
 0x1a1   : > { %2691 = vadd.xlane.f32.xlu2 %v2690_v24  ;;  %2685 = vadd.xlane.f32.xlu0 %v2684_v7  ;;  %v2598_v44 = vmul.f32 1.442695, %v2535_v31 }
 0x1a2   : > { %v2491_v58 = vpop.xlane.xlu1 %2490  ;;  %v2594_v38 = vmul.f32 1.442695, %v2533_v61 }
 0x1a3   : > { %v2531_v49 = vsub.f32 %v5592_v0, %v2491_v58  ;;  %4725 = vpow2.f32 %v2598_v44 }
 0x1a4   : > { %4727 = vpow2.f32 %v2594_v38 }
 0x1a5   : > { %v4724_v20 = vpop.eup %4723  ;;  %v2590_v53 = vmul.f32 1.442695, %v2531_v49 }
 0x1a6   : > { %4643 = vmatmul.msk.f32.gmra.mxu0 %vm2407_vm2, %v4724_v20  ;;  %v2675_v48 = vsel %vm2407_vm2, %v4724_v20, 0.0 }
 0x1a7   : > { %4729 = vpow2.f32 %v2590_v53  ;;  %v2602_v23 = vpop.xlane.xlu2 %2601 }
 0x1a8   : > { %4731 = vrcp.f32 %v2602_v23  ;;  %v2614_v56 = vpop.xlane.xlu0 %2613 }
 0x1a9   : > { %2676 = vadd.xlane.f32.xlu0 %v2675_v48  ;;  %v4726_v8 = vpop.eup %4725  ;;  %4733 = vrcp.f32 %v2614_v56 }
 0x1aa   : > { %v2608_v10 = vpop.xlane.xlu1 %2607  ;;  %v4728_v41 = vpop.eup %4727  ;;  %4649 = vmatmul.msk.f32.gmra.mxu3 %vm2407_vm2, %v4726_v8  ;;  %v2693_v37 = vsel %vm2407_vm2, %v4726_v8, 0.0 }
 0x1ab   : > { %4735 = vrcp.f32 %v2608_v10  ;;  %v2687_v0 = vsel %vm2407_vm2, %v4728_v41, 0.0  ;;  %4647 = vmatmul.msk.f32.gmra.mxu2 %vm2407_vm2, %v4728_v41  ;;  %v2876_v60 = vpop.f32.mrf.mxu1 }
 0x1ac   : > { %2688 = vadd.xlane.f32.xlu1 %v2687_v0  ;;  %v2847_v4 = vpop.f32.mrf.mxu0 }
 0x1ad   : > { %v4730_v50 = vpop.eup %4729 }
 0x1ae   : > { %4645 = vmatmul.msk.f32.gmra.mxu1 %vm2407_vm2, %v4730_v50  ;;  %v2681_v21 = vsel %vm2407_vm2, %v4730_v50, 0.0  ;;  %v4732_v15 = vpop.eup %4731 }
 0x1af   : > { %2682 = vadd.xlane.f32.xlu2 %v2681_v21  ;;  %v4734_v29 = vpop.eup %4733  ;;  %v2728_v46 = vmul.f32 %v4732_v15, %v2602_v23  ;;  %v2620_v52 = vpop.xlane.xlu2 %2619 }
 0x1b0   : > { %v2732_v54 = vmul.f32 %v4734_v29, %v2614_v56  ;;  %4737 = vrcp.f32 %v2620_v52 }
 0x1b1   : > { %v4736_v1 = vpop.eup %4735  ;;  %2694 = vadd.xlane.f32.xlu0 %v2693_v37  ;;  %v2760_v59 = vsub.f32 2.0, %v2728_v46 }
 0x1b2   : > { %v2730_v5 = vmul.f32 %v4736_v1, %v2608_v10  ;;  %v2764_v39 = vsub.f32 2.0, %v2732_v54 }
 0x1b3   : > { %v2792_v62 = vmul.f32 %v4732_v15, %v2760_v59 }
 0x1b4   : > { %v2762_v45 = vsub.f32 2.0, %v2730_v5  ;;  %v2796_v36 = vmul.f32 %v4734_v29, %v2764_v39 }
 0x1b5   : > { %v3288_v3 = vmul.f32 %v2847_v4, %v2792_v62 }
 0x1b6   : > { %v2794_v26 = vmul.f32 %v4736_v1, %v2762_v45  ;;  %v4738_v22 = vpop.eup %4737 }
 0x1b7   : > { %v2734_v19 = vmul.f32 %v4738_v22, %v2620_v52  ;;  %v2611_v33 = vpop.xlane.xlu2 %2610  ;;  %v2905_v43 = vpop.f32.mrf.mxu2  ;;  %v3322_v12 = vrot.slane %v3288_v3, 4 }
 0x1b8   : > { %v2617_v9 = vpop.xlane.xlu1 %2616  ;;  %4739 = vrcp.f32 %v2611_v33  ;;  %v3292_v32 = vmul.f32 %v2905_v43, %v2796_v36  ;;  %v3290_v28 = vmul.f32 %v2876_v60, %v2794_v26  ;;  %v2605_v51 = vpop.xlane.xlu0 %2604 }
 0x1b9   : > { %v2766_v11 = vsub.f32 2.0, %v2734_v19  ;;  %4741 = vrcp.f32 %v2617_v9 }
 0x1ba   : > { %4743 = vrcp.f32 %v2605_v51  ;;  %v3320_v6 = vrot.slane %v3292_v32, 4  ;;  %v3323_v27 = vsel %vm310_vm0, %v3292_v32, %v3322_v12  ;;  %v2934_v18 = vpop.f32.mrf.mxu3  ;;  %v3334_v63 = vrot.slane %v3290_v28, 4 }
 0x1bb   : > { %v3331_v2 = vperm.slane %v3323_v27, %v4852_v16  ;;  %v2798_v34 = vmul.f32 %v4738_v22, %v2766_v11  ;;  %v2879_v8 = vpop.f32.mrf.mxu1 }
 0x1bc   : > { %v3321_v14 = vsel %vm310_vm0, %v3320_v6, %v3288_v3 }
 0x1bd   : > { %v3327_v13 = vperm.slane %v3321_v14, %v4852_v16  ;;  %v3294_v25 = vmul.f32 %v2934_v18, %v2798_v34  ;;  %v3358_v40 = vrot.slane %v3331_v2, 4 }
 0x1be   : > { %v4740_v47 = vpop.eup %4739 }
 0x1bf   : > { %v4742_v57 = vpop.eup %4741  ;;  %v2731_v55 = vmul.f32 %v4740_v47, %v2611_v33  ;;  %v3332_v42 = vrot.slane %v3294_v25, 4  ;;  %v3335_v35 = vsel %vm310_vm0, %v3294_v25, %v3334_v63  ;;  %v3346_v24 = vrot.slane %v3327_v13, 4 }
 0x1c0   : > { %v4744_v30 = vpop.eup %4743  ;;  %v2733_v31 = vmul.f32 %v4742_v57, %v2617_v9  ;;  %v3343_v7 = vperm.slane %v3335_v35, %v4852_v16  ;;  %v2623_v38 = vpop.xlane.xlu0 %2622 }
 0x1c1   : > { %v2763_v61 = vsub.f32 2.0, %v2731_v55  ;;  %v2729_v44 = vmul.f32 %v4744_v30, %v2605_v51  ;;  %v3333_v58 = vsel %vm310_vm0, %v3332_v42, %v3290_v28  ;;  %4745 = vrcp.f32 %v2623_v38  ;;  %v2850_v46 = vpop.f32.mrf.mxu0 }
 0x1c2   : > { %v2765_v49 = vsub.f32 2.0, %v2733_v31  ;;  %v3339_v20 = vperm.slane %v3333_v58, %v4852_v16  ;;  %v3356_v53 = vrot.slane %v3343_v7, 4  ;;  %v5904_v48 = vsel %vm310_vm0, %v3343_v7, %v3358_v40 }
 0x1c3   : > { %v2761_v23 = vsub.f32 2.0, %v2729_v44  ;;  %v2795_v56 = vmul.f32 %v4740_v47, %v2763_v61 }
 0x1c4   : > { %v3344_v10 = vrot.slane %v3339_v20, 4  ;;  %v5907_v41 = vsel %vm310_vm0, %v3339_v20, %v3346_v24  ;;  %v5910_v0 = vsel %vm310_vm0, %v3356_v53, %v3331_v2  ;;  %v2797_v37 = vmul.f32 %v4742_v57, %v2765_v49 }
 0x1c5   : > { %v3291_v50 = vmul.f32 %v2879_v8, %v2795_v56  ;;  %v2793_v29 = vmul.f32 %v4744_v30, %v2761_v23 }
 0x1c6   : > { %v5915_v15 = vsel %vm310_vm0, %v3344_v10, %v3327_v13 }
 0x1c7   : > { %v5912_v21 = vpop.xlane.xlu1 %2625  ;;  %v2908_v52 = vpop.f32.mrf.mxu2  ;;  %v3289_v1 = vmul.f32 %v2850_v46, %v2793_v29  ;;  %v3390_v12 = vrot.slane %v3291_v50, 4 }
 0x1c8   : > { %v3293_v54 = vmul.f32 %v2908_v52, %v2797_v37  ;;  %v4746_v59 = vpop.eup %4745  ;;  %v2632_v22 = vpop.xlane.xlu0 %2631 }
 0x1c9   : > { %v2735_v5 = vmul.f32 %v4746_v59, %v2623_v38  ;;  %v3378_v39 = vrot.slane %v3289_v1, 4  ;;  %v2937_v43 = vpop.f32.mrf.mxu3 }
 0x1ca   : > { %v3376_v45 = vrot.slane %v3293_v54, 4 }
 0x1cb   : > { %v5917_v62 = vpop.xlane.xlu2 %2637  ;;  %v2767_v4 = vsub.f32 2.0, %v2735_v5  ;;  %v3379_v26 = vsel %vm310_vm0, %v3293_v54, %v3378_v39 }
 0x1cc   : > { %v3377_v3 = vsel %vm310_vm0, %v3376_v45, %v3289_v1  ;;  %v3387_v33 = vperm.slane %v3379_v26, %v4852_v16 }
 0x1cd   : > { %v2799_v19 = vmul.f32 %v4746_v59, %v2767_v4  ;;  %v3383_v9 = vperm.slane %v3377_v3, %v4852_v16 }
 0x1ce   : > { %v3414_v28 = vrot.slane %v3387_v33, 4 }
 0x1cf   : > { %v5921_v36 = vpop.xlane.xlu1 %2643  ;;  %v3295_v60 = vmul.f32 %v2937_v43, %v2799_v19  ;;  %v3402_v18 = vrot.slane %v3383_v9, 4  ;;  %v5943_v31 = vpop.f32.mrf.mxu1 }
 0x1d0   : > { %v5938_v57 = vpop.f32.mrf.mxu0 }
 0x1d1   : > { %v3388_v32 = vrot.slane %v3295_v60, 4  ;;  %v3391_v11 = vsel %vm310_vm0, %v3295_v60, %v3390_v12 }
 0x1d2   : > { %v3399_v51 = vperm.slane %v3391_v11, %v4852_v16 }
 0x1d3   : > { %v3389_v6 = vsel %vm310_vm0, %v3388_v32, %v3291_v50  ;;  %v2629_v27 = vpop.xlane.xlu2 %2628 }
 0x1d4   : > { %v3395_v2 = vperm.slane %v3389_v6, %v4852_v16  ;;  %v3412_v34 = vrot.slane %v3399_v51, 4  ;;  %v5930_v14 = vsel %vm310_vm0, %v3399_v51, %v3414_v28  ;;  %4747 = vrcp.f32 %v2629_v27 }
 0x1d6   : > { %v3400_v13 = vrot.slane %v3395_v2, 4  ;;  %v5933_v25 = vsel %vm310_vm0, %v3395_v2, %v3402_v18  ;;  %v5936_v47 = vsel %vm310_vm0, %v3412_v34, %v3387_v33  ;;  %v2641_v40 = vpop.xlane.xlu0 %2640 }
 0x1d7   : > { %v2635_v63 = vpop.xlane.xlu1 %2634 }
 0x1d8   : > { %v5941_v55 = vsel %vm310_vm0, %v3400_v13, %v3383_v9  ;;  %4749 = vrcp.f32 %v2635_v63 }
 0x1d9   : > { %4751 = vrcp.f32 %v2641_v40 }
 0x1da   : > { %v4748_v42 = vpop.eup %4747  ;;  %v5945_v24 = vpop.f32.mrf.mxu2 }
 0x1db   : > { %v2647_v35 = vpop.xlane.xlu2 %2646  ;;  %v2737_v30 = vmul.f32 %v4748_v42, %v2629_v27 }
 0x1dc   : > { %4753 = vrcp.f32 %v2647_v35  ;;  %v2966_v53 = vpop.f32.mrf.mxu0 }
 0x1dd   : > { %v2769_v61 = vsub.f32 2.0, %v2737_v30  ;;  %4755 = vrcp.f32 %v2632_v22 }
 0x1de   : > { %v4750_v7 = vpop.eup %4749  ;;  %4757 = vrcp.f32 %v5912_v21  ;;  %v5948_v10 = vpop.f32.mrf.mxu3 }
 0x1df   : > { %v4752_v44 = vpop.eup %4751  ;;  %v2739_v58 = vmul.f32 %v4750_v7, %v2635_v63  ;;  %v2801_v49 = vmul.f32 %v4748_v42, %v2769_v61  ;;  %4759 = vrcp.f32 %v5917_v62 }
 0x1e0   : > { %v2741_v38 = vmul.f32 %v4752_v44, %v2641_v40  ;;  %v2995_v46 = vpop.f32.mrf.mxu1  ;;  %4761 = vrcp.f32 %v5921_v36 }
 0x1e1   : > { %v2771_v20 = vsub.f32 2.0, %v2739_v58  ;;  %v3297_v8 = vmul.f32 %v2966_v53, %v2801_v49 }
 0x1e2   : > { %v4754_v23 = vpop.eup %4753  ;;  %v2773_v56 = vsub.f32 2.0, %v2741_v38 }
 0x1e3   : > { %v2743_v50 = vmul.f32 %v4754_v23, %v2647_v35  ;;  %v2803_v29 = vmul.f32 %v4750_v7, %v2771_v20  ;;  %v4756_v37 = vpop.eup %4755  ;;  %v3490_v26 = vrot.slane %v3297_v8, 4 }
 0x1e4   : > { %v4758_v52 = vpop.eup %4757  ;;  %v2805_v5 = vmul.f32 %v4752_v44, %v2773_v56  ;;  %v2738_v45 = vmul.f32 %v4756_v37, %v2632_v22 }
 0x1e5   : > { %v2775_v1 = vsub.f32 2.0, %v2743_v50  ;;  %v3299_v54 = vmul.f32 %v2995_v46, %v2803_v29  ;;  %v3024_v4 = vpop.f32.mrf.mxu2  ;;  %v2736_v3 = vmul.f32 %v4758_v52, %v5912_v21  ;;  %v4760_v33 = vpop.eup %4759 }
 0x1e6   : > { %v3301_v19 = vmul.f32 %v3024_v4, %v2805_v5  ;;  %v4762_v32 = vpop.eup %4761  ;;  %v2770_v11 = vsub.f32 2.0, %v2738_v45  ;;  %v2740_v27 = vmul.f32 %v4760_v33, %v5917_v62 }
 0x1e7   : > { %v2656_v59 = vpop.xlane.xlu2 %2655  ;;  %v2807_v43 = vmul.f32 %v4754_v23, %v2775_v1  ;;  %v3502_v28 = vrot.slane %v3299_v54, 4  ;;  %v2768_v22 = vsub.f32 2.0, %v2736_v3  ;;  %v2742_v35 = vmul.f32 %v4762_v32, %v5921_v36 }
 0x1e8   : > { %v2650_v39 = vpop.xlane.xlu0 %2649  ;;  %4763 = vrcp.f32 %v2656_v59  ;;  %v3488_v12 = vrot.slane %v3301_v19, 4  ;;  %v3491_v60 = vsel %vm310_vm0, %v3301_v19, %v3490_v26  ;;  %v2802_v61 = vmul.f32 %v4756_v37, %v2770_v11 }
 0x1e9   : > { %4765 = vrcp.f32 %v2650_v39  ;;  %v3499_v51 = vperm.slane %v3491_v60, %v4852_v16  ;;  %v2772_v53 = vsub.f32 2.0, %v2740_v27  ;;  %v2800_v23 = vmul.f32 %v4758_v52, %v2768_v22 }
 0x1ea   : > { %v3053_v9 = vpop.f32.mrf.mxu3  ;;  %v3489_v21 = vsel %vm310_vm0, %v3488_v12, %v3297_v8  ;;  %v2774_v36 = vsub.f32 2.0, %v2742_v35  ;;  %v3298_v46 = vmul.f32 %v5943_v31, %v2802_v61 }
 0x1eb   : > { %v3303_v6 = vmul.f32 %v3053_v9, %v2807_v43  ;;  %v3495_v34 = vperm.slane %v3489_v21, %v4852_v16  ;;  %v3526_v63 = vrot.slane %v3499_v51, 4  ;;  %v3296_v5 = vmul.f32 %v5938_v57, %v2800_v23 }
 0x1ec   : > { %v2804_v52 = vmul.f32 %v4760_v33, %v2772_v53  ;;  %v2806_v3 = vmul.f32 %v4762_v32, %v2774_v36  ;;  %v5979_v43 = vperm.slane %v5904_v48, %v4854_v17  ;;  %v3446_v12 = vrot.slane %v3298_v46, 4 }
 0x1ed   : > { %v3500_v13 = vrot.slane %v3303_v6, 4  ;;  %v3503_v40 = vsel %vm310_vm0, %v3303_v6, %v3502_v28  ;;  %v3514_v44 = vrot.slane %v3495_v34, 4  ;;  %v3434_v57 = vrot.slane %v3296_v5, 4 }
 0x1ee   : > { %v4764_v18 = vpop.eup %4763  ;;  %v3511_v30 = vperm.slane %v3503_v40, %v4852_v16  ;;  %v3300_v31 = vmul.f32 %v5945_v24, %v2804_v52  ;;  %v3302_v60 = vmul.f32 %v5948_v10, %v2806_v3  ;;  %v5985_v32 = vperm.slane %v5907_v41, %v4854_v17 }
 0x1ef   : > { %v2662_v2 = vpop.xlane.xlu1 %2661  ;;  %v4766_v42 = vpop.eup %4765  ;;  %v3501_v62 = vsel %vm310_vm0, %v3500_v13, %v3299_v54  ;;  %v2746_v58 = vmul.f32 %v4764_v18, %v2656_v59  ;;  %v3374_v48 = vrot.slane %v5979_v43, 4  ;;  %v6009_v52 = vperm.slane %v5933_v25, %v4854_v17 }
 0x1f0   : > { %4767 = vrcp.f32 %v2662_v2  ;;  %v2668_v7 = vpop.xlane.xlu0 %2667  ;;  %v3507_v38 = vperm.slane %v3501_v62, %v4852_v16  ;;  %v3524_v49 = vrot.slane %v3511_v30, 4  ;;  %v5964_v20 = vsel %vm310_vm0, %v3511_v30, %v3526_v63  ;;  %v3108_v10 = vpop.f32.mrf.mxu1 }
 0x1f1   : > { %4769 = vrcp.f32 %v2668_v7  ;;  %v2744_v56 = vmul.f32 %v4766_v42, %v2650_v39  ;;  %v2778_v1 = vsub.f32 2.0, %v2746_v58  ;;  %v3432_v24 = vrot.slane %v3300_v31, 4 }
 0x1f2   : > { %v3512_v8 = vrot.slane %v3507_v38, 4  ;;  %v5967_v50 = vsel %vm310_vm0, %v3507_v38, %v3514_v44  ;;  %v5970_v29 = vsel %vm310_vm0, %v3524_v49, %v3499_v51  ;;  %v5989_v51 = vperm.slane %v5910_v0, %v4854_v17 }
 0x1f3   : > { %v2776_v45 = vsub.f32 2.0, %v2744_v56  ;;  %v2810_v9 = vmul.f32 %v4764_v18, %v2778_v1  ;;  %v3435_v6 = vsel %vm310_vm0, %v3300_v31, %v3434_v57  ;;  %v3444_v21 = vrot.slane %v3302_v60, 4 }
 0x1f4   : > { %v5974_v54 = vsel %vm310_vm0, %v3512_v8, %v3495_v34  ;;  %v3447_v18 = vsel %vm310_vm0, %v3302_v60, %v3446_v12  ;;  %v3370_v61 = vrot.slane %v5985_v32, 4  ;;  %v3372_v62 = vrot.slane %v5989_v51, 4 }
 0x1f5   : > { %v2808_v11 = vmul.f32 %v4766_v42, %v2776_v45  ;;  %v3306_v34 = vmul.f32 %v3108_v10, %v2810_v9  ;;  %v3443_v53 = vperm.slane %v3435_v6, %v4852_v16  ;;  %v3455_v23 = vperm.slane %v3447_v18, %v4852_v16 }
 0x1f6   : > { %v4768_v37 = vpop.eup %4767  ;;  %v6003_v36 = vsel %vm310_vm0, 0.0, %v3374_v48  ;;  %v3445_v8 = vsel %vm310_vm0, %v3444_v21, %v3298_v46  ;;  %v6017_v45 = vperm.slane %v5930_v14, %v4854_v17  ;;  %v6026_v6 = vsel %vm310_vm0, 0.0, %v3372_v62 }
 0x1f7   : > { %v4770_v59 = vpop.eup %4769  ;;  %v2748_v39 = vmul.f32 %v4768_v37, %v2662_v2  ;;  %v2653_v4 = vpop.xlane.xlu1 %2652  ;;  %v3558_v1 = vrot.slane %v3306_v34, 4  ;;  %v3470_v12 = vrot.slane %v3443_v53, 4  ;;  %v3451_v25 = vperm.slane %v3445_v8, %v4852_v16 }
 0x1f8   : > { %4771 = vrcp.f32 %v2653_v4  ;;  %v2750_v26 = vmul.f32 %v4770_v59, %v2668_v7  ;;  %v2659_v19 = vpop.xlane.xlu0 %2658  ;;  %v3079_v2 = vpop.f32.mrf.mxu0  ;;  %v5996_v7 = vperm.slane %v5915_v15, %v4854_v17  ;;  %v3433_v15 = vsel %vm310_vm0, %v3432_v24, %v3296_v5 }
 0x1f9   : > { %4773 = vrcp.f32 %v2659_v19  ;;  %v2780_v33 = vsub.f32 2.0, %v2748_v39  ;;  %v3304_v13 = vmul.f32 %v3079_v2, %v2808_v11  ;;  %v6013_v39 = vperm.slane %v5936_v47, %v4854_v17 }
 0x1fa   : > { %v2782_v28 = vsub.f32 2.0, %v2750_v26  ;;  %v3439_v31 = vperm.slane %v3433_v15, %v4852_v16  ;;  %v3468_v60 = vrot.slane %v3455_v23, 4  ;;  %v3430_v11 = vrot.slane %v6017_v45, 4 }
 0x1fb   : > { %v2812_v0 = vmul.f32 %v4768_v37, %v2780_v33  ;;  %v3546_v37 = vrot.slane %v3304_v13, 4 }
 0x1fc   : > { %v2814_v35 = vmul.f32 %v4770_v59, %v2782_v28  ;;  %v3458_v18 = vrot.slane %v3439_v31, 4 }
 0x1fd   : > { %v2665_v22 = vpop.xlane.xlu2 %2664 }
 0x1fe   : > { %v4772_v27 = vpop.eup %4771  ;;  %4775 = vrcp.f32 %v2665_v22  ;;  %v3137_v41 = vpop.f32.mrf.mxu2 }
 0x1ff   : > { %v4774_v63 = vpop.eup %4773  ;;  %v2745_v40 = vmul.f32 %v4772_v27, %v2653_v4  ;;  %v2671_v42 = vpop.xlane.xlu1 %2670  ;;  %v3308_v38 = vmul.f32 %v3137_v41, %v2812_v0  ;;  %v6032_v41 = vsel %vm310_vm0, 0.0, %v3370_v61  ;;  %v3469_v0 = vsel %vm310_vm0, %v3468_v60, %v3443_v53 }
 0x200   : > { %v3166_v30 = vpop.f32.mrf.mxu3  ;;  %4777 = vrcp.f32 %v2671_v42  ;;  %v2747_v44 = vmul.f32 %v4774_v63, %v2659_v19  ;;  %v3082_v33 = vpop.f32.mrf.mxu0  ;;  %v6042_v15 = vperm.slane %v3469_v0, %v4854_v17 }
 0x201   : > { %v2777_v58 = vsub.f32 2.0, %v2745_v40  ;;  %v3310_v49 = vmul.f32 %v3166_v30, %v2814_v35  ;;  %v3544_v5 = vrot.slane %v3308_v38, 4  ;;  %v3547_v47 = vsel %vm310_vm0, %v3308_v38, %v3546_v37  ;;  %v3111_v48 = vpop.f32.mrf.mxu1 }
 0x202   : > { %v2779_v56 = vsub.f32 2.0, %v2747_v44  ;;  %v3555_v2 = vperm.slane %v3547_v47, %v4852_v16  ;;  %v3456_v40 = vrot.slane %v3451_v25, 4  ;;  %v3459_v37 = vsel %vm310_vm0, %v3451_v25, %v3458_v18 }
 0x203   : > { %v2809_v4 = vmul.f32 %v4772_v27, %v2777_v58  ;;  %v3559_v46 = vsel %vm310_vm0, %v3310_v49, %v3558_v1  ;;  %v3556_v14 = vrot.slane %v3310_v49, 4  ;;  %v3545_v10 = vsel %vm310_vm0, %v3544_v5, %v3304_v13 }
 0x204   : > { %v4776_v59 = vpop.eup %4775  ;;  %v2811_v26 = vmul.f32 %v4774_v63, %v2779_v56  ;;  %v3567_v24 = vperm.slane %v3559_v46, %v4852_v16  ;;  %v3368_v63 = vrot.slane %v5996_v7, 4  ;;  %v3551_v13 = vperm.slane %v3545_v10, %v4852_v16 }
 0x205   : > { %v2749_v3 = vmul.f32 %v4776_v59, %v2665_v22  ;;  %v3305_v28 = vmul.f32 %v3082_v33, %v2809_v4  ;;  %v3471_v22 = vsel %vm310_vm0, %v3455_v23, %v3470_v12  ;;  %v3557_v35 = vsel %vm310_vm0, %v3556_v14, %v3306_v34 }
 0x206   : > { %v4778_v19 = vpop.eup %4777  ;;  %v3307_v21 = vmul.f32 %v3111_v48, %v2811_v26  ;;  %v6038_v30 = vperm.slane %v3471_v22, %v4854_v17  ;;  %v3580_v38 = vrot.slane %v3567_v24, 4  ;;  %v3582_v53 = vrot.slane %v3555_v2, 4 }
 0x207   : > { %v2781_v9 = vsub.f32 2.0, %v2749_v3  ;;  %v2751_v57 = vmul.f32 %v4778_v19, %v2671_v42  ;;  %v3602_v44 = vrot.slane %v3305_v28, 4  ;;  %v3563_v34 = vperm.slane %v3557_v35, %v4852_v16 }
 0x208   : > { %v3614_v61 = vrot.slane %v3307_v21, 4  ;;  %v3457_v3 = vsel %vm310_vm0, %v3456_v40, %v3439_v31  ;;  %v3570_v5 = vrot.slane %v3551_v13, 4  ;;  %v3583_v46 = vsel %vm310_vm0, %v3567_v24, %v3582_v53 }
 0x209   : > { %v2783_v27 = vsub.f32 2.0, %v2751_v57  ;;  %v2813_v42 = vmul.f32 %v4776_v59, %v2781_v9  ;;  %v3581_v12 = vsel %vm310_vm0, %v3580_v38, %v3555_v2  ;;  %v3486_v25 = vrot.slane %v6038_v30, 4 }
 0x20a   : > { %v3568_v47 = vrot.slane %v3563_v34, 4  ;;  %v3484_v33 = vrot.slane %v6042_v15, 4  ;;  %v3571_v24 = vsel %vm310_vm0, %v3563_v34, %v3570_v5  ;;  %v3591_v18 = vperm.slane %v3583_v46, %v4854_v17 }
 0x20b   : > { %v2815_v56 = vmul.f32 %v4778_v19, %v2783_v27  ;;  %v3587_v27 = vperm.slane %v3581_v12, %v4854_v17  ;;  %v6079_v34 = vsel %vm310_vm0, 0.0, %v3486_v25 }
 0x20c   : > { %v2674_v62 = vpop.xlane.xlu2 %2673  ;;  %v3140_v58 = vpop.f32.mrf.mxu2 }
 0x20d   : > { %4779 = vrcp.f32 %v2674_v62  ;;  %v2680_v49 = vpop.xlane.xlu1 %2679  ;;  %v3309_v23 = vmul.f32 %v3140_v58, %v2813_v42  ;;  %v6068_v58 = vperm.slane %v3459_v37, %v4854_v17  ;;  %v3596_v37 = vrot.slane %v3587_v27, 4 }
 0x20e   : > { %4781 = vrcp.f32 %v2680_v49  ;;  %v3169_v8 = vpop.f32.mrf.mxu3 }
 0x20f   : > { %v3600_v1 = vrot.slane %v3309_v23, 4  ;;  %v3603_v59 = vsel %vm310_vm0, %v3309_v23, %v3602_v44  ;;  %v3311_v4 = vmul.f32 %v3169_v8, %v2815_v56  ;;  %v3569_v56 = vsel %vm310_vm0, %v3568_v47, %v3551_v13 }
 0x210   : > { %v3611_v26 = vperm.slane %v3603_v59, %v4852_v16  ;;  %v6084_v8 = vsel %vm310_vm0, 0.0, %v3368_v63  ;;  %v6093_v13 = vperm.slane %v5964_v20, %v4854_v17  ;;  %v3575_v63 = vperm.slane %v3569_v56, %v4854_v17 }
 0x211   : > { %v3601_v19 = vsel %vm310_vm0, %v3600_v1, %v3305_v28  ;;  %v3612_v60 = vrot.slane %v3311_v4, 4  ;;  %v3615_v9 = vsel %vm310_vm0, %v3311_v4, %v3614_v61  ;;  %v3598_v1 = vrot.slane %v3591_v18, 4 }
 0x212   : > { %v3623_v57 = vperm.slane %v3615_v9, %v4852_v16  ;;  %v6057_v14 = vperm.slane %v3601_v19, %v4852_v16  ;;  %v3638_v48 = vrot.slane %v3611_v26, 4  ;;  %v6089_v4 = vsel %vm310_vm0, 0.0, %v3484_v33 }
 0x213   : > { %v4780_v31 = vpop.eup %4779  ;;  %v3613_v28 = vsel %vm310_vm0, %v3612_v60, %v3307_v21  ;;  %v3579_v21 = vperm.slane %v3571_v24, %v4854_v17  ;;  %v3431_v20 = vsel %vm310_vm0, 0.0, %v3430_v11  ;;  %v6107_v24 = vsel %vm310_vm0, 0.0, %v3598_v1 }
 0x214   : > { %v4782_v22 = vpop.eup %4781  ;;  %v2752_v10 = vmul.f32 %v4780_v31, %v2674_v62  ;;  %v2692_v2 = vpop.xlane.xlu2 %2691  ;;  %v3636_v0 = vrot.slane %v3623_v57, 4  ;;  %v6064_v35 = vperm.slane %v3613_v28, %v4852_v16  ;;  %v3639_v44 = vsel %vm310_vm0, %v3623_v57, %v3638_v48 }
 0x215   : > { %v2686_v40 = vpop.xlane.xlu0 %2685  ;;  %v2754_v42 = vmul.f32 %v4782_v22, %v2680_v49  ;;  %4783 = vrcp.f32 %v2692_v2  ;;  %v6072_v62 = vperm.slane %v3457_v3, %v4854_v17  ;;  %v3626_v23 = vrot.slane %v6057_v14, 4  ;;  %v3195_v27 = vpop.f32.mrf.mxu0 }
 0x216   : > { %4785 = vrcp.f32 %v2686_v40  ;;  %v2784_v38 = vsub.f32 2.0, %v2752_v10  ;;  %v3637_v49 = vsel %vm310_vm0, %v3636_v0, %v3611_v26  ;;  %v3647_v53 = vperm.slane %v3639_v44, %v4854_v17 }
 0x217   : > { %v2786_v61 = vsub.f32 2.0, %v2754_v42  ;;  %v3627_v59 = vsel %vm310_vm0, %v6064_v35, %v3626_v23  ;;  %v3643_v3 = vperm.slane %v3637_v49, %v4854_v17  ;;  %v3594_v19 = vrot.slane %v3579_v21, 4 }
 0x218   : > { %v2816_v12 = vmul.f32 %v4780_v31, %v2784_v38  ;;  %v3635_v47 = vperm.slane %v3627_v59, %v4854_v17  ;;  %v3654_v57 = vrot.slane %v3647_v53, 4  ;;  %v6104_v48 = vsel %vm310_vm0, 0.0, %v3596_v37  ;;  %v3224_v31 = vpop.f32.mrf.mxu1 }
 0x219   : > { %v2818_v5 = vmul.f32 %v4782_v22, %v2786_v61  ;;  %v3930_v22 = vsel %vm310_vm0, %v3598_v1, %v5979_v43  ;;  %v6111_v18 = vrot.slane %v3643_v3, 4  ;;  %v6113_v0 = vrot.slane %v3575_v63, 4 }
 0x21a   : > { %v6116_v11 = vsel %vm310_vm0, 0.0, %v3594_v19  ;;  %v3312_v44 = vmul.f32 %v3195_v27, %v2816_v12  ;;  %v3655_v61 = vsel %vm310_vm0, 0.0, %v3654_v57  ;;  %v6123_v23 = vsel %vm310_vm0, %v3654_v57, %v6017_v45 }
 0x21b   : > { %v4784_v46 = vpop.eup %4783  ;;  %v6128_v53 = vperm.slane %v3930_v22, %v4852_v16  ;;  %v4172_v45 = vrot.slane %v3655_v61, 4 }
 0x21c   : > { %v4786_v9 = vpop.eup %4785  ;;  %v2758_v25 = vmul.f32 %v4784_v46, %v2692_v2  ;;  %v3314_v2 = vmul.f32 %v3224_v31, %v2818_v5  ;;  %v3658_v63 = vrot.slane %v3312_v44, 4 }
 0x21d   : > { %v2677_v33 = vpop.xlane.xlu0 %2676  ;;  %v2756_v28 = vmul.f32 %v4786_v9, %v2686_v40  ;;  %v6118_v40 = vrot.slane %v3635_v47, 4 }
 0x21e   : > { %v2790_v10 = vsub.f32 2.0, %v2758_v25  ;;  %4787 = vrcp.f32 %v2677_v33  ;;  %v3282_v21 = vpop.f32.mrf.mxu3  ;;  %v3670_v1 = vrot.slane %v3314_v2, 4  ;;  %v3876_v25 = vsel %vm310_vm0, %v3596_v37, %v5989_v51 }
 0x21f   : > { %v2788_v42 = vsub.f32 2.0, %v2756_v28  ;;  %v2689_v38 = vpop.xlane.xlu1 %2688  ;;  %v6149_v61 = vperm.slane %v3876_v25, %v4852_v16 }
 0x220   : > { %v2822_v43 = vmul.f32 %v4784_v46, %v2790_v10  ;;  %4789 = vrcp.f32 %v2689_v38  ;;  %v6133_v46 = vsel %vm310_vm0, %v6111_v18, %v6013_v39 }
 0x221   : > { %v2820_v3 = vmul.f32 %v4786_v9, %v2788_v42  ;;  %v6141_v9 = vsel %vm310_vm0, %v6118_v40, %v6009_v52  ;;  %v3822_v42 = vsel %vm310_vm0, %v3594_v19, %v5985_v32  ;;  %v3942_v32 = vrot.slane %v6128_v53, 4 }
 0x222   : > { %v2683_v59 = vpop.xlane.xlu2 %2682  ;;  %v3318_v5 = vmul.f32 %v3282_v21, %v2822_v43  ;;  %v6156_v19 = vsel %vm310_vm0, %v4172_v45, %v3431_v20  ;;  %v3888_v45 = vrot.slane %v6149_v61, 4 }
 0x223   : > { %4791 = vrcp.f32 %v2683_v59  ;;  %v3253_v12 = vpop.f32.mrf.mxu2 }
 0x224   : > { %v4788_v47 = vpop.eup %4787  ;;  %v3316_v57 = vmul.f32 %v3253_v12, %v2820_v3  ;;  %v3668_v28 = vrot.slane %v3318_v5, 4  ;;  %v3671_v31 = vsel %vm310_vm0, %v3318_v5, %v3670_v1 }
 0x225   : > { %v2695_v22 = vpop.xlane.xlu0 %2694  ;;  %v2753_v10 = vmul.f32 %v4788_v47, %v2677_v33  ;;  %v3679_v27 = vperm.slane %v3671_v31, %v4852_v16 }
 0x226   : > { %4793 = vrcp.f32 %v2695_v22  ;;  %v3656_v21 = vrot.slane %v3316_v57, 4  ;;  %v3659_v51 = vsel %vm310_vm0, %v3316_v57, %v3658_v63  ;;  %v3669_v37 = vsel %vm310_vm0, %v3668_v28, %v3314_v2  ;;  %v4790_v43 = vpop.eup %4789 }
 0x227   : > { %v2785_v1 = vsub.f32 2.0, %v2753_v10  ;;  %v3667_v3 = vperm.slane %v3659_v51, %v4852_v16  ;;  %v3675_v33 = vperm.slane %v3669_v37, %v4852_v16  ;;  %v3692_v5 = vrot.slane %v3679_v27, 4  ;;  %v3198_v51 = vpop.f32.mrf.mxu0 }
 0x228   : > { %v2757_v12 = vmul.f32 %v4790_v43, %v2689_v38  ;;  %v3657_v31 = vsel %vm310_vm0, %v3656_v21, %v3312_v44  ;;  %v6161_v38 = vperm.slane %v3822_v42, %v4852_v16 }
 0x229   : > { %v4792_v63 = vpop.eup %4791  ;;  %v2817_v2 = vmul.f32 %v4788_v47, %v2785_v1  ;;  %v3663_v25 = vperm.slane %v3657_v31, %v4852_v16  ;;  %v3694_v57 = vrot.slane %v3667_v3, 4  ;;  %v3680_v28 = vrot.slane %v3675_v33, 4 }
 0x22a   : > { %v2789_v10 = vsub.f32 2.0, %v2757_v12  ;;  %v2755_v60 = vmul.f32 %v4792_v63, %v2683_v59  ;;  %v3693_v37 = vsel %vm310_vm0, %v3692_v5, %v3667_v3 }
 0x22b   : > { %v3313_v21 = vmul.f32 %v3198_v51, %v2817_v2  ;;  %v3682_v26 = vrot.slane %v3663_v25, 4  ;;  %v3695_v20 = vsel %vm310_vm0, %v3679_v27, %v3694_v57  ;;  %v3699_v1 = vperm.slane %v3693_v37, %v4854_v17 }
 0x22c   : > { %v4794_v44 = vpop.eup %4793  ;;  %v2787_v47 = vsub.f32 2.0, %v2755_v60  ;;  %v3703_v31 = vperm.slane %v3695_v20, %v4854_v17  ;;  %v3681_v49 = vsel %vm310_vm0, %v3680_v28, %v3663_v25  ;;  %v2821_v42 = vmul.f32 %v4790_v43, %v2789_v10  ;;  %v3227_v43 = vpop.f32.mrf.mxu1 }
 0x22d   : > { %v2759_v12 = vmul.f32 %v4794_v44, %v2695_v22  ;;  %v3714_v59 = vrot.slane %v3313_v21, 4  ;;  %v3683_v3 = vsel %vm310_vm0, %v3675_v33, %v3682_v26  ;;  %v3708_v2 = vrot.slane %v3699_v1, 4 }
 0x22e   : > { %v3691_v5 = vperm.slane %v3683_v3, %v4854_v17  ;;  %v3710_v51 = vrot.slane %v3703_v31, 4  ;;  %v2819_v27 = vmul.f32 %v4792_v63, %v2787_v47  ;;  %v3256_v57 = vpop.f32.mrf.mxu2  ;;  %v3834_v60 = vrot.slane %v6161_v38, 4  ;;  %v3285_v47 = vpop.f32.mrf.mxu3 }
 0x22f   : > { %v2791_v56 = vsub.f32 2.0, %v2759_v12  ;;  %v6801_v37 = vrot.slane %v6107_v24, 4  ;;  %v3768_v25 = vsel %vm310_vm0, %v6113_v0, %v5996_v7  ;;  %v3317_v33 = vmul.f32 %v3256_v57, %v2821_v42 }
 0x230   : > { %v6178_v26 = vrot.slane %v3691_v5, 4  ;;  %v3687_v10 = vperm.slane %v3681_v49, %v4854_v17  ;;  %v3711_v63 = vsel %vm310_vm0, 0.0, %v3710_v51  ;;  %v3315_v20 = vmul.f32 %v3227_v43, %v2819_v27 }
 0x231   : > { %v3957_v22 = vsel %vm310_vm0, %v6801_v37, %v6003_v36  ;;  %v2823_v28 = vmul.f32 %v4794_v44, %v2791_v56  ;;  %v3935_v24 = vsel %vm310_vm0, %v3710_v51, %v6038_v30  ;;  %v3881_v36 = vsel %vm310_vm0, %v3708_v2, %v6042_v15 }
 0x232   : > { %v3715_v1 = vsel %vm310_vm0, %v3317_v33, %v3714_v59  ;;  %v6188_v31 = vperm.slane %v3935_v24, %v4852_v16  ;;  %v6191_v56 = vperm.slane %v3957_v22, %v4852_v16  ;;  %v3726_v49 = vrot.slane %v3315_v20, 4 }
 0x233   : > { %v3319_v7 = vmul.f32 %v3285_v47, %v2823_v28  ;;  %v3885_v44 = vperm.slane %v3881_v36, %v4852_v16  ;;  %v3827_v12 = vsel %vm310_vm0, %v6178_v26, %v6068_v58  ;;  %v6198_v30 = vperm.slane %v3768_v25, %v4852_v16 }
 0x234   : > { %v3962_v15 = vrot.slane %v3711_v63, 4  ;;  %v3943_v59 = vsel %vm310_vm0, %v6188_v31, %v3942_v32  ;;  %v6203_v3 = vperm.slane %v3827_v12, %v4852_v16  ;;  %v3704_v42 = vrot.slane %v3687_v10, 4 }
 0x235   : > { %v3712_v5 = vrot.slane %v3317_v33, 4  ;;  %v3723_v51 = vperm.slane %v3715_v1, %v4852_v16  ;;  %v3727_v27 = vsel %vm310_vm0, %v3319_v7, %v3726_v49  ;;  %v6208_v57 = vperm.slane %v3943_v59, %v4854_v17 }
 0x236   : > { %v3724_v37 = vrot.slane %v3319_v7, 4  ;;  %v3889_v22 = vsel %vm310_vm0, %v3885_v44, %v3888_v45  ;;  %v3835_v25 = vsel %vm310_vm0, %v6203_v3, %v3834_v60  ;;  %v6802_v32 = vrot.slane %v6104_v48, 4 }
 0x237   : > { %v3848_v33 = vrot.slane %v6116_v11, 4  ;;  %v3735_v28 = vperm.slane %v3727_v27, %v4852_v16  ;;  %4292 = vrot.lane.b32.xlu1 %v6208_v57, %s4805_s12  ;;  %v6222_v10 = vperm.slane %v3889_v22, %v4854_v17  ;;  %v6225_v45 = vperm.slane %v3835_v25, %v4854_v17 }
 0x238   : > { %v3903_v43 = vsel %vm310_vm0, %v6802_v32, %v6026_v6  ;;  %v3963_v60 = vsel %vm310_vm0, %v3962_v15, %v6079_v34  ;;  %v3970_v48 = vrot.slane %v6191_v56, 4  ;;  %v3773_v6 = vsel %vm310_vm0, %v3704_v42, %v6072_v62 }
 0x239   : > { %v3780_v11 = vrot.slane %v6198_v30, 4  ;;  %v3713_v63 = vsel %vm310_vm0, %v3712_v5, %v3313_v21  ;;  %v3750_v47 = vrot.slane %v3723_v51, 4  ;;  %4288 = vrot.lane.b32.xlu0 %v6222_v10, %s4805_s12  ;;  %4284 = vrot.lane.b32.xlu2 %v6225_v45, %s4805_s12  ;;  %v6239_v24 = vperm.slane %v3963_v60, %v4852_v16 }
 0x23a   : > { %v6242_v34 = vperm.slane %v3903_v43, %v4852_v16  ;;  %v3725_v36 = vsel %vm310_vm0, %v3724_v37, %v3315_v20  ;;  %v6246_v1 = vperm.slane %v3773_v6, %v4852_v16  ;;  %v3709_v21 = vsel %vm310_vm0, 0.0, %v3708_v2 }
 0x23b   : > { %v3593_v7 = vsel %vm310_vm0, 0.0, %v6113_v0  ;;  %v6253_v49 = vperm.slane %v5967_v50, %v4854_v17  ;;  %v3751_v12 = vsel %vm310_vm0, %v3735_v28, %v3750_v47  ;;  %v6803_v15 = vrot.slane %v6068_v58, 4 }
 0x23c   : > { %v3849_v20 = vsel %vm310_vm0, %v3848_v33, %v6032_v41  ;;  %v6262_v5 = vperm.slane %v3713_v63, %v4852_v16  ;;  %v3971_v2 = vsel %vm310_vm0, %v6239_v24, %v3970_v48  ;;  %v3781_v0 = vsel %vm310_vm0, %v6246_v1, %v3780_v11 }
 0x23d   : > { %v3483_v59 = vsel %vm310_vm0, 0.0, %v6803_v15  ;;  %v3908_v50 = vrot.slane %v3709_v21, 4  ;;  %v6269_v27 = vperm.slane %v3725_v36, %v4852_v16  ;;  %v6272_v58 = vperm.slane %v3781_v0, %v4854_v17 }
 0x23e   : > { %v3916_v37 = vrot.slane %v6242_v34, 4  ;;  %v3794_v22 = vrot.slane %v3593_v7, 4  ;;  %v3748_v41 = vrot.slane %v3735_v28, 4  ;;  %v3759_v25 = vperm.slane %v3751_v12, %v4854_v17 }
 0x23f   : > { %v3909_v32 = vsel %vm310_vm0, %v3908_v50, %v6089_v4  ;;  %v3886_v43 = vrot.slane %v3885_v44, 4  ;;  %v6279_v33 = vperm.slane %v3971_v2, %v4854_v17  ;;  %4280 = vrot.lane.b32.xlu1 %v6272_v58, %s4805_s12  ;;  %v3707_v48 = vsel %vm310_vm0, 0.0, %v6178_v26 }
 0x240   : > { %v6284_v60 = vperm.slane %v3909_v32, %v4852_v16  ;;  %v3705_v28 = vsel %vm310_vm0, 0.0, %v3704_v42  ;;  %v3624_v6 = vrot.slane %v6064_v35, 4  ;;  %v3738_v11 = vrot.slane %v6262_v5, 4 }
 0x241   : > { %v3887_v4 = vsel %vm310_vm0, %v3886_v43, %v6149_v61  ;;  %v3854_v44 = vrot.slane %v3707_v48, 4  ;;  %4294 = vrot.lane.b32.xlu0 %v6279_v33, %s4805_s12  ;;  %v6301_v26 = vperm.slane %v3849_v20, %v4852_v16  ;;  %v3800_v42 = vrot.slane %v3705_v28, 4 }
 0x242   : > { %v3917_v63 = vsel %vm310_vm0, %v6284_v60, %v3916_v37  ;;  %v6298_v47 = vperm.slane %v3887_v4, %v4854_v17  ;;  %v3739_v35 = vsel %vm310_vm0, %v6269_v27, %v3738_v11  ;;  %v3749_v36 = vsel %vm310_vm0, %v3748_v41, %v3723_v51 }
 0x243   : > { %v6307_v61 = vperm.slane %v3917_v63, %v4854_v17  ;;  %v6311_v21 = vperm.slane %v6123_v23, %v4852_v16  ;;  %v3766_v7 = vrot.slane %v3759_v25, 4  ;;  %v3855_v15 = vsel %vm310_vm0, %v3854_v44, %v3483_v59 }
 0x244   : > { %v3898_v12 = vrot.slane %v6298_v47, 4  ;;  %v3795_v20 = vsel %vm310_vm0, %v3794_v22, %v6084_v8  ;;  %v6319_v2 = vperm.slane %v5970_v29, %v4854_v17  ;;  %v3954_v51 = vrot.slane %v6208_v57, 4 }
 0x245   : > { %4290 = vrot.lane.b32.xlu2 %v6307_v61, %s4805_s12  ;;  %v6804_v23 = vrot.slane %v6072_v62, 4  ;;  %v3940_v50 = vrot.slane %v6188_v31, 4  ;;  %v3542_v59 = vrot.slane %v6093_v13, 4  ;;  %v3747_v37 = vperm.slane %v3739_v35, %v4854_v17 }
 0x246   : > { %v3755_v8 = vperm.slane %v3749_v36, %v4854_v17  ;;  %v3625_v22 = vsel %vm310_vm0, %v3624_v6, %v6057_v14  ;;  %v3899_v41 = vsel %vm310_vm0, 0.0, %v3898_v12  ;;  %v6336_v57 = vperm.slane %v3855_v15, %v4852_v16 }
 0x247   : > { %v3481_v0 = vsel %vm310_vm0, 0.0, %v6804_v23  ;;  %v6339_v62 = vperm.slane %v3795_v20, %v4852_v16  ;;  %4224 = vrot.lane.b32.xlu1 %v3899_v41, %s4806_s13  ;;  %v3900_v31 = vrot.slane %v6222_v10, 4  ;;  %v3862_v25 = vrot.slane %v6301_v26, 4 }
 0x248   : > { %v3801_v29 = vsel %vm310_vm0, %v3800_v42, %v3481_v0  ;;  %v4151_v32 = vsel %vm310_vm0, %v3766_v7, %v6093_v13  ;;  %v4158_v14 = vrot.slane %v6311_v21, 4  ;;  %v3955_v43 = vsel %vm310_vm0, 0.0, %v3954_v51 }
 0x249   : > { %v6349_v48 = vperm.slane %v3801_v29, %v4852_v16  ;;  %v3941_v28 = vsel %vm310_vm0, %v3940_v50, %v6128_v53  ;;  %v6354_v6 = vperm.slane %v4151_v32, %v4852_v16  ;;  %v3631_v10 = vperm.slane %v3625_v22, %v4854_v17  ;;  %4356 = vrot.lane.b32.xlu0 %v3955_v43, %s4807_s14 }
 0x24a   : > { %v6357_v11 = vrot.slane %v3747_v37, 4  ;;  %v6359_v4 = vrot.slane %v3755_v8, 4  ;;  %v3767_v13 = vsel %vm310_vm0, 0.0, %v3766_v7  ;;  %v3863_v44 = vsel %vm310_vm0, %v6336_v57, %v3862_v25 }
 0x24b   : > { %v3808_v63 = vrot.slane %v6339_v62, 4  ;;  %v6368_v53 = vsel %vm310_vm0, %v6354_v6, %v4158_v14  ;;  %v6372_v42 = vperm.slane %v6133_v46, %v4852_v16  ;;  %v3653_v35 = vsel %vm310_vm0, 0.0, %v6111_v18 }
 0x24c   : > { %v3901_v36 = vsel %vm310_vm0, 0.0, %v3900_v31  ;;  %v6378_v7 = vperm.slane %v3941_v28, %v4854_v17  ;;  %v6382_v12 = vperm.slane %v6141_v9, %v4852_v16  ;;  %v3428_v15 = vrot.slane %v6013_v39, 4 }
 0x24d   : > { %v4178_v20 = vrot.slane %v3767_v13, 4  ;;  %4352 = vrot.lane.b32.xlu2 %v3901_v36, %s4807_s14  ;;  %v3809_v46 = vsel %vm310_vm0, %v6349_v48, %v3808_v63  ;;  %v3543_v51 = vsel %vm310_vm0, 0.0, %v3542_v59  ;;  %v6389_v18 = vrot.slane %v3631_v10, 4 }
 0x24e   : > { %v6392_v23 = vperm.slane %v3863_v44, %v4854_v17  ;;  %v4097_v9 = vsel %vm310_vm0, %v6359_v4, %v6319_v2  ;;  %v4043_v39 = vsel %vm310_vm0, %v6357_v11, %v6253_v49  ;;  %v4118_v0 = vrot.slane %v3653_v35, 4 }
 0x24f   : > { %v6401_v50 = vperm.slane %v4097_v9, %v4852_v16  ;;  %v4104_v37 = vrot.slane %v6372_v42, 4  ;;  %v6406_v59 = vperm.slane %v6156_v19, %v4852_v16  ;;  %v6411_v8 = vperm.slane %v3809_v46, %v4854_v17 }
 0x250   : > { %4286 = vrot.lane.b32.xlu1 %v6392_v23, %s4805_s12  ;;  %v3952_v29 = vrot.slane %v6378_v7, 4  ;;  %v6415_v22 = vperm.slane %v4043_v39, %v4852_v16  ;;  %v4050_v41 = vrot.slane %v6382_v12, 4  ;;  %v4179_v19 = vsel %vm310_vm0, %v4178_v20, %v3543_v51 }
 0x251   : > { %v6420_v31 = vsel %vm310_vm0, %v6401_v50, %v4104_v37  ;;  %v3407_v25 = vperm.slane %v5941_v55, %v4854_v17  ;;  %4282 = vrot.lane.b32.xlu0 %v6411_v8, %s4805_s12  ;;  %v3832_v32 = vrot.slane %v6203_v3, 4  ;;  %v6433_v43 = vperm.slane %v4179_v19, %v4852_v16 }
 0x252   : > { %v6430_v14 = vsel %vm310_vm0, %v6415_v22, %v4050_v41  ;;  %v3846_v28 = vrot.slane %v6225_v45, 4  ;;  %v4186_v10 = vrot.slane %v6406_v59, 4  ;;  %v3429_v13 = vsel %vm310_vm0, 0.0, %v3428_v15 }
 0x253   : > { %v3953_v55 = vsel %vm310_vm0, 0.0, %v3952_v29  ;;  %v4119_v44 = vsel %vm310_vm0, %v4118_v0, %v3429_v13  ;;  %v3984_v3 = vsel %vm310_vm0, %v6389_v18, %v3407_v25  ;;  %v3792_v63 = vrot.slane %v6272_v58, 4 }
 0x254   : > { %v6446_v35 = vsel %vm310_vm0, %v6433_v43, %v4186_v10  ;;  %v3833_v45 = vsel %vm310_vm0, %v3832_v32, %v6161_v38  ;;  %v3778_v36 = vrot.slane %v6246_v1, 4  ;;  %v3847_v15 = vsel %vm310_vm0, 0.0, %v3846_v28 }
 0x255   : > { %4228 = vrot.lane.b32.xlu2 %v3953_v55, %s4806_s13  ;;  %v3982_v20 = vrot.slane %v6279_v33, 4  ;;  %v3793_v46 = vsel %vm310_vm0, 0.0, %v3792_v63  ;;  %v6456_v51 = vperm.slane %v3833_v45, %v4854_v17  ;;  %v3914_v58 = vrot.slane %v6284_v60, 4 }
 0x256   : > { %v3779_v38 = vsel %vm310_vm0, %v3778_v36, %v6198_v30  ;;  %v3651_v1 = vsel %vm310_vm0, 0.0, %v6118_v40  ;;  %v3736_v9 = vrot.slane %v6269_v27, 4  ;;  %v3928_v39 = vrot.slane %v6307_v61, 4 }
 0x257   : > { %v3983_v33 = vsel %vm310_vm0, 0.0, %v3982_v20  ;;  %v3968_v0 = vrot.slane %v6239_v24, 4  ;;  %v3844_v60 = vrot.slane %v6456_v51, 4  ;;  %v6471_v37 = vperm.slane %v3779_v38, %v4854_v17 }
 0x258   : > { %4348 = vrot.lane.b32.xlu1 %v3847_v15, %s4807_s14  ;;  %v3915_v30 = vsel %vm310_vm0, %v3914_v58, %v6242_v34  ;;  %v3540_v40 = vrot.slane %v6319_v2, 4  ;;  %v3426_v27 = vrot.slane %v6009_v52, 4  ;;  %v4064_v29 = vrot.slane %v3651_v1, 4 }
 0x259   : > { %4344 = vrot.lane.b32.xlu0 %v3793_v46, %s4807_s14  ;;  %v3737_v61 = vsel %vm310_vm0, %v3736_v9, %v6262_v5  ;;  %v3929_v24 = vsel %vm310_vm0, 0.0, %v3928_v39  ;;  %v6482_v41 = vperm.slane %v6368_v53, %v4854_v17  ;;  %v6485_v19 = vperm.slane %v4119_v44, %v4852_v16 }
 0x25a   : > { %v6489_v34 = vperm.slane %v3915_v30, %v4854_v17  ;;  %v3969_v52 = vsel %vm310_vm0, %v3968_v0, %v6191_v56  ;;  %v3765_v5 = vsel %vm310_vm0, 0.0, %v6359_v4  ;;  %v3424_v2 = vrot.slane %v3407_v25, 4 }
 0x25b   : > { %v3845_v32 = vsel %vm310_vm0, 0.0, %v3844_v60  ;;  %v3790_v53 = vrot.slane %v6471_v37, 4  ;;  %v3541_v28 = vsel %vm310_vm0, 0.0, %v3540_v40  ;;  %v4124_v10 = vrot.slane %v3765_v5, 4 }
 0x25c   : > { %v3519_v13 = vperm.slane %v5974_v54, %v4854_v17  ;;  %v3743_v55 = vperm.slane %v3737_v61, %v4854_v17  ;;  %v6503_v56 = vperm.slane %v3984_v3, %v4852_v16  ;;  %v3649_v4 = vsel %vm310_vm0, 0.0, %v6389_v18 }
 0x25d   : > { %4358 = vrot.lane.b32.xlu2 %v3983_v33, %s4807_s14  ;;  %v4125_v25 = vsel %vm310_vm0, %v4124_v10, %v3541_v28  ;;  %v4132_v44 = vrot.slane %v6485_v19, 4  ;;  %v4010_v63 = vrot.slane %v3649_v4, 4  ;;  %v3427_v45 = vsel %vm310_vm0, 0.0, %v3426_v27 }
 0x25e   : > { %v6511_v36 = vperm.slane %v4125_v25, %v4852_v16  ;;  %v3760_v15 = vrot.slane %v3743_v55, 4  ;;  %v3425_v54 = vsel %vm310_vm0, 0.0, %v3424_v2  ;;  %v4065_v20 = vsel %vm310_vm0, %v4064_v29, %v3427_v45 }
 0x25f   : > { %v3926_v18 = vrot.slane %v6489_v34, 4  ;;  %v3806_v3 = vrot.slane %v6349_v48, 4  ;;  %v4011_v46 = vsel %vm310_vm0, %v4010_v63, %v3425_v54  ;;  %v3791_v1 = vsel %vm310_vm0, 0.0, %v3790_v53 }
 0x260   : > { %4354 = vrot.lane.b32.xlu1 %v3929_v24, %s4807_s14  ;;  %v6522_v58 = vsel %vm310_vm0, %v6511_v36, %v4132_v44  ;;  %v3989_v38 = vsel %vm310_vm0, %v3760_v15, %v3519_v13  ;;  %v6527_v9 = vperm.slane %v3969_v52, %v4854_v17  ;;  %v3996_v33 = vrot.slane %v6503_v56, 4 }
 0x261   : > { %4220 = vrot.lane.b32.xlu0 %v3845_v32, %s4806_s13  ;;  %v3993_v39 = vperm.slane %v3989_v38, %v4852_v16  ;;  %v3820_v48 = vrot.slane %v6411_v8, 4  ;;  %v3536_v0 = vrot.slane %v3519_v13, 4  ;;  %v3927_v60 = vsel %vm310_vm0, 0.0, %v3926_v18 }
 0x262   : > { %v3807_v30 = vsel %vm310_vm0, %v3806_v3, %v6339_v62  ;;  %v3761_v27 = vsel %vm310_vm0, 0.0, %v3760_v15  ;;  %v4015_v29 = vperm.slane %v4011_v46, %v4852_v16  ;;  %v4102_v61 = vrot.slane %v6401_v50, 4 }
 0x263   : > { %v3997_v40 = vsel %vm310_vm0, %v3993_v39, %v3996_v33  ;;  %v3980_v24 = vrot.slane %v6527_v9, 4  ;;  %v4016_v52 = vrot.slane %v3761_v27, 4  ;;  %v3821_v8 = vsel %vm310_vm0, 0.0, %v3820_v48 }
 0x264   : > { %v6544_v5 = vperm.slane %v3807_v30, %v4854_v17  ;;  %v3537_v62 = vsel %vm310_vm0, 0.0, %v3536_v0  ;;  %v4103_v2 = vsel %vm310_vm0, %v4102_v61, %v6372_v42  ;;  %v3874_v32 = vrot.slane %v6392_v23, 4 }
 0x265   : > { %4308 = vrot.lane.b32.xlu2 %v6482_v41, %s4805_s12  ;;  %v3860_v53 = vrot.slane %v6336_v57, 4  ;;  %v4017_v50 = vsel %vm310_vm0, %v4016_v52, %v3537_v62  ;;  %v4156_v28 = vrot.slane %v6354_v6, 4  ;;  %v4024_v13 = vrot.slane %v4015_v29, 4 }
 0x266   : > { %v4021_v10 = vperm.slane %v4017_v50, %v4852_v16  ;;  %v3981_v55 = vsel %vm310_vm0, 0.0, %v3980_v24  ;;  %v3818_v42 = vrot.slane %v6544_v5, 4  ;;  %v3538_v57 = vrot.slane %v6253_v49, 4 }
 0x267   : > { %v4157_v4 = vsel %vm310_vm0, %v4156_v28, %v6311_v21  ;;  %v3875_v25 = vsel %vm310_vm0, 0.0, %v3874_v32  ;;  %v3861_v6 = vsel %vm310_vm0, %v3860_v53, %v6301_v26  ;;  %v3763_v44 = vsel %vm310_vm0, 0.0, %v6357_v11 }
 0x268   : > { %4216 = vrot.lane.b32.xlu1 %v3791_v1, %s4806_s13  ;;  %v4025_v23 = vsel %vm310_vm0, %v4021_v10, %v4024_v13  ;;  %v4069_v21 = vperm.slane %v4065_v20, %v4852_v16  ;;  %v4070_v63 = vrot.slane %v3763_v44, 4  ;;  %v3819_v45 = vsel %vm310_vm0, 0.0, %v3818_v42 }
 0x269   : > { %4226 = vrot.lane.b32.xlu0 %v3927_v60, %s4806_s13  ;;  %v6571_v15 = vperm.slane %v3861_v6, %v4854_v17  ;;  %v3539_v49 = vsel %vm310_vm0, 0.0, %v3538_v57  ;;  %v3994_v26 = vrot.slane %v3993_v39, 4  ;;  %v4113_v18 = vperm.slane %v6420_v31, %v4854_v17 }
 0x26a   : > { %v4071_v54 = vsel %vm310_vm0, %v4070_v63, %v3539_v49  ;;  %v4078_v3 = vrot.slane %v4069_v21, 4  ;;  %v4059_v46 = vperm.slane %v6430_v14, %v4854_v17  ;;  %v4048_v39 = vrot.slane %v6415_v22, 4 }
 0x26b   : > { %v4075_v11 = vperm.slane %v4071_v54, %v4852_v16  ;;  %v3995_v20 = vsel %vm310_vm0, %v3994_v26, %v6503_v56  ;;  %v3872_v38 = vrot.slane %v6571_v15, 4  ;;  %v4184_v31 = vrot.slane %v6433_v43, 4 }
 0x26c   : > { %v4049_v56 = vsel %vm310_vm0, %v4048_v39, %v6382_v12  ;;  %v4130_v33 = vrot.slane %v6511_v36, 4  ;;  %v6598_v0 = vperm.slane %v6446_v35, %v4854_v17  ;;  %v4022_v60 = vrot.slane %v4021_v10, 4 }
 0x26d   : > { %4346 = vrot.lane.b32.xlu2 %v3821_v8, %s4807_s14  ;;  %v4079_v1 = vsel %vm310_vm0, %v4075_v11, %v4078_v3  ;;  %v3873_v16 = vsel %vm310_vm0, 0.0, %v3872_v38  ;;  %v4185_v14 = vsel %vm310_vm0, %v4184_v31, %v6406_v59  ;;  %v4076_v48 = vrot.slane %v4075_v11, 4 }
 0x26e   : > { %v4131_v22 = vsel %vm310_vm0, %v4130_v33, %v6485_v19  ;;  %v6607_v12 = vperm.slane %v6522_v58, %v4854_v17  ;;  %v4023_v59 = vsel %vm310_vm0, %v4022_v60, %v4015_v29  ;;  %v4005_v35 = vperm.slane %v3997_v40, %v4854_v17 }
 0x26f   : > { %v4077_v43 = vsel %vm310_vm0, %v4076_v48, %v4069_v21  ;;  %v6614_v36 = vperm.slane %v4103_v2, %v4854_v17  ;;  %v4116_v19 = vrot.slane %v4113_v18, 4  ;;  %v4033_v30 = vperm.slane %v4025_v23, %v4854_v17 }
 0x270   : > { %4230 = vrot.lane.b32.xlu1 %v3981_v55, %s4806_s13  ;;  %v6622_v29 = vperm.slane %v4157_v4, %v4854_v17  ;;  %v4008_v40 = vrot.slane %v4005_v35, 4  ;;  %v6630_v8 = vperm.slane %v4049_v56, %v4854_v17  ;;  %v6635_v2 = vperm.slane %v3995_v20, %v4854_v17 }
 0x271   : > { %4350 = vrot.lane.b32.xlu0 %v3875_v25, %s4807_s14  ;;  %v4114_v58 = vrot.slane %v6614_v36, 4  ;;  %v4117_v27 = vsel %vm310_vm0, 0.0, %v4116_v19  ;;  %v4087_v32 = vperm.slane %v4079_v1, %v4854_v17  ;;  %v6646_v13 = vperm.slane %v4131_v22, %v4854_v17 }
 0x272   : > { %v4168_v24 = vrot.slane %v6622_v29, 4  ;;  %v4009_v52 = vsel %vm310_vm0, 0.0, %v4008_v40  ;;  %v4060_v53 = vrot.slane %v6630_v8, 4  ;;  %v4006_v28 = vrot.slane %v6635_v2, 4 }
 0x273   : > { %v4115_v61 = vsel %vm310_vm0, 0.0, %v4114_v58  ;;  %v4062_v55 = vrot.slane %v4059_v46, 4  ;;  %v4142_v42 = vrot.slane %v6646_v13, 4  ;;  %v6654_v57 = vperm.slane %v4185_v14, %v4854_v17 }
 0x274   : > { %v4169_v62 = vsel %vm310_vm0, 0.0, %v4168_v24  ;;  %v4061_v10 = vsel %vm310_vm0, 0.0, %v4060_v53  ;;  %v4007_v4 = vsel %vm310_vm0, 0.0, %v4006_v28  ;;  %v4036_v25 = vrot.slane %v4033_v30, 4 }
 0x275   : > { %4218 = vrot.lane.b32.xlu2 %v3819_v45, %s4806_s13  ;;  %v4063_v23 = vsel %vm310_vm0, 0.0, %v4062_v55  ;;  %v4143_v44 = vsel %vm310_vm0, 0.0, %v4142_v42  ;;  %v4196_v21 = vrot.slane %v6654_v57, 4  ;;  %v6664_v45 = vperm.slane %v4077_v43, %v4854_v17 }
 0x276   : > { %v4037_v63 = vsel %vm310_vm0, 0.0, %v4036_v25  ;;  %v4090_v49 = vrot.slane %v4087_v32, 4  ;;  %v6669_v26 = vperm.slane %v4023_v59, %v4854_v17  ;;  %v4170_v1 = vrot.slane %v6482_v41, 4 }
 0x277   : > { %v4197_v54 = vsel %vm310_vm0, 0.0, %v4196_v21  ;;  %v4198_v31 = vrot.slane %v6598_v0, 4  ;;  %v4144_v33 = vrot.slane %v6607_v12, 4 }
 0x278   : > { %4304 = vrot.lane.b32.xlu1 %v4113_v18, %s4805_s12  ;;  %v4088_v18 = vrot.slane %v6664_v45, 4  ;;  %v4091_v3 = vsel %vm310_vm0, 0.0, %v4090_v49  ;;  %v4034_v20 = vrot.slane %v6669_v26, 4  ;;  %v4171_v56 = vsel %vm310_vm0, 0.0, %v4170_v1 }
 0x279   : > { %4300 = vrot.lane.b32.xlu0 %v4059_v46, %s4805_s12  ;;  %v4199_v14 = vsel %vm310_vm0, 0.0, %v4198_v31  ;;  %v4145_v22 = vsel %vm310_vm0, 0.0, %v4144_v33 }
 0x27a   : > { %v4089_v46 = vsel %vm310_vm0, 0.0, %v4088_v18  ;;  %v4035_v39 = vsel %vm310_vm0, 0.0, %v4034_v20 }
 0x27d   : > { %4222 = vrot.lane.b32.xlu2 %v3873_v16, %s4806_s13 }
 0x280   : > { %4310 = vrot.lane.b32.xlu1 %v6598_v0, %s4805_s12 }
 0x281   : > { %4306 = vrot.lane.b32.xlu0 %v6607_v12, %s4805_s12 }
 0x285   : > { %4296 = vrot.lane.b32.xlu2 %v4005_v35, %s4805_s12 }
 0x288   : > { %4298 = vrot.lane.b32.xlu1 %v4033_v30, %s4805_s12 }
 0x289   : > { %4368 = vrot.lane.b32.xlu0 %v4117_v27, %s4807_s14 }
 0x28d   : > { %4240 = vrot.lane.b32.xlu2 %v4115_v61, %s4806_s13 }
 0x290   : > { %4360 = vrot.lane.b32.xlu1 %v4009_v52, %s4807_s14 }
 0x291   : > { %4244 = vrot.lane.b32.xlu0 %v4169_v62, %s4806_s13 }
 0x293   : > { %v6641_v50 = vpop.permute.xlu2 %4284 }
 0x295   : > { %4302 = vrot.lane.b32.xlu2 %v4087_v32, %s4805_s12 }
 0x298   : > { %4236 = vrot.lane.b32.xlu1 %v4061_v10, %s4806_s13 }
 0x299   : > { %4232 = vrot.lane.b32.xlu0 %v4007_v4, %s4806_s13 }
 0x29d   : > { %4364 = vrot.lane.b32.xlu2 %v4063_v23, %s4807_s14 }
 0x29f   : > { %v6657_v6 = vpop.permute.xlu2 %4290 }
 0x2a0   : > { %4242 = vrot.lane.b32.xlu1 %v4143_v44, %s4806_s13 }
 0x2a1   : > { %4362 = vrot.lane.b32.xlu0 %v4037_v63, %s4807_s14 }
 0x2a5   : > { %4246 = vrot.lane.b32.xlu2 %v4197_v54, %s4806_s13 }
 0x2a7   : > { %v4353_v11 = vpop.permute.xlu2 %4352 }
 0x2a8   : > { %4366 = vrot.lane.b32.xlu1 %v4091_v3, %s4807_s14 }
 0x2a9   : > { %4238 = vrot.lane.b32.xlu0 %v4089_v46, %s4806_s13  ;;  %v4293_v38 = vpop.permute.xlu1 %4292 }
 0x2ab   : > { %v4289_v17 = vpop.permute.xlu0 %4288 }
 0x2ad   : > { %4234 = vrot.lane.b32.xlu2 %v4035_v39, %s4806_s13 }
 0x2af   : > { %v4229_v16 = vpop.permute.xlu2 %4228 }
 0x2b0   : > { %4372 = vrot.lane.b32.xlu1 %v4171_v56, %s4807_s14  ;;  %v4398_v0 = vsel %vm1846_vm1, %v6378_v7, %v4229_v16 }
 0x2b1   : > { %4374 = vrot.lane.b32.xlu0 %v4199_v14, %s4807_s14  ;;  %v4281_v41 = vpop.permute.xlu1 %4280  ;;  %v4414_v35 = vsel %vm2407_vm2, %v4398_v0, %v4293_v38 }
 0x2b3   : > { %v4295_v48 = vpop.permute.xlu0 %4294 }
 0x2b5   : > { %4370 = vrot.lane.b32.xlu2 %v4145_v22, %s4807_s14 }
 0x2b7   : > { %v4359_v43 = vpop.permute.xlu2 %4358 }
 0x2b9   : > { %v4225_v60 = vpop.permute.xlu1 %4224 }
 0x2ba   : > { %v4396_v12 = vsel %vm1846_vm1, %v6298_v47, %v4225_v60 }
 0x2bb   : > { %v4357_v59 = vpop.permute.xlu0 %4356  ;;  %v4412_v19 = vsel %vm2407_vm2, %v4396_v12, %v4289_v17 }
 0x2bc   : > { %v4431_v7 = vsel %vm4424_vm3, %v4414_v35, %v4357_v59  ;;  %v4429_v30 = vsel %vm4424_vm3, %v4412_v19, %v4353_v11 }
 0x2bd   : > { %4448 = vst.msk [vmem:[%s6695_s18 + $0x18] sm:$0xf] %vm4441_vm4, %v4431_v7 }
 0x2be   : > { %4446 = vst.msk [vmem:[%s6695_s18 + $0x10] sm:$0xf] %vm4441_vm4, %v4429_v30 }
 0x2bf   : > { %v6707_v58 = vpop.permute.xlu2 %4308 }
 0x2c2   : > { %v4287_v27 = vpop.permute.xlu1 %4286 }
 0x2c3   : > { %v4283_v40 = vpop.permute.xlu0 %4282 }
 0x2c7   : > { %v4347_v47 = vpop.permute.xlu2 %4346 }
 0x2ca   : > { %v4349_v61 = vpop.permute.xlu1 %4348 }
 0x2cb   : > { %v4345_v24 = vpop.permute.xlu0 %4344 }
 0x2cf   : > { %v4219_v52 = vpop.permute.xlu2 %4218 }
 0x2d0   : > { %v4393_v62 = vsel %vm1846_vm1, %v6544_v5, %v4219_v52 }
 0x2d1   : > { %v4409_v32 = vsel %vm2407_vm2, %v4393_v62, %v4283_v40 }
 0x2d2   : > { %v4426_v53 = vsel %vm4424_vm3, %v4409_v32, %v4347_v47  ;;  %v4355_v28 = vpop.permute.xlu1 %4354 }
 0x2d3   : > { %4443 = vst.msk [vmem:[%s6695_s18 + $0x4] sm:$0xf] %vm4441_vm4, %v4426_v53  ;;  %v4221_v10 = vpop.permute.xlu0 %4220 }
 0x2d4   : > { %v4394_v55 = vsel %vm1846_vm1, %v6456_v51, %v4221_v10 }
 0x2d5   : > { %v4410_v4 = vsel %vm2407_vm2, %v4394_v55, %v6641_v50 }
 0x2d6   : > { %v4427_v42 = vsel %vm4424_vm3, %v4410_v4, %v4349_v61 }
 0x2d7   : > { %v4223_v23 = vpop.permute.xlu2 %4222  ;;  %4444 = vst.msk [vmem:[%s6695_s18 + $0x8] sm:$0xf] %vm4441_vm4, %v4427_v42 }
 0x2da   : > { %v4217_v5 = vpop.permute.xlu1 %4216 }
 0x2db   : > { %v4392_v25 = vsel %vm1846_vm1, %v6471_v37, %v4217_v5  ;;  %v4227_v44 = vpop.permute.xlu0 %4226  ;;  %v4395_v37 = vsel %vm1846_vm1, %v6571_v15, %v4223_v23 }
 0x2dc   : > { %v4408_v21 = vsel %vm2407_vm2, %v4392_v25, %v4281_v41  ;;  %v4397_v63 = vsel %vm1846_vm1, %v6489_v34, %v4227_v44  ;;  %v4411_v3 = vsel %vm2407_vm2, %v4395_v37, %v4287_v27 }
 0x2dd   : > { %v4425_v51 = vsel %vm4424_vm3, %v4408_v21, %v4345_v24  ;;  %v4413_v50 = vsel %vm2407_vm2, %v4397_v63, %v6657_v6 }
 0x2de   : > { %4442 = vst.msk [vmem:[%s6695_s18] sm:$0xf] %vm4441_vm4, %v4425_v51  ;;  %v4430_v49 = vsel %vm4424_vm3, %v4413_v50, %v4355_v28 }
 0x2df   : > { %v4297_v54 = vpop.permute.xlu2 %4296  ;;  %4447 = vst.msk [vmem:[%s6695_s18 + $0x14] sm:$0xf] %vm4441_vm4, %v4430_v49 }
 0x2e2   : > { %v4231_v18 = vpop.permute.xlu1 %4230 }
 0x2e3   : > { %v4399_v34 = vsel %vm1846_vm1, %v6527_v9, %v4231_v18  ;;  %v4351_v11 = vpop.permute.xlu0 %4350 }
 0x2e4   : > { %v4415_v20 = vsel %vm2407_vm2, %v4399_v34, %v4295_v48  ;;  %v4428_v6 = vsel %vm4424_vm3, %v4411_v3, %v4351_v11 }
 0x2e5   : > { %v4432_v46 = vsel %vm4424_vm3, %v4415_v20, %v4359_v43  ;;  %4445 = vst.msk [vmem:[%s6695_s18 + $0xc] sm:$0xf] %vm4441_vm4, %v4428_v6 }
 0x2e6   : > { %4449 = vst.msk [vmem:[%s6695_s18 + $0x1c] sm:$0xf] %vm4441_vm4, %v4432_v46 }
 0x2e7   : > { %v4241_v38 = vpop.permute.xlu2 %4240 }
 0x2e8   : > { %v4404_v56 = vsel %vm1846_vm1, %v6614_v36, %v4241_v38 }
 0x2ea   : > { %v4305_v15 = vpop.permute.xlu1 %4304 }
 0x2eb   : > { %v4301_v1 = vpop.permute.xlu0 %4300  ;;  %v4420_v33 = vsel %vm2407_vm2, %v4404_v56, %v4305_v15 }
 0x2ef   : > { %v4303_v17 = vpop.permute.xlu2 %4302 }
 0x2f2   : > { %v4311_v39 = vpop.permute.xlu1 %4310 }
 0x2f3   : > { %v4307_v9 = vpop.permute.xlu0 %4306 }
 0x2f7   : > { %v4365_v31 = vpop.permute.xlu2 %4364 }
 0x2fa   : > { %v4299_v16 = vpop.permute.xlu1 %4298 }
 0x2fb   : > { %v4369_v14 = vpop.permute.xlu0 %4368 }
 0x2fc   : > { %v4437_v41 = vsel %vm4424_vm3, %v4420_v33, %v4369_v14 }
 0x2fd   : > { %4454 = vst.msk [vmem:[%s6695_s18 + $0x30] sm:$0xf] %vm4441_vm4, %v4437_v41 }
 0x2ff   : > { %v4247_v48 = vpop.permute.xlu2 %4246 }
 0x300   : > { %v4407_v55 = vsel %vm1846_vm1, %v6654_v57, %v4247_v48 }
 0x302   : > { %v4361_v22 = vpop.permute.xlu1 %4360 }
 0x303   : > { %v4245_v43 = vpop.permute.xlu0 %4244 }
 0x304   : > { %v4406_v28 = vsel %vm1846_vm1, %v6622_v29, %v4245_v43 }
 0x305   : > { %v4422_v4 = vsel %vm2407_vm2, %v4406_v28, %v6707_v58 }
 0x307   : > { %v4235_v0 = vpop.permute.xlu2 %4234 }
 0x30a   : > { %v4237_v60 = vpop.permute.xlu1 %4236 }
 0x30b   : > { %v4402_v12 = vsel %vm1846_vm1, %v6630_v8, %v4237_v60  ;;  %v4233_v59 = vpop.permute.xlu0 %4232  ;;  %v4401_v8 = vsel %vm1846_vm1, %v6669_v26, %v4235_v0 }
 0x30c   : > { %v4418_v36 = vsel %vm2407_vm2, %v4402_v12, %v4301_v1  ;;  %v4400_v35 = vsel %vm1846_vm1, %v6635_v2, %v4233_v59  ;;  %v4417_v61 = vsel %vm2407_vm2, %v4401_v8, %v4299_v16 }
 0x30d   : > { %v4435_v19 = vsel %vm4424_vm3, %v4418_v36, %v4365_v31  ;;  %v4416_v7 = vsel %vm2407_vm2, %v4400_v35, %v4297_v54 }
 0x30e   : > { %4452 = vst.msk [vmem:[%s6695_s18 + $0x28] sm:$0xf] %vm4441_vm4, %v4435_v19  ;;  %v4433_v30 = vsel %vm4424_vm3, %v4416_v7, %v4361_v22 }
 0x30f   : > { %4450 = vst.msk [vmem:[%s6695_s18 + $0x20] sm:$0xf] %vm4441_vm4, %v4433_v30  ;;  %v4371_v2 = vpop.permute.xlu2 %4370 }
 0x312   : > { %v4243_v27 = vpop.permute.xlu1 %4242 }
 0x313   : > { %v4405_v40 = vsel %vm1846_vm1, %v6646_v13, %v4243_v27  ;;  %v4363_v47 = vpop.permute.xlu0 %4362 }
 0x314   : > { %v4421_v24 = vsel %vm2407_vm2, %v4405_v40, %v4307_v9  ;;  %v4434_v52 = vsel %vm4424_vm3, %v4417_v61, %v4363_v47 }
 0x315   : > { %v4438_v62 = vsel %vm4424_vm3, %v4421_v24, %v4371_v2  ;;  %4451 = vst.msk [vmem:[%s6695_s18 + $0x24] sm:$0xf] %vm4441_vm4, %v4434_v52 }
 0x316   : > { %4455 = vst.msk [vmem:[%s6695_s18 + $0x34] sm:$0xf] %vm4441_vm4, %v4438_v62 }
 0x31a   : > { %v4367_v26 = vpop.permute.xlu1 %4366 }
 0x31b   : > { %v4239_v32 = vpop.permute.xlu0 %4238 }
 0x31c   : > { %v4403_v13 = vsel %vm1846_vm1, %v6664_v45, %v4239_v32  ;;  %v4423_v45 = vsel %vm2407_vm2, %v4407_v55, %v4311_v39 }
 0x31d   : > { %v4419_v53 = vsel %vm2407_vm2, %v4403_v13, %v4303_v17 }
 0x31e   : > { %v4436_v10 = vsel %vm4424_vm3, %v4419_v53, %v4367_v26 }
 0x31f   : > { %4453 = vst.msk [vmem:[%s6695_s18 + $0x2c] sm:$0xf] %vm4441_vm4, %v4436_v10 }
 0x322   : > { %v4373_v42 = vpop.permute.xlu1 %4372 }
 0x323   : > { %v4439_v23 = vsel %vm4424_vm3, %v4422_v4, %v4373_v42  ;;  %v4375_v5 = vpop.permute.xlu0 %4374 }
 0x324   : > { %4456 = vst.msk [vmem:[%s6695_s18 + $0x38] sm:$0xf] %vm4441_vm4, %v4439_v23  ;;  %v4440_v29 = vsel %vm4424_vm3, %v4423_v45, %v4375_v5 }
 0x325   : > { %4457 = vst.msk [vmem:[%s6695_s18 + $0x3c] sm:$0xf] %vm4441_vm4, %v4440_v29 }
 0x326 PF: > { %s11_s6 = sadd.s32 1, %s4801_s6  }
 0x327   : > { %p8_p4 = scmp.ge.s32.totalorder %s11_s6, 4  }
 0x329   :  { %10 = sbr.rel (!%p8_p4) target bundleno = 1 (0x1), region = 54 }

// kernel: decomposed_attention_pallas.9
= control target key start
LH: loop header
LB: loop body
LE: loop exit
PB: predicated region body
PF: predicated region fallthrough
CT: control target
= control target key end

     0   :  { %vm31_vm0 = vcmask 261120   ;;  %s380_s1 = inlined_call_operand.vmem [shape: f32[32,32], index: 1, kind: input, shape index: {}]   ;;  %s381_s0 = inlined_call_operand.vmem [shape: f32[128,32], index: 0, kind: input, shape index: {}]   ;;  %s382_s2 = inlined_call_operand.vmem [shape: f32[128,32], index: 2, kind: output, shape index: {}]  }
   0x1   :  { %v30_v0 = vld [vmem:[%s380_s1 + $0x18] sm:$0xff]  ;;  %v29_v1 = vld [vmem:[%s380_s1 + $0x10] sm:$0xff]  ;;  %v28_v2 = vld [vmem:[%s380_s1 + $0x8] sm:$0xff] }
   0x2   :  { %198 = vmatpush.xpose.msk.msra.mxu2 %vm31_vm0, %v30_v0  ;;  %199 = vmatpush.xpose.msk.msra.mxu3 %vm31_vm0, %v30_v0  ;;  %v27_v3 = vld [vmem:[%s380_s1] sm:$0xff]  ;;  %v20_v8 = vld [vmem:[%s381_s0 + $0x48] sm:$0xff]  ;;  %v21_v12 = vld [vmem:[%s381_s0 + $0x50] sm:$0xff] }
   0x3   :  { %177 = vmatpush.xpose.msk.msra.mxu0 %vm31_vm0, %v30_v0  ;;  %197 = vmatpush.xpose.msk.msra.mxu1 %vm31_vm0, %v30_v0  ;;  %v19_v4 = vld [vmem:[%s381_s0 + $0x40] sm:$0xff]  ;;  %v24_v9 = vld [vmem:[%s381_s0 + $0x68] sm:$0xff]  ;;  %v25_v13 = vld [vmem:[%s381_s0 + $0x70] sm:$0xff] }
   0x4   :  { %v23_v5 = vld [vmem:[%s381_s0 + $0x60] sm:$0xff]  ;;  %v12_v10 = vld [vmem:[%s381_s0 + $0x8] sm:$0xff]  ;;  %v13_v14 = vld [vmem:[%s381_s0 + $0x10] sm:$0xff] }
   0x5   :  { %v11_v6 = vld [vmem:[%s381_s0] sm:$0xff]  ;;  %v16_v11 = vld [vmem:[%s381_s0 + $0x28] sm:$0xff]  ;;  %v17_v15 = vld [vmem:[%s381_s0 + $0x30] sm:$0xff] }
   0x6   :  { %201 = vmatpush.xpose.msk.msra.mxu2 %vm31_vm0, %v29_v1  ;;  %202 = vmatpush.xpose.msk.msra.mxu3 %vm31_vm0, %v29_v1  ;;  %v15_v7 = vld [vmem:[%s381_s0 + $0x20] sm:$0xff]  ;;  %v22_v16 = vld [vmem:[%s381_s0 + $0x58] sm:$0xff] }
   0x7   :  { %178 = vmatpush.xpose.msk.msra.mxu0 %vm31_vm0, %v29_v1  ;;  %200 = vmatpush.xpose.msk.msra.mxu1 %vm31_vm0, %v29_v1  ;;  %v26_v17 = vld [vmem:[%s381_s0 + $0x78] sm:$0xff] }
   0x8   :  { %v14_v18 = vld [vmem:[%s381_s0 + $0x18] sm:$0xff] }
   0x9   :  { %v18_v19 = vld [vmem:[%s381_s0 + $0x38] sm:$0xff] }
   0xa   :  { %204 = vmatpush.xpose.msk.msra.mxu2 %vm31_vm0, %v28_v2  ;;  %205 = vmatpush.xpose.msk.msra.mxu3 %vm31_vm0, %v28_v2 }
   0xb   :  { %179 = vmatpush.xpose.msk.msra.mxu0 %vm31_vm0, %v28_v2  ;;  %203 = vmatpush.xpose.msk.msra.mxu1 %vm31_vm0, %v28_v2 }
   0xe   :  { %207 = vmatpush.xpose.msk.msra.mxu2 %vm31_vm0, %v27_v3  ;;  %208 = vmatpush.xpose.msk.msra.mxu3 %vm31_vm0, %v27_v3 }
   0xf   :  { %180 = vmatpush.xpose.msk.msra.mxu0 %vm31_vm0, %v27_v3  ;;  %206 = vmatpush.xpose.msk.msra.mxu1 %vm31_vm0, %v27_v3 }
  0x11   :  { %189 = vmatmul.msk.f32.vlgmr.msra.gmra.mxu2 %vm31_vm0, %v19_v4  ;;  %193 = vmatmul.msk.f32.vlgmr.msra.gmra.mxu3 %vm31_vm0, %v23_v5 }
  0x12   :  { %181 = vmatmul.msk.f32.vlgmr.msra.gmra.mxu0 %vm31_vm0, %v11_v6  ;;  %185 = vmatmul.msk.f32.vlgmr.msra.gmra.mxu1 %vm31_vm0, %v15_v7 }
  0x19   :  { %190 = vmatmul.msk.f32.gmra.mxu2 %vm31_vm0, %v20_v8  ;;  %194 = vmatmul.msk.f32.gmra.mxu3 %vm31_vm0, %v24_v9 }
  0x1a   :  { %182 = vmatmul.msk.f32.gmra.mxu0 %vm31_vm0, %v12_v10  ;;  %186 = vmatmul.msk.f32.gmra.mxu1 %vm31_vm0, %v16_v11 }
  0x21   :  { %191 = vmatmul.msk.f32.gmra.mxu2 %vm31_vm0, %v21_v12  ;;  %195 = vmatmul.msk.f32.gmra.mxu3 %vm31_vm0, %v25_v13 }
  0x22   :  { %183 = vmatmul.msk.f32.gmra.mxu0 %vm31_vm0, %v13_v14  ;;  %187 = vmatmul.msk.f32.gmra.mxu1 %vm31_vm0, %v17_v15 }
  0x29   :  { %192 = vmatmul.msk.f32.gmra.mxu2 %vm31_vm0, %v22_v16  ;;  %196 = vmatmul.msk.f32.gmra.mxu3 %vm31_vm0, %v26_v17 }
  0x2a   :  { %184 = vmatmul.msk.f32.gmra.mxu0 %vm31_vm0, %v14_v18  ;;  %188 = vmatmul.msk.f32.gmra.mxu1 %vm31_vm0, %v18_v19 }
  0x8f   :  { %v109_v20 = vpop.f32.mrf.mxu0  ;;  %v121_v21 = vpop.f32.mrf.mxu1 }
  0x90   :  { %157 = vst.msk [vmem:[%s382_s2] sm:$0xff] %vm31_vm0, %v109_v20 }
  0x91   :  { %161 = vst.msk [vmem:[%s382_s2 + $0x20] sm:$0xff] %vm31_vm0, %v121_v21 }
  0x94   :  { %v133_v22 = vpop.f32.mrf.mxu2  ;;  %v145_v23 = vpop.f32.mrf.mxu3 }
  0x95   :  { %165 = vst.msk [vmem:[%s382_s2 + $0x40] sm:$0xff] %vm31_vm0, %v133_v22 }
  0x96   :  { %169 = vst.msk [vmem:[%s382_s2 + $0x60] sm:$0xff] %vm31_vm0, %v145_v23 }
  0x97   :  { %v112_v24 = vpop.f32.mrf.mxu0  ;;  %v124_v25 = vpop.f32.mrf.mxu1 }
  0x98   :  { %158 = vst.msk [vmem:[%s382_s2 + $0x8] sm:$0xff] %vm31_vm0, %v112_v24 }
  0x99   :  { %162 = vst.msk [vmem:[%s382_s2 + $0x28] sm:$0xff] %vm31_vm0, %v124_v25 }
  0x9c   :  { %v136_v26 = vpop.f32.mrf.mxu2  ;;  %v148_v27 = vpop.f32.mrf.mxu3 }
  0x9d   :  { %166 = vst.msk [vmem:[%s382_s2 + $0x48] sm:$0xff] %vm31_vm0, %v136_v26 }
  0x9e   :  { %170 = vst.msk [vmem:[%s382_s2 + $0x68] sm:$0xff] %vm31_vm0, %v148_v27 }
  0x9f   :  { %v115_v28 = vpop.f32.mrf.mxu0  ;;  %v127_v29 = vpop.f32.mrf.mxu1 }
  0xa0   :  { %159 = vst.msk [vmem:[%s382_s2 + $0x10] sm:$0xff] %vm31_vm0, %v115_v28 }
  0xa1   :  { %163 = vst.msk [vmem:[%s382_s2 + $0x30] sm:$0xff] %vm31_vm0, %v127_v29 }
  0xa4   :  { %v139_v30 = vpop.f32.mrf.mxu2  ;;  %v151_v31 = vpop.f32.mrf.mxu3 }
  0xa5   :  { %167 = vst.msk [vmem:[%s382_s2 + $0x50] sm:$0xff] %vm31_vm0, %v139_v30 }
  0xa6   :  { %171 = vst.msk [vmem:[%s382_s2 + $0x70] sm:$0xff] %vm31_vm0, %v151_v31 }
  0xa7   :  { %v118_v32 = vpop.f32.mrf.mxu0  ;;  %v130_v33 = vpop.f32.mrf.mxu1 }
  0xa8   :  { %160 = vst.msk [vmem:[%s382_s2 + $0x18] sm:$0xff] %vm31_vm0, %v118_v32 }
  0xa9   :  { %164 = vst.msk [vmem:[%s382_s2 + $0x38] sm:$0xff] %vm31_vm0, %v130_v33 }
  0xac   :  { %v142_v34 = vpop.f32.mrf.mxu2  ;;  %v154_v35 = vpop.f32.mrf.mxu3 }
  0xad   :  { %168 = vst.msk [vmem:[%s382_s2 + $0x58] sm:$0xff] %vm31_vm0, %v142_v34 }
  0xae   :  { %172 = vst.msk [vmem:[%s382_s2 + $0x78] sm:$0xff] %vm31_vm0, %v154_v35 }

// kernel: decomposed_attention_pallas.8
= control target key start
LH: loop header
LB: loop body
LE: loop exit
PB: predicated region body
PF: predicated region fallthrough
CT: control target
= control target key end

     0   :  { %s1576_s9 = smov 0   ;;  %s1578_s10 = smov 0   ;;  %s1993_s0 = inlined_call_operand.vmem [shape: f32[2,4,16,12,8], index: 0, kind: input, shape index: {}]   ;;  %s1994_s1 = inlined_call_operand.vmem [shape: f32[2,4,16,32], index: 1, kind: input, shape index: {}, may-alias: {1,2}]   ;;  %s1995_s2 = inlined_call_operand.vmem [shape: f32[2,4,16,32], index: 2, kind: output, shape index: {}, may-alias: {1,2}]  }
   0x1   :  { %s1580_s11 = smov 0   ;;  %s1582_s12 = smov 0  }
   0x2   :  { %s1584_s13 = smov 0  }
   0x3 LB: > { %s21_s14 = sadd.s32 1, %s1546_s11  ;;  %s24_s15 = sadd.s32 1, %s1550_s12  ;;  %s1554_s13 = sphi %s1584_s13, %s12_s13   ;;  %s1550_s12 = sphi %s1582_s12, %s1999_s12   ;;  %s1546_s11 = sphi %s1580_s11, %s1998_s11   ;;  %s1542_s10 = sphi %s1578_s10, %s1997_s10   ;;  %s1538_s9 = sphi %s1576_s9, %s1996_s9  }
   0x4   : > { %p22_p0 = scmp.ge.s32.totalorder %s21_s14, 4  ;;  %p1395_p1 = scmp.ge.s32.totalorder %s1554_s13, 1 }
   0x5   : > { %p148_p2 = scmp.lt.s32.totalorder %s1554_s13, 9 }
   0x6   : > { %s2001_s14 = smov (%p22_p0, %s21_s14), 0  ;;  %s2003_s15 = smov (!%p22_p0, %s24_s15), %s1550_s12 }
   0x7   : > { %p149_p3 = pnand %p1395_p1, %p148_p2  ;;  %p26_p4 = scmp.ge.s32.totalorder %s2003_s15, 2 }
   0x8   : > { %p187_p5 = scmp.lt.s32.totalorder (!%p149_p3), %s1542_s10, 1  ;;  %p189_p6 = scmp.lt.s32.totalorder (!%p149_p3), %s1538_s9, 3 }
   0x9   : > { %s2005_s15 = smov (%p26_p4, %s2003_s15), 0  ;;  %152 = sbr.rel (%p149_p3) target bundleno = 621 (0x26d), region = 28 }
   0xa   : > { %s1558_s23 = smov (!%p149_p3), 16   ;;  %s1559_s24 = smov (!%p149_p3), 8  }
   0xb   : > { %s1560_s25 = smov (!%p149_p3), 24  }
   0xe   : > { %s2007_s10 = smov (!%p187_p5, %s1542_s10), 1  ;;  %s2009_s9 = smov (!%p189_p6, %s1538_s9), 3  ;;  %v1556_v0 = vmov 1983009808   ;;  %v1557_v2 = vmov 1934713408  }
   0xf   : > { %s1397_s16 = sshll.u32 %s2007_s10, 7  ;;  %s1396_s17 = sshll.u32 %s2009_s9, 5  ;;  %v266_v1 = vunpack.c.l.s4 %v1556_v0  ;;  %v292_v3 = vunpack.c.l.s4 %v1557_v2  ;;  %vm263_vm0 = vcmask 1047556   ;;  %vm647_vm1 = vcmask 64512  }
  0x10   : > { %s193_s18 = sadd.s32 %s1397_s16, %s1396_s17  ;;  %vm788_vm2 = vcmask 130048   ;;  %s1399_s26 = sshll.u32 %s2009_s9, 1  ;;  %vm1265_vm3 = vcmask 195584   ;;  %vm1272_vm4 = vcmask 261120  }
  0x11   : > { %s1398_s19 = sshll.u32 %s193_s18, 3  ;;  %v1629_v11 = vunpack.c.0.s8 %v266_v1  ;;  %v1637_v17 = vunpack.c.0.s8 %v292_v3  ;;  %s1400_s27 = sshll.u32 %s2007_s10, 3 }
  0x12   : > { %s1615_s22 = scalar_lea.vmem %s1993_s0, %s1398_s19  ;;  %s202_s28 = sadd.s32 %s1400_s27, %s1399_s26 }
  0x13   : > { %v230_v4 = vld [vmem:[%s1615_s22 + $0x80] sm:$0xff]  ;;  %v1619_v5 = vld [vmem:[%s1615_s22 + $0x90] sm:$0xff]  ;;  %s1401_s29 = sshll.u32 %s202_s28, 3 }
  0x14   : > { %v234_v6 = vld [vmem:[%s1615_s22 + $0xa0] sm:$0xff]  ;;  %v236_v7 = vld [vmem:[%s1615_s22 + $0xb0] sm:$0xff]  ;;  %v1627_v10 = vmul.f32 2.828427, %v230_v4  ;;  %v399_v12 = vrot.slane %v230_v4, 4  ;;  %v400_v23 = vrot.slane %v1619_v5, 4  ;;  %s204_s4 = scalar_lea.vmem %s1994_s1, %s1401_s29  ;;  %s213_s7 = scalar_lea.vmem %s1995_s2, %s1401_s29 }
  0x15   : > { %v238_v8 = vld [vmem:[%s1615_s22 + $0xc0] sm:$0xff]  ;;  %v1625_v9 = vld [vmem:[%s1615_s22 + $0xd0] sm:$0xff]  ;;  %v1633_v15 = vmul.f32 2.828427, %v234_v6  ;;  %v1635_v16 = vmul.f32 2.828427, %v236_v7 }
  0x16   : > { %v242_v13 = vld [vmem:[%s1615_s22 + $0xe0] sm:$0xff]  ;;  %v244_v14 = vld [vmem:[%s1615_s22 + $0xf0] sm:$0xff]  ;;  %v1639_v18 = vmul.f32 2.828427, %v238_v8  ;;  %v480_v21 = vsel %vm263_vm0, %v234_v6, %v399_v12  ;;  %v403_v24 = vrot.slane %v238_v8, 4  ;;  %v404_v25 = vrot.slane %v1625_v9, 4 }
  0x17   : > { %v1641_v19 = vmul.f32 2.828427, %v242_v13  ;;  %v1643_v20 = vmul.f32 2.828427, %v244_v14  ;;  %v319_v22 = vrot.slane %v1633_v15, 4  ;;  %v1650_v26 = vld [vmem:[%s1615_s22] sm:$0xff]  ;;  %v484_v29 = vperm.slane %v480_v21, %v1629_v11 }
  0x18   : > { %v1653_v27 = vld [vmem:[%s1615_s22 + $0x10] sm:$0xff]  ;;  %v218_v30 = vld [vmem:[%s1615_s22 + $0x20] sm:$0xff]  ;;  %v391_v32 = vrot.slane %v1650_v26, 4  ;;  %v486_v34 = vsel %vm263_vm0, %v236_v7, %v400_v23  ;;  %v492_v35 = vsel %vm263_vm0, %v242_v13, %v403_v24  ;;  %v498_v36 = vsel %vm263_vm0, %v244_v14, %v404_v25 }
  0x19   : > { %v331_v28 = vrot.slane %v1641_v19, 4  ;;  %v220_v31 = vld [vmem:[%s1615_s22 + $0x30] sm:$0xff]  ;;  %v392_v33 = vrot.slane %v1653_v27, 4  ;;  %v226_v37 = vld [vmem:[%s1615_s22 + $0x60] sm:$0xff]  ;;  %v248_v39 = vmul.f32 2.828427, %v218_v30  ;;  %v490_v40 = vperm.slane %v486_v34, %v1629_v11 }
  0x1a   : > { %v228_v38 = vld [vmem:[%s1615_s22 + $0x70] sm:$0xff]  ;;  %v496_v41 = vperm.slane %v492_v35, %v1629_v11  ;;  %v502_v42 = vperm.slane %v498_v36, %v1629_v11  ;;  %v505_v43 = vrot.slane %v484_v29, 4  ;;  %v249_v44 = vmul.f32 2.828427, %v220_v31  ;;  %v222_v53 = vld [vmem:[%s1615_s22 + $0x40] sm:$0xff] }
  0x1b   : > { %v252_v45 = vmul.f32 2.828427, %v226_v37  ;;  %v1669_v46 = vmul.f32 2.828427, %v228_v38  ;;  %v424_v47 = vsel %vm263_vm0, %v218_v30, %v391_v32  ;;  %v503_v48 = vrot.slane %v490_v40, 4  ;;  %v224_v54 = vld [vmem:[%s1615_s22 + $0x50] sm:$0xff] }
  0x1c   : > { %v515_v49 = vrot.slane %v502_v42, 4  ;;  %v506_v50 = vsel %vm263_vm0, %v490_v40, %v505_v43  ;;  %v517_v51 = vrot.slane %v496_v41, 4  ;;  %v262_v55 = vrot.slane %v248_v39, 4 }
  0x1d   : > { %v514_v52 = vperm.slane %v506_v50, %v1637_v17  ;;  %v269_v56 = vrot.slane %v249_v44, 4  ;;  %v275_v57 = vrot.slane %v252_v45, 4  ;;  %v504_v58 = vsel %vm263_vm0, %v503_v48, %v484_v29 }
  0x1e   : > { %v516_v59 = vsel %vm263_vm0, %v515_v49, %v496_v41  ;;  %v518_v60 = vsel %vm263_vm0, %v502_v42, %v517_v51  ;;  %v281_v61 = vrot.slane %v1669_v46, 4  ;;  %v510_v62 = vperm.slane %v504_v58, %v1637_v17 }
  0x1f   : > { %v522_v63 = vperm.slane %v516_v59, %v1637_v17  ;;  %v526_v0 = vperm.slane %v518_v60, %v1637_v17  ;;  %v533_v1 = vrot.slane %v514_v52, 4  ;;  %v395_v2 = vrot.slane %v222_v53, 4 }
  0x20   : > { %v396_v3 = vrot.slane %v224_v54, 4  ;;  %v428_v4 = vperm.slane %v424_v47, %v1629_v11  ;;  %v430_v6 = vsel %vm263_vm0, %v220_v31, %v392_v33  ;;  %v529_v8 = vrot.slane %v510_v62, 4 }
  0x21   : > { %v527_v7 = vrot.slane %v522_v63, 4  ;;  %v531_v12 = vrot.slane %v526_v0, 4  ;;  %v534_v13 = vsel %vm263_vm0, %v526_v0, %v533_v1  ;;  %v434_v14 = vperm.slane %v430_v6, %v1629_v11 }
  0x22   : > { %1425 = vmatpush.xpose.msk.msra.mxu3 %vm647_vm1, %v534_v13  ;;  %v436_v21 = vsel %vm263_vm0, %v226_v37, %v395_v2  ;;  %v442_v23 = vsel %vm263_vm0, %v228_v38, %v396_v3  ;;  %v449_v24 = vrot.slane %v428_v4, 4  ;;  %v530_v29 = vsel %vm263_vm0, %v522_v63, %v529_v8 }
  0x23   : > { %v528_v25 = vsel %vm263_vm0, %v527_v7, %v510_v62  ;;  %v532_v30 = vsel %vm263_vm0, %v531_v12, %v514_v52  ;;  %v440_v31 = vperm.slane %v436_v21, %v1629_v11  ;;  %1417 = vmatpush.xpose.msk.msra.mxu1 %vm647_vm1, %v530_v29  ;;  %v446_v32 = vperm.slane %v442_v23, %v1629_v11 }
  0x24   : > { %1413 = vmatpush.xpose.msk.msra.mxu0 %vm647_vm1, %v528_v25  ;;  %v447_v33 = vrot.slane %v434_v14, 4  ;;  %v450_v34 = vsel %vm263_vm0, %v434_v14, %v449_v24  ;;  %v246_v35 = vmul.f32 2.828427, %v1650_v26  ;;  %1421 = vmatpush.xpose.msk.msra.mxu2 %vm647_vm1, %v532_v30  ;;  %v247_v38 = vmul.f32 2.828427, %v1653_v27 }
  0x25   : > { %v458_v36 = vperm.slane %v450_v34, %v1637_v17  ;;  %v461_v37 = vrot.slane %v440_v31, 4  ;;  %v250_v39 = vmul.f32 2.828427, %v222_v53  ;;  %v459_v41 = vrot.slane %v446_v32, 4 }
  0x26   : > { %v448_v40 = vsel %vm263_vm0, %v447_v33, %v428_v4  ;;  %v251_v42 = vmul.f32 2.828427, %v224_v54  ;;  %v264_v43 = vsel %vm263_vm0, %v262_v55, %v246_v35  ;;  %v270_v27 = vsel %vm263_vm0, %v269_v56, %v247_v38 }
  0x27   : > { %v454_v44 = vperm.slane %v448_v40, %v1637_v17  ;;  %v462_v45 = vsel %vm263_vm0, %v446_v32, %v461_v37  ;;  %v477_v46 = vrot.slane %v458_v36, 4  ;;  %v268_v26 = vperm.slane %v264_v43, %v1629_v11 }
  0x28   : > { %v460_v47 = vsel %vm263_vm0, %v459_v41, %v440_v31  ;;  %v470_v48 = vperm.slane %v462_v45, %v1637_v17  ;;  %v276_v49 = vsel %vm263_vm0, %v275_v57, %v250_v39  ;;  %v274_v52 = vperm.slane %v270_v27, %v1629_v11 }
  0x29   : > { %v466_v50 = vperm.slane %v460_v47, %v1637_v17  ;;  %v473_v51 = vrot.slane %v454_v44, 4  ;;  %v280_v53 = vperm.slane %v276_v49, %v1629_v11  ;;  %v282_v58 = vsel %vm263_vm0, %v281_v61, %v251_v42 }
  0x2a   : > { %v475_v54 = vrot.slane %v470_v48, 4  ;;  %v478_v55 = vsel %vm263_vm0, %v470_v48, %v477_v46  ;;  %v289_v59 = vrot.slane %v268_v26, 4  ;;  %v286_v56 = vperm.slane %v282_v58, %v1629_v11 }
  0x2b   : > { %v471_v60 = vrot.slane %v466_v50, 4  ;;  %v474_v62 = vsel %vm263_vm0, %v466_v50, %v473_v51  ;;  %1426 = vmatpush.xpose.msk.msra.mxu3 %vm647_vm1, %v478_v55  ;;  %v287_v57 = vrot.slane %v274_v52, 4  ;;  %v301_v1 = vrot.slane %v280_v53, 4 }
  0x2c   : > { %1418 = vmatpush.xpose.msk.msra.mxu1 %vm647_vm1, %v474_v62  ;;  %v476_v63 = vsel %vm263_vm0, %v475_v54, %v458_v36  ;;  %v290_v0 = vsel %vm263_vm0, %v274_v52, %v289_v59  ;;  %v255_v2 = vmul.f32 2.828427, %v1619_v5  ;;  %v299_v4 = vrot.slane %v286_v56, 4 }
  0x2d   : > { %v472_v61 = vsel %vm263_vm0, %v471_v60, %v454_v44  ;;  %1422 = vmatpush.xpose.msk.msra.mxu2 %vm647_vm1, %v476_v63  ;;  %v288_v3 = vsel %vm263_vm0, %v287_v57, %v268_v26  ;;  %v298_v6 = vperm.slane %v290_v0, %v1637_v17  ;;  %v302_v8 = vsel %vm263_vm0, %v286_v56, %v301_v1 }
  0x2e   : > { %1414 = vmatpush.xpose.msk.msra.mxu0 %vm647_vm1, %v472_v61  ;;  %v294_v7 = vperm.slane %v288_v3, %v1637_v17  ;;  %v259_v12 = vmul.f32 2.828427, %v1625_v9  ;;  %v320_v5 = vsel %vm263_vm0, %v319_v22, %v1627_v10  ;;  %v300_v13 = vsel %vm263_vm0, %v299_v4, %v280_v53  ;;  %v237_v4 = vld [vmem:[%s1615_s22 + $0xb8] sm:$0xf] }
  0x2f   : > { %v310_v14 = vperm.slane %v302_v8, %v1637_v17  ;;  %v317_v21 = vrot.slane %v298_v6, 4  ;;  %v324_v23 = vperm.slane %v320_v5, %v1629_v11  ;;  %v306_v24 = vperm.slane %v300_v13, %v1637_v17  ;;  %v235_v5 = vld [vmem:[%s1615_s22 + $0xa8] sm:$0xf]  ;;  %v241_v13 = vld [vmem:[%s1615_s22 + $0xd8] sm:$0xf] }
  0x30   : > { %v313_v25 = vrot.slane %v294_v7, 4  ;;  %v325_v29 = vrot.slane %v1635_v16, 4  ;;  %v332_v9 = vsel %vm263_vm0, %v331_v28, %v1639_v18  ;;  %v337_v30 = vrot.slane %v1643_v20, 4 }
  0x31   : > { %v315_v15 = vrot.slane %v310_v14, 4  ;;  %v318_v10 = vsel %vm263_vm0, %v310_v14, %v317_v21  ;;  %v336_v22 = vperm.slane %v332_v9, %v1629_v11  ;;  %v311_v31 = vrot.slane %v306_v24, 4  ;;  %v243_v14 = vld [vmem:[%s1615_s22 + $0xe8] sm:$0xf] }
  0x32   : > { %v314_v32 = vsel %vm263_vm0, %v306_v24, %v313_v25  ;;  %1427 = vmatmul.msk.f32.vlgmr.msra.gmra.mxu3 %vm647_vm1, %v318_v10  ;;  %v326_v33 = vsel %vm263_vm0, %v325_v29, %v255_v2  ;;  %v345_v16 = vrot.slane %v324_v23, 4  ;;  %v338_v28 = vsel %vm263_vm0, %v337_v30, %v259_v12  ;;  %v233_v12 = vld [vmem:[%s1615_s22 + $0x98] sm:$0xf]  ;;  %v231_v29 = vld [vmem:[%s1615_s22 + $0x88] sm:$0xf] }
  0x33   : > { %1419 = vmatmul.msk.f32.vlgmr.msra.gmra.mxu1 %vm647_vm1, %v314_v32  ;;  %v316_v19 = vsel %vm263_vm0, %v315_v15, %v298_v6  ;;  %v330_v18 = vperm.slane %v326_v33, %v1629_v11  ;;  %v357_v34 = vrot.slane %v336_v22, 4  ;;  %v312_v35 = vsel %vm263_vm0, %v311_v31, %v294_v7  ;;  %v245_v6 = vld [vmem:[%s1615_s22 + $0xf8] sm:$0xf]  ;;  %v239_v9 = vld [vmem:[%s1615_s22 + $0xc8] sm:$0xf] }
  0x34   : > { %1423 = vmatmul.msk.f32.vlgmr.msra.gmra.mxu2 %vm647_vm1, %v316_v19  ;;  %v342_v20 = vperm.slane %v338_v28, %v1629_v11  ;;  %1415 = vmatmul.msk.f32.vlgmr.msra.gmra.mxu0 %vm647_vm1, %v312_v35  ;;  %v597_v7 = vrot.slane %v237_v4, 4  ;;  %v609_v8 = vrot.slane %v245_v6, 4  ;;  %v591_v21 = vrot.slane %v235_v5, 4  ;;  %v221_v25 = vld [vmem:[%s1615_s22 + $0x38] sm:$0xf] }
  0x35   : > { %v346_v36 = vsel %vm263_vm0, %v330_v18, %v345_v16  ;;  %v343_v37 = vrot.slane %v330_v18, 4  ;;  %v603_v10 = vrot.slane %v243_v14, 4  ;;  %v541_v30 = vrot.slane %v221_v25, 4  ;;  %v217_v32 = vld [vmem:[%s1615_s22 + $0x18] sm:$0xf] }
  0x36   : > { %v354_v38 = vperm.slane %v346_v36, %v1637_v17  ;;  %v358_v39 = vsel %vm263_vm0, %v342_v20, %v357_v34  ;;  %v355_v40 = vrot.slane %v342_v20, 4  ;;  %v610_v24 = vsel %vm263_vm0, %v609_v8, %v241_v13  ;;  %v219_v33 = vld [vmem:[%s1615_s22 + $0x28] sm:$0xf]  ;;  %v225_v16 = vld [vmem:[%s1615_s22 + $0x58] sm:$0xf] }
  0x37   : > { %v366_v41 = vperm.slane %v358_v39, %v1637_v17  ;;  %v344_v42 = vsel %vm263_vm0, %v343_v37, %v324_v23  ;;  %v598_v23 = vsel %vm263_vm0, %v597_v7, %v233_v12  ;;  %v592_v31 = vsel %vm263_vm0, %v591_v21, %v231_v29  ;;  %v215_v35 = vld [vmem:[%s1615_s22 + $0x8] sm:$0xf] }
  0x38   : > { %v373_v43 = vrot.slane %v354_v38, 4  ;;  %v350_v44 = vperm.slane %v344_v42, %v1637_v17  ;;  %v356_v45 = vsel %vm263_vm0, %v355_v40, %v336_v22  ;;  %v602_v15 = vperm.slane %v598_v23, %v1629_v11  ;;  %v223_v20 = vld [vmem:[%s1615_s22 + $0x48] sm:$0xf] }
  0x39   : > { %v371_v46 = vrot.slane %v366_v41, 4  ;;  %v362_v26 = vperm.slane %v356_v45, %v1637_v17  ;;  %v614_v22 = vperm.slane %v610_v24, %v1629_v11  ;;  %v596_v19 = vperm.slane %v592_v31, %v1629_v11  ;;  %v227_v37 = vld [vmem:[%s1615_s22 + $0x68] sm:$0xf] }
  0x3a   : > { %v374_v47 = vsel %vm263_vm0, %v366_v41, %v373_v43  ;;  %v369_v48 = vrot.slane %v350_v44, 4  ;;  %v604_v18 = vsel %vm263_vm0, %v603_v10, %v239_v9  ;;  %v615_v28 = vrot.slane %v602_v15, 4 }
  0x3b   : > { %v372_v27 = vsel %vm263_vm0, %v371_v46, %v354_v38  ;;  %1428 = vmatmul.msk.f32.gmra.mxu3 %vm647_vm1, %v374_v47  ;;  %v367_v49 = vrot.slane %v362_v26, 4  ;;  %v627_v34 = vrot.slane %v614_v22, 4  ;;  %v608_v36 = vperm.slane %v604_v18, %v1629_v11  ;;  %v229_v38 = vld [vmem:[%s1615_s22 + $0x78] sm:$0xf] }
  0x3c   : > { %1424 = vmatmul.msk.f32.gmra.mxu2 %vm647_vm1, %v372_v27  ;;  %v370_v50 = vsel %vm263_vm0, %v362_v26, %v369_v48  ;;  %v535_v39 = vrot.slane %v219_v33, 4  ;;  %v542_v40 = vsel %vm263_vm0, %v541_v30, %v217_v32  ;;  %v616_v41 = vsel %vm263_vm0, %v615_v28, %v596_v19 }
  0x3d   : > { %v368_v51 = vsel %vm263_vm0, %v367_v49, %v350_v44  ;;  %1420 = vmatmul.msk.f32.gmra.mxu1 %vm647_vm1, %v370_v50  ;;  %v546_v42 = vperm.slane %v542_v40, %v1629_v11  ;;  %v547_v43 = vrot.slane %v227_v37, 4  ;;  %v553_v44 = vrot.slane %v229_v38, 4 }
  0x3e   : > { %1416 = vmatmul.msk.f32.gmra.mxu0 %vm647_vm1, %v368_v51  ;;  %v622_v45 = vperm.slane %v616_v41, %v1637_v17  ;;  %v628_v46 = vsel %vm263_vm0, %v627_v34, %v608_v36  ;;  %v536_v26 = vsel %vm263_vm0, %v535_v39, %v215_v35  ;;  %v617_v6 = vrot.slane %v596_v19, 4 }
  0x3f   : > { %v634_v47 = vperm.slane %v628_v46, %v1637_v17  ;;  %v540_v48 = vperm.slane %v536_v26, %v1629_v11  ;;  %v548_v27 = vsel %vm263_vm0, %v547_v43, %v223_v20  ;;  %v554_v49 = vsel %vm263_vm0, %v553_v44, %v225_v16 }
  0x40   : > { %v641_v50 = vrot.slane %v622_v45, 4  ;;  %v552_v51 = vperm.slane %v548_v27, %v1629_v11  ;;  %v618_v21 = vsel %vm263_vm0, %v602_v15, %v617_v6 }
  0x41   : > { %v561_v23 = vrot.slane %v540_v48, 4  ;;  %v626_v24 = vperm.slane %v618_v21, %v1637_v17 }
  0x42   : > { %v573_v5 = vrot.slane %v552_v51, 4 }
  0x43   : > { %v645_v19 = vrot.slane %v626_v24, 4 }
  0xb0   : > { %v1774_v52 = vpop.f32.mrf.mxu1 }
  0xb1   : > { %v795_v53 = vsel %vm788_vm2, %v1774_v52, -inf  ;;  %v1778_v54 = vpop.f32.mrf.mxu0 }
  0xb2   : > { %796 = vmax.xlane.f32.xlu2 %v795_v53  ;;  %v789_v55 = vsel %vm788_vm2, %v1778_v54, -inf  ;;  %v558_v53 = vperm.slane %v554_v49, %v1629_v11 }
  0xb3   : > { %790 = vmax.xlane.f32.xlu1 %v789_v55  ;;  %v559_v55 = vrot.slane %v546_v42, 4 }
  0xb4   : > { %v574_v29 = vsel %vm263_vm0, %v558_v53, %v573_v5 }
  0xb5   : > { %v1782_v58 = vpop.f32.mrf.mxu3  ;;  %v582_v30 = vperm.slane %v574_v29, %v1637_v17 }
  0xb6   : > { %v807_v56 = vsel %vm788_vm2, %v1782_v58, -inf }
  0xb7   : > { %v1784_v59 = vpop.f32.mrf.mxu2  ;;  %v587_v33 = vrot.slane %v582_v30, 4 }
  0xb8   : > { %v801_v60 = vsel %vm788_vm2, %v1784_v59, -inf }
  0xb9   : > { %802 = vmax.xlane.f32.xlu0 %v801_v60  ;;  %v639_v60 = vrot.slane %v634_v47, 4 }
  0xba   : > { %v1800_v2 = vpop.f32.mrf.mxu1 }
  0xbb   : > { %v1798_v1 = vpop.f32.mrf.mxu0  ;;  %v798_v61 = vsel %vm788_vm2, %v1800_v2, -inf }
  0xbc   : > { %v792_v3 = vsel %vm788_vm2, %v1798_v1, -inf }
  0xbe   : > { %v1788_v62 = vpop.f32.mrf.mxu3 }
  0xbf   : > { %v1792_v57 = vpop.f32.mrf.mxu2  ;;  %v810_v63 = vsel %vm788_vm2, %v1788_v62, -inf }
  0xc0   : > { %811 = vmax.xlane.f32.xlu2 %v810_v63  ;;  %v804_v0 = vsel %vm788_vm2, %v1792_v57, -inf  ;;  %v642_v63 = vsel %vm263_vm0, %v634_v47, %v641_v50 }
  0xc1   : > { %808 = vmax.xlane.f32.xlu0 %v807_v56  ;;  %805 = vmax.xlane.f32.xlu1 %v804_v0  ;;  %v629_v56 = vrot.slane %v608_v36, 4  ;;  %v560_v0 = vsel %vm263_vm0, %v559_v55, %v540_v48 }
  0xc2   : > { %942 = vmatpush.msrb.mxu1 %v642_v63  ;;  %v566_v4 = vperm.slane %v560_v0, %v1637_v17 }
  0xc3   : > { %v630_v7 = vsel %vm263_vm0, %v614_v22, %v629_v56  ;;  %v562_v22 = vsel %vm263_vm0, %v546_v42, %v561_v23 }
  0xc4   : > { %v638_v12 = vperm.slane %v630_v7, %v1637_v17  ;;  %v585_v14 = vrot.slane %v566_v4, 4  ;;  %v570_v32 = vperm.slane %v562_v22, %v1637_v17 }
  0xc6   : > { %v643_v25 = vrot.slane %v638_v12, 4  ;;  %v588_v16 = vsel %vm263_vm0, %v587_v33, %v570_v32  ;;  %v646_v18 = vsel %vm263_vm0, %v638_v12, %v645_v19  ;;  %v589_v28 = vrot.slane %v570_v32, 4 }
  0xc7   : > { %1000 = vmatpush.msrb.mxu3 %v646_v18 }
  0xc8   : > { %v644_v31 = vsel %vm263_vm0, %v643_v25, %v626_v24  ;;  %v590_v34 = vsel %vm263_vm0, %v582_v30, %v589_v28 }
  0xc9   : > { %799 = vmax.xlane.f32.xlu1 %v798_v61  ;;  %793 = vmax.xlane.f32.xlu0 %v792_v3  ;;  %v571_v61 = vrot.slane %v558_v53, 4  ;;  %v640_v3 = vsel %vm263_vm0, %v639_v60, %v622_v45 }
  0xca   : > { %913 = vmatpush.msrb.mxu0 %v640_v3  ;;  %971 = vmatpush.msrb.mxu2 %v644_v31 }
  0xcb   : > { %v572_v8 = vsel %vm263_vm0, %v571_v61, %v552_v51  ;;  %1001 = vmatpush.msrb.mxu3 %v590_v34 }
  0xcc   : > { %v578_v13 = vperm.slane %v572_v8, %v1637_v17  ;;  %972 = vmatpush.msrb.mxu2 %v588_v16 }
  0xce   : > { %v583_v9 = vrot.slane %v578_v13, 4  ;;  %v586_v10 = vsel %vm263_vm0, %v578_v13, %v585_v14 }
  0xcf   : > { %943 = vmatpush.msrb.mxu1 %v586_v10 }
  0xd0   : > { %v584_v15 = vsel %vm263_vm0, %v583_v9, %v566_v4 }
  0xd1   : > { %914 = vmatpush.msrb.mxu0 %v584_v15 }
 0x125   : > { %v797_v35 = vpop.xlane.xlu2 %796 }
 0x126   : > { %v815_v20 = vsub.f32 %v1774_v52, %v797_v35  ;;  %v791_v36 = vpop.xlane.xlu1 %790 }
 0x127   : > { %v813_v38 = vsub.f32 %v1778_v54, %v791_v36 }
 0x128   : > { %v825_v37 = vmul.f32 1.442695, %v815_v20 }
 0x129   : > { %v821_v39 = vmul.f32 1.442695, %v813_v38 }
 0x12a   : > { %1484 = vpow2.f32 %v825_v37 }
 0x12b   : > { %1486 = vpow2.f32 %v821_v39 }
 0x12c   : > { %v803_v40 = vpop.xlane.xlu0 %802 }
 0x12d   : > { %v817_v41 = vsub.f32 %v1784_v59, %v803_v40 }
 0x12f   : > { %v829_v42 = vmul.f32 1.442695, %v817_v41 }
 0x130   : > { %v1485_v43 = vpop.eup %1484 }
 0x131   : > { %1488 = vpow2.f32 %v829_v42  ;;  %1431 = vmatmul.msk.f32.vlgmr.msrb.gmra.mxu1 %vm788_vm2, %v1485_v43  ;;  %v1487_v44 = vpop.eup %1486  ;;  %v843_v8 = vsel %vm788_vm2, %v1485_v43, 0.0 }
 0x132   : > { %1429 = vmatmul.msk.f32.vlgmr.msrb.gmra.mxu0 %vm788_vm2, %v1487_v44  ;;  %v837_v52 = vsel %vm788_vm2, %v1487_v44, 0.0 }
 0x133   : > { %v812_v45 = vpop.xlane.xlu2 %811  ;;  %838 = vadd.xlane.f32.xlu1 %v837_v52 }
 0x134   : > { %v809_v46 = vpop.xlane.xlu0 %808  ;;  %v820_v54 = vsub.f32 %v1788_v62, %v812_v45  ;;  %v806_v26 = vpop.xlane.xlu1 %805 }
 0x135   : > { %v819_v47 = vsub.f32 %v1782_v58, %v809_v46  ;;  %v818_v59 = vsub.f32 %v1792_v57, %v806_v26 }
 0x136   : > { %v835_v48 = vmul.f32 1.442695, %v820_v54 }
 0x137   : > { %v1489_v27 = vpop.eup %1488  ;;  %v833_v49 = vmul.f32 1.442695, %v819_v47  ;;  %v831_v50 = vmul.f32 1.442695, %v818_v59 }
 0x138   : > { %1490 = vpow2.f32 %v835_v48  ;;  %1433 = vmatmul.msk.f32.vlgmr.msrb.gmra.mxu2 %vm788_vm2, %v1489_v27  ;;  %v849_v51 = vsel %vm788_vm2, %v1489_v27, 0.0 }
 0x139   : > { %1492 = vpow2.f32 %v833_v49  ;;  %850 = vadd.xlane.f32.xlu2 %v849_v51 }
 0x13a   : > { %1494 = vpow2.f32 %v831_v50 }
 0x13c   : > { %v800_v53 = vpop.xlane.xlu1 %799  ;;  %v794_v55 = vpop.xlane.xlu0 %793 }
 0x13d   : > { %v816_v62 = vsub.f32 %v1800_v2, %v800_v53  ;;  %v814_v58 = vsub.f32 %v1798_v1, %v794_v55 }
 0x13e   : > { %v1491_v60 = vpop.eup %1490 }
 0x13f   : > { %v1493_v57 = vpop.eup %1492  ;;  %v827_v56 = vmul.f32 1.442695, %v816_v62  ;;  %v823_v63 = vmul.f32 1.442695, %v814_v58  ;;  %v858_v0 = vsel %vm788_vm2, %v1491_v60, 0.0 }
 0x140   : > { %v1495_v61 = vpop.eup %1494  ;;  %1435 = vmatmul.msk.f32.vlgmr.msrb.gmra.mxu3 %vm788_vm2, %v1493_v57  ;;  %859 = vadd.xlane.f32.xlu1 %v858_v0  ;;  %v855_v3 = vsel %vm788_vm2, %v1493_v57, 0.0 }
 0x141   : > { %1496 = vpow2.f32 %v827_v56  ;;  %1434 = vmatmul.msk.f32.gmra.mxu2 %vm788_vm2, %v1495_v61  ;;  %856 = vadd.xlane.f32.xlu0 %v855_v3  ;;  %v852_v1 = vsel %vm788_vm2, %v1495_v61, 0.0 }
 0x142   : > { %1498 = vpow2.f32 %v823_v63 }
 0x147   : > { %v1497_v2 = vpop.eup %1496 }
 0x148   : > { %v1499_v4 = vpop.eup %1498  ;;  %1432 = vmatmul.msk.f32.gmra.mxu1 %vm788_vm2, %v1497_v2  ;;  %1436 = vmatmul.msk.f32.gmra.mxu3 %vm788_vm2, %v1491_v60  ;;  %v846_v7 = vsel %vm788_vm2, %v1497_v2, 0.0 }
 0x149   : > { %1430 = vmatmul.msk.f32.gmra.mxu0 %vm788_vm2, %v1499_v4  ;;  %853 = vadd.xlane.f32.xlu0 %v852_v1  ;;  %v840_v6 = vsel %vm788_vm2, %v1499_v4, 0.0 }
 0x14a   : > { %841 = vadd.xlane.f32.xlu2 %v840_v6 }
 0x151   : > { %847 = vadd.xlane.f32.xlu0 %v846_v7 }
 0x152   : > { %844 = vadd.xlane.f32.xlu2 %v843_v8 }
 0x1a6   : > { %v839_v12 = vpop.xlane.xlu1 %838 }
 0x1a7   : > { %1500 = vrcp.f32 %v839_v12 }
 0x1ac   : > { %v851_v5 = vpop.xlane.xlu2 %850 }
 0x1ad   : > { %1502 = vrcp.f32 %v851_v5  ;;  %v1501_v14 = vpop.eup %1500 }
 0x1ae   : > { %v869_v24 = vmul.f32 %v1501_v14, %v839_v12  ;;  %v945_v52 = vpop.f32.mrf.mxu1 }
 0x1af   : > { %v916_v15 = vpop.f32.mrf.mxu0 }
 0x1b0   : > { %v877_v10 = vsub.f32 2.0, %v869_v24 }
 0x1b2   : > { %v885_v16 = vmul.f32 %v1501_v14, %v877_v10 }
 0x1b3   : > { %v860_v21 = vpop.xlane.xlu1 %859  ;;  %v1503_v23 = vpop.eup %1502 }
 0x1b4   : > { %v857_v13 = vpop.xlane.xlu0 %856  ;;  %1504 = vrcp.f32 %v860_v21  ;;  %v873_v29 = vmul.f32 %v1503_v23, %v851_v5  ;;  %v1009_v40 = vmul.f32 %v916_v15, %v885_v16 }
 0x1b5   : > { %1506 = vrcp.f32 %v857_v13 }
 0x1b6   : > { %v881_v31 = vsub.f32 2.0, %v873_v29  ;;  %v1019_v48 = vrot.slane %v1009_v40, 4 }
 0x1b8   : > { %v889_v36 = vmul.f32 %v1503_v23, %v881_v31 }
 0x1ba   : > { %v1505_v30 = vpop.eup %1504 }
 0x1bb   : > { %v974_v22 = vpop.f32.mrf.mxu2  ;;  %v1507_v32 = vpop.eup %1506  ;;  %v876_v28 = vmul.f32 %v1505_v30, %v860_v21 }
 0x1bc   : > { %v854_v25 = vpop.xlane.xlu0 %853  ;;  %v875_v20 = vmul.f32 %v1507_v32, %v857_v13  ;;  %v1013_v41 = vmul.f32 %v974_v22, %v889_v36 }
 0x1bd   : > { %v842_v9 = vpop.xlane.xlu2 %841  ;;  %1508 = vrcp.f32 %v854_v25  ;;  %v884_v43 = vsub.f32 2.0, %v876_v28 }
 0x1be   : > { %1510 = vrcp.f32 %v842_v9  ;;  %v883_v45 = vsub.f32 2.0, %v875_v20  ;;  %v1017_v27 = vrot.slane %v1013_v41, 4  ;;  %v1020_v58 = vsel %vm263_vm0, %v1013_v41, %v1019_v48 }
 0x1bf   : > { %v892_v62 = vmul.f32 %v1505_v30, %v884_v43  ;;  %v1028_v6 = vperm.slane %v1020_v58, %v1629_v11 }
 0x1c0   : > { %v891_v60 = vmul.f32 %v1507_v32, %v883_v45  ;;  %v1018_v3 = vsel %vm263_vm0, %v1017_v27, %v1009_v40 }
 0x1c1   : > { %v1024_v13 = vperm.slane %v1018_v3, %v1629_v11  ;;  %v1055_v29 = vrot.slane %v1028_v6, 4 }
 0x1c3   : > { %v1509_v33 = vpop.eup %1508  ;;  %v1003_v19 = vpop.f32.mrf.mxu3  ;;  %v1043_v15 = vrot.slane %v1024_v13, 4 }
 0x1c4   : > { %v1511_v18 = vpop.eup %1510  ;;  %v874_v34 = vmul.f32 %v1509_v33, %v854_v25  ;;  %v848_v35 = vpop.xlane.xlu0 %847  ;;  %v1015_v2 = vmul.f32 %v1003_v19, %v891_v60 }
 0x1c5   : > { %v870_v37 = vmul.f32 %v1511_v18, %v842_v9  ;;  %v845_v38 = vpop.xlane.xlu2 %844  ;;  %1512 = vrcp.f32 %v848_v35  ;;  %v977_v46 = vpop.f32.mrf.mxu2 }
 0x1c6   : > { %v882_v39 = vsub.f32 2.0, %v874_v34  ;;  %1514 = vrcp.f32 %v845_v38  ;;  %v919_v47 = vpop.f32.mrf.mxu0  ;;  %v948_v5 = vpop.f32.mrf.mxu1  ;;  %v1029_v24 = vrot.slane %v1015_v2, 4 }
 0x1c7   : > { %v878_v42 = vsub.f32 2.0, %v870_v37 }
 0x1c8   : > { %v890_v44 = vmul.f32 %v1509_v33, %v882_v39 }
 0x1c9   : > { %v886_v54 = vmul.f32 %v1511_v18, %v878_v42 }
 0x1ca   : > { %v1014_v26 = vmul.f32 %v977_v46, %v890_v44 }
 0x1cb   : > { %v1513_v59 = vpop.eup %1512  ;;  %v1010_v49 = vmul.f32 %v919_v47, %v886_v54  ;;  %v1006_v50 = vpop.f32.mrf.mxu3 }
 0x1cc   : > { %v1515_v51 = vpop.eup %1514  ;;  %v1073_v53 = vrot.slane %v1014_v26, 4  ;;  %v872_v55 = vmul.f32 %v1513_v59, %v848_v35  ;;  %v1016_v61 = vmul.f32 %v1006_v50, %v892_v62 }
 0x1cd   : > { %v871_v57 = vmul.f32 %v1515_v51, %v845_v38  ;;  %v1075_v56 = vrot.slane %v1010_v49, 4 }
 0x1ce   : > { %v880_v63 = vsub.f32 2.0, %v872_v55  ;;  %v1074_v0 = vsel %vm263_vm0, %v1073_v53, %v1010_v49  ;;  %v1085_v23 = vrot.slane %v1016_v61, 4 }
 0x1cf   : > { %v879_v4 = vsub.f32 2.0, %v871_v57  ;;  %v1076_v1 = vsel %vm263_vm0, %v1014_v26, %v1075_v56  ;;  %v1080_v12 = vperm.slane %v1074_v0, %v1629_v11 }
 0x1d0   : > { %v888_v7 = vmul.f32 %v1513_v59, %v880_v63  ;;  %v1084_v14 = vperm.slane %v1076_v1, %v1629_v11 }
 0x1d1   : > { %v887_v8 = vmul.f32 %v1515_v51, %v879_v4  ;;  %v1099_v31 = vrot.slane %v1080_v12, 4 }
 0x1d2   : > { %v1012_v21 = vmul.f32 %v948_v5, %v888_v7  ;;  %v1111_v16 = vrot.slane %v1084_v14, 4 }
 0x1d3   : > { %v1011_v25 = vmul.f32 %v945_v52, %v887_v8 }
 0x1d4   : > { %v1087_v9 = vrot.slane %v1012_v21, 4  ;;  %v1086_v10 = vsel %vm263_vm0, %v1085_v23, %v1012_v21 }
 0x1d5   : > { %v1030_v22 = vsel %vm263_vm0, %v1029_v24, %v1011_v25  ;;  %v1031_v30 = vrot.slane %v1011_v25, 4  ;;  %v1092_v32 = vperm.slane %v1086_v10, %v1629_v11 }
 0x1d6   : > { %v1036_v33 = vperm.slane %v1030_v22, %v1629_v11  ;;  %v1088_v19 = vsel %vm263_vm0, %v1016_v61, %v1087_v9 }
 0x1d7   : > { %v1032_v18 = vsel %vm263_vm0, %v1015_v2, %v1031_v30  ;;  %v1096_v28 = vperm.slane %v1088_v19, %v1629_v11  ;;  %v1097_v34 = vrot.slane %v1092_v32, 4  ;;  %v1100_v35 = vsel %vm263_vm0, %v1092_v32, %v1099_v31 }
 0x1d8   : > { %v1040_v20 = vperm.slane %v1032_v18, %v1629_v11  ;;  %v1041_v36 = vrot.slane %v1036_v33, 4  ;;  %v1044_v37 = vsel %vm263_vm0, %v1036_v33, %v1043_v15  ;;  %v1108_v38 = vperm.slane %v1100_v35, %v1637_v17 }
 0x1d9   : > { %v1052_v39 = vperm.slane %v1044_v37, %v1637_v17  ;;  %v1098_v40 = vsel %vm263_vm0, %v1097_v34, %v1080_v12  ;;  %v1109_v41 = vrot.slane %v1096_v28, 4  ;;  %v1112_v42 = vsel %vm263_vm0, %v1096_v28, %v1111_v16 }
 0x1da   : > { %v1042_v43 = vsel %vm263_vm0, %v1041_v36, %v1024_v13  ;;  %v1053_v44 = vrot.slane %v1040_v20, 4  ;;  %v1056_v52 = vsel %vm263_vm0, %v1040_v20, %v1055_v29  ;;  %v1104_v45 = vperm.slane %v1098_v40, %v1637_v17 }
 0x1db   : > { %v1064_v46 = vperm.slane %v1056_v52, %v1637_v17  ;;  %v1067_v54 = vrot.slane %v1052_v39, 4  ;;  %v1110_v26 = vsel %vm263_vm0, %v1109_v41, %v1084_v14  ;;  %v1120_v47 = vperm.slane %v1112_v42, %v1637_v17 }
 0x1dc   : > { %v1054_v59 = vsel %vm263_vm0, %v1053_v44, %v1028_v6  ;;  %v1116_v48 = vperm.slane %v1110_v26, %v1637_v17  ;;  %v1121_v27 = vrot.slane %v1104_v45, 4  ;;  %v1123_v49 = vrot.slane %v1108_v38, 4 }
 0x1dd   : > { %v1071_v50 = vrot.slane %v1064_v46, 4  ;;  %v1127_v51 = vrot.slane %v1120_v47, 4  ;;  %v1048_v53 = vperm.slane %v1042_v43, %v1637_v17  ;;  %v1060_v55 = vperm.slane %v1054_v59, %v1637_v17 }
 0x1de   : > { %v1124_v62 = vsel %vm263_vm0, 0.0, %v1123_v49  ;;  %v1125_v58 = vrot.slane %v1116_v48, 4  ;;  %v1068_v60 = vsel %vm263_vm0, 0.0, %v1067_v54  ;;  %v1122_v57 = vsel %vm263_vm0, 0.0, %v1121_v27 }
 0x1df   : > { %v1128_v56 = vsel %vm263_vm0, 0.0, %v1127_v51  ;;  %v1188_v63 = vrot.slane %v1124_v62, 4  ;;  %v1065_v0 = vrot.slane %v1048_v53, 4  ;;  %v1069_v61 = vrot.slane %v1060_v55, 4 }
 0x1e0   : > { %v1199_v3 = vrot.slane %v1128_v56, 4  ;;  %v1072_v2 = vsel %vm263_vm0, 0.0, %v1071_v50  ;;  %v1129_v4 = vsel %vm263_vm0, %v1067_v54, %v1048_v53  ;;  %v1134_v1 = vrot.slane %v1068_v60, 4 }
 0x1e1   : > { %v1066_v6 = vsel %vm263_vm0, 0.0, %v1065_v0  ;;  %v1070_v7 = vsel %vm263_vm0, 0.0, %v1069_v61  ;;  %v1133_v8 = vperm.slane %v1129_v4, %v1629_v11  ;;  %v1140_v12 = vsel %vm263_vm0, %v1071_v50, %v1060_v55 }
 0x1e2   : > { %v1135_v5 = vsel %vm263_vm0, %v1134_v1, %v1066_v6  ;;  %v1144_v13 = vperm.slane %v1140_v12, %v1629_v11  ;;  %v1145_v14 = vrot.slane %v1072_v2, 4  ;;  %v1126_v21 = vsel %vm263_vm0, 0.0, %v1125_v58 }
 0x1e3   : > { %v1139_v23 = vperm.slane %v1135_v5, %v1629_v11  ;;  %v1153_v24 = vrot.slane %v1133_v8, 4  ;;  %v1183_v25 = vsel %vm263_vm0, %v1123_v49, %v1104_v45  ;;  %v1189_v29 = vsel %vm263_vm0, %v1188_v63, %v1122_v57 }
 0x1e4   : > { %v1146_v9 = vsel %vm263_vm0, %v1145_v14, %v1070_v7  ;;  %v1165_v10 = vrot.slane %v1144_v13, 4  ;;  %v1193_v22 = vperm.slane %v1189_v29, %v1629_v11  ;;  %v1187_v32 = vperm.slane %v1183_v25, %v1629_v11  ;;  %v1268_v7 = vld [vmem:[%s204_s4] sm:$0xff] }
 0x1e5   : > { %v1150_v30 = vperm.slane %v1146_v9, %v1629_v11  ;;  %v1151_v31 = vrot.slane %v1139_v23, 4  ;;  %v1194_v15 = vsel %vm263_vm0, %v1127_v51, %v1116_v48  ;;  %v1154_v33 = vsel %vm263_vm0, %v1139_v23, %v1153_v24 }
 0x1e6   : > { %v1198_v16 = vperm.slane %v1194_v15, %v1629_v11  ;;  %v1200_v19 = vsel %vm263_vm0, %v1199_v3, %v1126_v21  ;;  %v1205_v18 = vrot.slane %v1193_v22, 4  ;;  %v1207_v42 = vrot.slane %v1187_v32, 4 }
 0x1e7   : > { %v1166_v28 = vsel %vm263_vm0, %v1150_v30, %v1165_v10  ;;  %v1152_v34 = vsel %vm263_vm0, %v1151_v31, %v1133_v8  ;;  %v1163_v35 = vrot.slane %v1150_v30, 4  ;;  %v1204_v20 = vperm.slane %v1200_v19, %v1629_v11  ;;  %v1269_v8 = vld [vmem:[%s204_s4 + $0x8] sm:$0xff] }
 0x1e8   : > { %v1174_v36 = vperm.slane %v1166_v28, %v1637_v17  ;;  %v1158_v37 = vperm.slane %v1152_v34, %v1637_v17  ;;  %v1206_v38 = vsel %vm263_vm0, %v1205_v18, %v1187_v32  ;;  %v1162_v43 = vperm.slane %v1154_v33, %v1637_v17 }
 0x1e9   : > { %v1164_v39 = vsel %vm263_vm0, %v1163_v35, %v1144_v13  ;;  %v1212_v40 = vperm.slane %v1206_v38, %v1637_v17  ;;  %v1217_v41 = vrot.slane %v1204_v20, 4  ;;  %v1208_v54 = vsel %vm263_vm0, %v1193_v22, %v1207_v42 }
 0x1ea   : > { %v1179_v44 = vrot.slane %v1174_v36, 4  ;;  %v1170_v52 = vperm.slane %v1164_v39, %v1637_v17  ;;  %v1177_v45 = vrot.slane %v1158_v37, 4  ;;  %v1219_v26 = vrot.slane %v1198_v16, 4 }
 0x1eb   : > { %v1218_v11 = vsel %vm263_vm0, %v1217_v41, %v1198_v16  ;;  %v1231_v46 = vrot.slane %v1212_v40, 4  ;;  %v1216_v49 = vperm.slane %v1208_v54, %v1637_v17  ;;  %v1181_v58 = vrot.slane %v1162_v43, 4 }
 0x1ec   : > { %v1180_v47 = vsel %vm263_vm0, %v1179_v44, %v1162_v43  ;;  %v1175_v59 = vrot.slane %v1170_v52, 4  ;;  %v1178_v48 = vsel %vm263_vm0, %v1170_v52, %v1177_v45  ;;  %v1224_v27 = vperm.slane %v1218_v11, %v1637_v17 }
 0x1ed   : > { %1247 = vrot.lane.b32.xlu0 %v1180_v47, %s1558_s23  ;;  %1239 = vrot.lane.b32.xlu1 %v1178_v48, %s1559_s24  ;;  %v1220_v50 = vsel %vm263_vm0, %v1204_v20, %v1219_v26  ;;  %v1235_v60 = vrot.slane %v1216_v49, 4  ;;  %v1182_v63 = vsel %vm263_vm0, %v1174_v36, %v1181_v58 }
 0x1ee   : > { %v1229_v51 = vrot.slane %v1224_v27, 4  ;;  %v1232_v53 = vsel %vm263_vm0, %v1224_v27, %v1231_v46  ;;  %v1228_v55 = vperm.slane %v1220_v50, %v1637_v17  ;;  %v1176_v62 = vsel %vm263_vm0, %v1175_v59, %v1158_v37 }
 0x1ef   : > { %1241 = vrot.lane.b32.xlu2 %v1232_v53, %s1559_s24 }
 0x1f0   : > { %v1230_v57 = vsel %vm263_vm0, %v1229_v51, %v1212_v40  ;;  %v1233_v56 = vrot.slane %v1228_v55, 4  ;;  %v1236_v0 = vsel %vm263_vm0, %v1228_v55, %v1235_v60 }
 0x1f2   : > { %v1234_v61 = vsel %vm263_vm0, %v1233_v56, %v1216_v49 }
 0x1f5   : > { %1255 = vrot.lane.b32.xlu1 %v1182_v63, %s1560_s25  ;;  %1257 = vrot.lane.b32.xlu0 %v1236_v0, %s1560_s25 }
 0x1f7   : > { %1249 = vrot.lane.b32.xlu2 %v1234_v61, %s1558_s23 }
 0x249   : > { %v1242_v17 = vpop.permute.xlu2 %1241 }
 0x24a   : > { %v1262_v6 = vsel %vm647_vm1, %v1230_v57, %v1242_v17 }
 0x251   : > { %v1250_v4 = vpop.permute.xlu2 %1249 }
 0x252   : > { %v1264_v12 = vsel %vm788_vm2, %v1262_v6, %v1250_v4 }
 0x25f   : > { %v1240_v3 = vpop.permute.xlu1 %1239  ;;  %v1248_v2 = vpop.permute.xlu0 %1247 }
 0x260   : > { %v1261_v1 = vsel %vm647_vm1, %v1176_v62, %v1240_v3 }
 0x261   : > { %v1263_v5 = vsel %vm788_vm2, %v1261_v1, %v1248_v2 }
 0x267   : > { %v1256_v13 = vpop.permute.xlu1 %1255  ;;  %v1258_v14 = vpop.permute.xlu0 %1257 }
 0x268   : > { %v1266_v21 = vsel %vm1265_vm3, %v1263_v5, %v1256_v13  ;;  %v1267_v23 = vsel %vm1265_vm3, %v1264_v12, %v1258_v14 }
 0x269   : > { %v1270_v24 = vadd.f32 %v1268_v7, %v1266_v21  ;;  %v1271_v25 = vadd.f32 %v1269_v8, %v1267_v23 }
 0x26b   : > { %1273 = vst.msk [vmem:[%s213_s7] sm:$0xff] %vm1272_vm4, %v1270_v24 }
 0x26c   : > { %1274 = vst.msk [vmem:[%s213_s7 + $0x8] sm:$0xff] %vm1272_vm4, %v1271_v25 }
 0x26d PF: > { %s12_s13 = sadd.s32 1, %s1554_s13   ;;  %s1996_s9 = smov %s1546_s11 }
 0x26e   : > { %p9_p7 = scmp.ge.s32.totalorder %s12_s13, 10   ;;  %s1997_s10 = smov %s1550_s12 }
 0x26f   : > { %s1998_s11 = smov %s2001_s14  ;;  %s1999_s12 = smov %s2005_s15 }
 0x270   :  { %11 = sbr.rel (!%p9_p7) target bundleno = 3 (0x3), region = 61 }

</bundles_post_ra>
